<compile_context>
chip_gen: v7x
topology: tpu7x:2x2x1
jax: 0.10.0
libtpu: 0.0.40
codegen_flags: <defaults>
</compile_context>

<pallas_src>
import numpy as np
import jax
import jax.numpy as jnp
from jax.experimental import pallas as pl
from jax.experimental.pallas import tpu as pltpu


GRID_SIZE = 5
SPLINE_ORDER = 3
GRID_RANGE = (-1.0, 1.0)


def _kan_grid():
    h = (GRID_RANGE[1] - GRID_RANGE[0]) / GRID_SIZE
    return (np.arange(-SPLINE_ORDER, GRID_SIZE + SPLINE_ORDER + 1,
                      dtype=np.float32) * h + GRID_RANGE[0])


def _pad8(n):
    return ((n + 7) // 8) * 8


# --------------------------------------------------------------------------
# Fused kernel factory
# --------------------------------------------------------------------------
def _make_fused_kernel(T, B, Bp, H, Din, first_off, deep_offs, n_kan,
                       knots, spline_order):
    """Kernel: interleaved stacked LSTM -> last hidden state -> KAN MLP."""
    H2, H3, H4 = 2 * H, 3 * H, 4 * H
    n_lstm = 1 + len(deep_offs)

    def gates(pre):
        # g-gate columns were pre-scaled by 2 host-side, so tanh(g) = 2*sig-1.
        s = jax.nn.sigmoid(pre)            # one EUP pass over all 4H lanes
        i = s[:, 0:H]
        f = s[:, H:H2]
        g = 2.0 * s[:, H2:H3] - 1.0        # VPU fma instead of a second EUP op
        o = s[:, H3:H4]
        return i, f, g, o

    def kernel(x_ref, lstm_ref, *rest):
        kan_refs = rest[:n_kan]
        out_ref = rest[n_kan]

        # ---- unpack the single LSTM weight slab (8-aligned static slices) ----
        o_ih, o_hh, o_b = first_off
        w_ih1 = lstm_ref[o_ih:o_ih + Din, :]          # (Din, 4H)
        w_hh1 = lstm_ref[o_hh:o_hh + H, :]            # (H,   4H)
        b1 = lstm_ref[o_b:o_b + 1, :]                 # (1,   4H)
        deep = [(lstm_ref[ow:ow + 2 * H, :],          # (2H, 4H) = [W_ih^T; W_hh^T]
                 lstm_ref[ob:ob + 1, :])              # (1, 4H)
                for (ow, ob) in deep_offs]

        # ---- hoisted layer-0 input projection (+ bias): one big-M MXU call ----
        xp = jnp.dot(x_ref[...], w_ih1,
                     preferred_element_type=jnp.float32) + b1      # (T*Bp, 4H)

        # ---- interleaved recurrences (layers pipelined one step apart) ----
        hs = [None] * n_lstm
        cs = [None] * n_lstm
        for t in range(T):                 # static unroll; h/c carried in Python
            # layer 0, step t
            pre = xp[t * Bp:(t + 1) * Bp, :]          # 8-aligned sublane slice
            if t > 0:
                pre = pre + jnp.dot(hs[0], w_hh1,
                                    preferred_element_type=jnp.float32)
            i, f, g, o = gates(pre)
            cs[0] = i * g if t == 0 else f * cs[0] + i * g
            hs[0] = o * jnp.tanh(cs[0])
            # deeper layers, step t — consume hs[l-1] of THIS step immediately
            for l in range(1, n_lstm):
                w_c, b_l = deep[l - 1]
                if t == 0:                 # h_prev = 0: only the W_ih^T half
                    pre = jnp.dot(hs[l - 1], w_c[0:H, :],
                                  preferred_element_type=jnp.float32) + b_l
                else:                      # one fused (Bp,2H)x(2H,4H) dot
                    pre = jnp.dot(jnp.concatenate([hs[l - 1], hs[l]], axis=-1),
                                  w_c, preferred_element_type=jnp.float32) + b_l
                i, f, g, o = gates(pre)
                cs[l] = i * g if t == 0 else f * cs[l] + i * g
                hs[l] = o * jnp.tanh(cs[l])

        z = hs[-1]                          # (Bp, H); padded rows finite garbage

        # ---- KAN head: one matmul per layer against the packed slab ----
        for kref in kan_refs:
            silu = z * jax.nn.sigmoid(z)
            # Cox–de Boor with compile-time scalar knots (uniform grid).
            bases = [jnp.logical_and(z >= knots[j], z < knots[j + 1])
                     .astype(jnp.float32) for j in range(len(knots) - 1)]
            for k in range(1, spline_order + 1):
                inv = 1.0 / (knots[k] - knots[0])      # 1/(k*h), no divides
                bases = [(z - knots[j]) * inv * bases[j]
                         + (knots[j + 1 + k] - z) * inv * bases[j + 1]
                         for j in range(len(bases) - 1)]
            feat = jnp.concatenate([silu] + bases, axis=-1)   # (Bp, (1+C)*In)
            z = jnp.dot(feat, kref[...], preferred_element_type=jnp.float32)

        out_ref[...] = z[0:B, :].astype(out_ref.dtype)

    return kernel


# --------------------------------------------------------------------------
# Full module forward (single pallas_call, 4 input DMAs)
# --------------------------------------------------------------------------
def lstm_kan_forward(x, lstm_params, kan_params):
    """x: (B, T, input_size), batch_first=True (PyTorch layout).

    lstm_params: list of (w_ih (4H,Din), w_hh (4H,H), b_ih (4H,), b_hh (4H,))
    kan_params : list of (base_w (Out,In), spline_w (Out,In,C), spline_scaler (Out,In))
    Returns KAN(hidden[-1]) with shape (B, output_size).
    """
    f32 = jnp.float32
    B, T, Din = x.shape
    H = lstm_params[0][1].shape[1]
    for (_, w_hh, _, _) in lstm_params:
        assert w_hh.shape[1] == H, "all LSTM layers must share hidden_size"
    out_features = kan_params[-1][0].shape[0]
    Bp = _pad8(B)
    knots = tuple(float(v) for v in _kan_grid())

    # g-gate pre-scale by 2 so the kernel can use tanh(g) = 2*sigmoid(2g) - 1.
    gscale = jnp.concatenate([jnp.ones((2 * H,), f32),
                              jnp.full((H,), 2.0, f32),
                              jnp.ones((H,), f32)])

    # ---- pack ALL LSTM weights/biases into one (rows, 4H) slab ----
    pieces = []
    off = 0
    w_ih, w_hh, b_ih, b_hh = lstm_params[0]
    o_ih = off; off += _pad8(Din)
    o_hh = off; off += _pad8(H)
    o_b = off; off += 8
    first_off = (o_ih, o_hh, o_b)
    pieces += [(o_ih, jnp.transpose(w_ih).astype(f32) * gscale),
               (o_hh, jnp.transpose(w_hh).astype(f32) * gscale),
               (o_b, ((b_ih + b_hh).astype(f32) * gscale).reshape(1, -1))]
    deep_offs = []
    for (w_ih, w_hh, b_ih, b_hh) in lstm_params[1:]:
        w_comb = jnp.concatenate([jnp.transpose(w_ih), jnp.transpose(w_hh)],
                                 axis=0).astype(f32) * gscale        # (2H, 4H)
        o_w = off; off += _pad8(2 * H)
        o_b = off; off += 8
        deep_offs.append((o_w, o_b))
        pieces += [(o_w, w_comb),
                   (o_b, ((b_ih + b_hh).astype(f32) * gscale).reshape(1, -1))]
    lstm_slab = jnp.zeros((_pad8(off), 4 * H), f32)
    for o, arr in pieces:
        lstm_slab = lstm_slab.at[o:o + arr.shape[0], :].set(arr)

    # ---- x: time-major, batch padded to a multiple of 8 sublanes ----
    x_tm = jnp.transpose(x.astype(f32), (1, 0, 2))          # (T, B, Din)
    x_tm = jnp.pad(x_tm, ((0, 0), (0, Bp - B), (0, 0)))     # (T, Bp, Din)
    x_flat = x_tm.reshape(T * Bp, Din)                       # row t*Bp+b = x[b,t]

    # ---- pack each KAN layer into one [base_w^T ; spline (C*In,Out)] slab ----
    kan_slabs = []
    for (base_w, spline_w, spline_scaler) in kan_params:
        Out, In = base_w.shape
        C = spline_w.shape[2]
        scaled = (spline_w * spline_scaler[:, :, None]).astype(f32)   # (Out,In,C)
        sp = jnp.transpose(scaled, (2, 1, 0)).reshape(C * In, Out)    # c-major
        kan_slabs.append(jnp.concatenate([jnp.transpose(base_w).astype(f32), sp],
                                         axis=0))                     # ((1+C)*In, Out)

    kernel = _make_fused_kernel(T, B, Bp, H, Din, first_off, tuple(deep_offs),
                                len(kan_params), knots, SPLINE_ORDER)
    vmem = pl.BlockSpec(memory_space=pltpu.MemorySpace.VMEM)
    return pl.pallas_call(
        kernel,
        out_shape=jax.ShapeDtypeStruct((B, out_features), f32),
        in_specs=[vmem] * (2 + len(kan_slabs)),
        out_specs=vmem,
    )(x_flat, lstm_slab, *kan_slabs)


# --------------------------------------------------------------------------
# Pure-JAX reference (numerical sanity check)
# --------------------------------------------------------------------------
def _lstm_ref(x, lstm_params):
    B, T, _ = x.shape
    seq = x
    h = None
    for (w_ih, w_hh, b_ih, b_hh) in lstm_params:
        H = w_hh.shape[1]
        h = jnp.zeros((B, H), jnp.float32)
        c = jnp.zeros((B, H), jnp.float32)
        outs = []
        for t in range(T):
            gts = seq[:, t, :] @ w_ih.T + h @ w_hh.T + b_ih + b_hh
            i = jax.nn.sigmoid(gts[:, :H])
            f = jax.nn.sigmoid(gts[:, H:2 * H])
            g = jnp.tanh(gts[:, 2 * H:3 * H])
            o = jax.nn.sigmoid(gts[:, 3 * H:])
            c = f * c + i * g
            h = o * jnp.tanh(c)
            outs.append(h)
        seq = jnp.stack(outs, axis=1)
    return h


def _kan_linear_ref(x, base_w, spline_w, spline_scaler):
    g = jnp.asarray(_kan_grid())
    base = (x * jax.nn.sigmoid(x)) @ base_w.T
    xe = x[:, :, None]
    bases = ((xe >= g[:-1]) & (xe < g[1:])).astype(jnp.float32)
    for k in range(1, SPLINE_ORDER + 1):
        bases = ((xe - g[: -(k + 1)]) / (g[k:-1] - g[: -(k + 1)]) * bases[..., :-1]
                 + (g[k + 1:] - xe) / (g[k + 1:] - g[1:-k]) * bases[..., 1:])
    scaled = spline_w * spline_scaler[..., None]
    spline = bases.reshape(x.shape[0], -1) @ scaled.reshape(base_w.shape[0], -1).T
    return base + spline


def _ref_forward(x, lstm_params, kan_params):
    out = _lstm_ref(x, lstm_params)
    for p in kan_params:
        out = _kan_linear_ref(out, *p)
    return out


# --------------------------------------------------------------------------
if __name__ == "__main__":
    # module hyper-parameters (small, consistent with lstm_kan.__init__)
    batch, seq_len = 2, 8
    input_size, hidden_size, num_layers, output_size = 4, 32, 2, 8
    kan_dims = [hidden_size, 16, output_size]

    key = jax.random.PRNGKey(0)
    keys = iter(jax.random.split(key, 64))

    # deterministic synthetic LSTM parameters (PyTorch layout)
    bound = 1.0 / np.sqrt(hidden_size)
    lstm_params = []
    for layer in range(num_layers):
        din = input_size if layer == 0 else hidden_size
        w_ih = jax.random.uniform(next(keys), (4 * hidden_size, din),
                                  jnp.float32, -bound, bound)
        w_hh = jax.random.uniform(next(keys), (4 * hidden_size, hidden_size),
                                  jnp.float32, -bound, bound)
        b_ih = jax.random.uniform(next(keys), (4 * hidden_size,),
                                  jnp.float32, -bound, bound)
        b_hh = jax.random.uniform(next(keys), (4 * hidden_size,),
                                  jnp.float32, -bound, bound)
        lstm_params.append((w_ih, w_hh, b_ih, b_hh))

    # deterministic synthetic KAN parameters: layers 32->16 and 16->8
    coeffs = GRID_SIZE + SPLINE_ORDER
    kan_params = []
    for fin, fout in zip(kan_dims[:-1], kan_dims[1:]):
        s = 1.0 / np.sqrt(fin)
        base_w = jax.random.uniform(next(keys), (fout, fin), jnp.float32, -s, s)
        spline_w = 0.1 * jax.random.normal(next(keys), (fout, fin, coeffs),
                                           jnp.float32)
        spline_scaler = jax.random.uniform(next(keys), (fout, fin),
                                           jnp.float32, -s, s)
        kan_params.append((base_w, spline_w, spline_scaler))

    # example input: (batch, seq, input_size), batch_first=True
    x = jax.random.normal(next(keys), (batch, seq_len, input_size), jnp.float32)

    fwd = jax.jit(lstm_kan_forward)
    out = jax.block_until_ready(fwd(x, lstm_params, kan_params))
    assert out.shape == (batch, output_size), out.shape

    ref = jax.block_until_ready(_ref_forward(x, lstm_params, kan_params))
    np.testing.assert_allclose(np.asarray(out), np.asarray(ref),
                               rtol=2e-3, atol=2e-3)

    print("KERNEL_OK")
</pallas_src>

<mosaic_0001>
module attributes {stable_mosaic.version = 11 : i64} {
  func.func @kernel(%arg0: memref<64x4xf32, #tpu.memory_space<vmem>>, %arg1: memref<120x128xf32, #tpu.memory_space<vmem>>, %arg2: memref<288x16xf32, #tpu.memory_space<vmem>>, %arg3: memref<144x8xf32, #tpu.memory_space<vmem>>, %arg4: memref<2x8xf32, #tpu.memory_space<vmem>>) attributes {dimension_semantics = [], scalar_prefetch = 0 : i64, scratch_operands = 0 : i64, tpu.core_type = #tpu.core_type<tc>} {
    %c0 = arith.constant 0 : index
    %c0_0 = arith.constant 0 : index
    %0 = vector.load %arg1[%c0, %c0_0] : memref<120x128xf32, #tpu.memory_space<vmem>>, vector<4x128xf32>
    %c8 = arith.constant 8 : index
    %c0_1 = arith.constant 0 : index
    %1 = vector.load %arg1[%c8, %c0_1] : memref<120x128xf32, #tpu.memory_space<vmem>>, vector<32x128xf32>
    %c40 = arith.constant 40 : index
    %c0_2 = arith.constant 0 : index
    %2 = vector.load %arg1[%c40, %c0_2] : memref<120x128xf32, #tpu.memory_space<vmem>>, vector<1x128xf32>
    %c48 = arith.constant 48 : index
    %c0_3 = arith.constant 0 : index
    %3 = vector.load %arg1[%c48, %c0_3] : memref<120x128xf32, #tpu.memory_space<vmem>>, vector<64x128xf32>
    %c112 = arith.constant 112 : index
    %c0_4 = arith.constant 0 : index
    %4 = vector.load %arg1[%c112, %c0_4] : memref<120x128xf32, #tpu.memory_space<vmem>>, vector<1x128xf32>
    %c0_5 = arith.constant 0 : index
    %c0_6 = arith.constant 0 : index
    %5 = vector.load %arg0[%c0_5, %c0_6] : memref<64x4xf32, #tpu.memory_space<vmem>>, vector<64x4xf32>
    %cst = arith.constant dense<0.000000e+00> : vector<64x128xf32>
    %6 = tpu.matmul %5, %0, %cst {dimension_numbers = #tpu.dot_dimension_numbers<[1], [0], [0], [1], [0, 0, 1, 1], [], []>} : vector<64x4xf32>, vector<4x128xf32>, vector<64x128xf32> -> vector<64x128xf32>
    %7 = vector.broadcast %2 : vector<1x128xf32> to vector<64x128xf32>
    %8 = arith.addf %6, %7 : vector<64x128xf32>
    %9 = vector.extract_strided_slice %8 {offsets = [0, 0], sizes = [8, 128], strides = [1, 1]} : vector<64x128xf32> to vector<8x128xf32>
    %10 = arith.negf %9 : vector<8x128xf32>
    %11 = math.exp %10 : vector<8x128xf32>
    %cst_7 = arith.constant 1.000000e+00 : f32
    %12 = vector.broadcast %cst_7 : f32 to vector<8x128xf32>
    %13 = arith.addf %12, %11 : vector<8x128xf32>
    %14 = arith.divf %12, %13 : vector<8x128xf32>
    %15 = vector.extract_strided_slice %14 {offsets = [0, 0], sizes = [8, 32], strides = [1, 1]} : vector<8x128xf32> to vector<8x32xf32>
    %16 = vector.extract_strided_slice %14 {offsets = [0, 64], sizes = [8, 32], strides = [1, 1]} : vector<8x128xf32> to vector<8x32xf32>
    %cst_8 = arith.constant 2.000000e+00 : f32
    %17 = vector.broadcast %cst_8 : f32 to vector<8x32xf32>
    %18 = arith.mulf %17, %16 : vector<8x32xf32>
    %cst_9 = arith.constant 1.000000e+00 : f32
    %19 = vector.broadcast %cst_9 : f32 to vector<8x32xf32>
    %20 = arith.subf %18, %19 : vector<8x32xf32>
    %21 = vector.extract_strided_slice %14 {offsets = [0, 96], sizes = [8, 32], strides = [1, 1]} : vector<8x128xf32> to vector<8x32xf32>
    %22 = arith.mulf %15, %20 : vector<8x32xf32>
    %23 = math.tanh %22 : vector<8x32xf32>
    %24 = arith.mulf %21, %23 : vector<8x32xf32>
    %25 = vector.extract_strided_slice %3 {offsets = [0, 0], sizes = [32, 128], strides = [1, 1]} : vector<64x128xf32> to vector<32x128xf32>
    %cst_10 = arith.constant dense<0.000000e+00> : vector<8x128xf32>
    %26 = tpu.matmul %24, %25, %cst_10 {dimension_numbers = #tpu.dot_dimension_numbers<[1], [0], [0], [1], [0, 0, 1, 1], [], []>} : vector<8x32xf32>, vector<32x128xf32>, vector<8x128xf32> -> vector<8x128xf32>
    %27 = vector.broadcast %4 : vector<1x128xf32> to vector<8x128xf32>
    %28 = arith.addf %26, %27 : vector<8x128xf32>
    %29 = arith.negf %28 : vector<8x128xf32>
    %30 = math.exp %29 : vector<8x128xf32>
    %cst_11 = arith.constant 1.000000e+00 : f32
    %31 = vector.broadcast %cst_11 : f32 to vector<8x128xf32>
    %32 = arith.addf %31, %30 : vector<8x128xf32>
    %33 = arith.divf %31, %32 : vector<8x128xf32>
    %34 = vector.extract_strided_slice %33 {offsets = [0, 0], sizes = [8, 32], strides = [1, 1]} : vector<8x128xf32> to vector<8x32xf32>
    %35 = vector.extract_strided_slice %33 {offsets = [0, 64], sizes = [8, 32], strides = [1, 1]} : vector<8x128xf32> to vector<8x32xf32>
    %cst_12 = arith.constant 2.000000e+00 : f32
    %36 = vector.broadcast %cst_12 : f32 to vector<8x32xf32>
    %37 = arith.mulf %36, %35 : vector<8x32xf32>
    %cst_13 = arith.constant 1.000000e+00 : f32
    %38 = vector.broadcast %cst_13 : f32 to vector<8x32xf32>
    %39 = arith.subf %37, %38 : vector<8x32xf32>
    %40 = vector.extract_strided_slice %33 {offsets = [0, 96], sizes = [8, 32], strides = [1, 1]} : vector<8x128xf32> to vector<8x32xf32>
    %41 = arith.mulf %34, %39 : vector<8x32xf32>
    %42 = math.tanh %41 : vector<8x32xf32>
    %43 = arith.mulf %40, %42 : vector<8x32xf32>
    %44 = vector.extract_strided_slice %8 {offsets = [8, 0], sizes = [8, 128], strides = [1, 1]} : vector<64x128xf32> to vector<8x128xf32>
    %cst_14 = arith.constant dense<0.000000e+00> : vector<8x128xf32>
    %45 = tpu.matmul %24, %1, %cst_14 {dimension_numbers = #tpu.dot_dimension_numbers<[1], [0], [0], [1], [0, 0, 1, 1], [], []>} : vector<8x32xf32>, vector<32x128xf32>, vector<8x128xf32> -> vector<8x128xf32>
    %46 = arith.addf %44, %45 : vector<8x128xf32>
    %47 = arith.negf %46 : vector<8x128xf32>
    %48 = math.exp %47 : vector<8x128xf32>
    %cst_15 = arith.constant 1.000000e+00 : f32
    %49 = vector.broadcast %cst_15 : f32 to vector<8x128xf32>
    %50 = arith.addf %49, %48 : vector<8x128xf32>
    %51 = arith.divf %49, %50 : vector<8x128xf32>
    %52 = vector.extract_strided_slice %51 {offsets = [0, 0], sizes = [8, 32], strides = [1, 1]} : vector<8x128xf32> to vector<8x32xf32>
    %53 = vector.extract_strided_slice %51 {offsets = [0, 32], sizes = [8, 32], strides = [1, 1]} : vector<8x128xf32> to vector<8x32xf32>
    %54 = vector.extract_strided_slice %51 {offsets = [0, 64], sizes = [8, 32], strides = [1, 1]} : vector<8x128xf32> to vector<8x32xf32>
    %cst_16 = arith.constant 2.000000e+00 : f32
    %55 = vector.broadcast %cst_16 : f32 to vector<8x32xf32>
    %56 = arith.mulf %55, %54 : vector<8x32xf32>
    %cst_17 = arith.constant 1.000000e+00 : f32
    %57 = vector.broadcast %cst_17 : f32 to vector<8x32xf32>
    %58 = arith.subf %56, %57 : vector<8x32xf32>
    %59 = vector.extract_strided_slice %51 {offsets = [0, 96], sizes = [8, 32], strides = [1, 1]} : vector<8x128xf32> to vector<8x32xf32>
    %60 = arith.mulf %53, %22 : vector<8x32xf32>
    %61 = arith.mulf %52, %58 : vector<8x32xf32>
    %62 = arith.addf %60, %61 : vector<8x32xf32>
    %63 = math.tanh %62 : vector<8x32xf32>
    %64 = arith.mulf %59, %63 : vector<8x32xf32>
    %65 = tpu.concatenate %64, %43 in 1 : vector<8x32xf32>, vector<8x32xf32> -> vector<8x64xf32>
    %cst_18 = arith.constant dense<0.000000e+00> : vector<8x128xf32>
    %66 = tpu.matmul %65, %3, %cst_18 {dimension_numbers = #tpu.dot_dimension_numbers<[1], [0], [0], [1], [0, 0, 1, 1], [], []>} : vector<8x64xf32>, vector<64x128xf32>, vector<8x128xf32> -> vector<8x128xf32>
    %67 = vector.broadcast %4 : vector<1x128xf32> to vector<8x128xf32>
    %68 = arith.addf %66, %67 : vector<8x128xf32>
    %69 = arith.negf %68 : vector<8x128xf32>
    %70 = math.exp %69 : vector<8x128xf32>
    %cst_19 = arith.constant 1.000000e+00 : f32
    %71 = vector.broadcast %cst_19 : f32 to vector<8x128xf32>
    %72 = arith.addf %71, %70 : vector<8x128xf32>
    %73 = arith.divf %71, %72 : vector<8x128xf32>
    %74 = vector.extract_strided_slice %73 {offsets = [0, 0], sizes = [8, 32], strides = [1, 1]} : vector<8x128xf32> to vector<8x32xf32>
    %75 = vector.extract_strided_slice %73 {offsets = [0, 32], sizes = [8, 32], strides = [1, 1]} : vector<8x128xf32> to vector<8x32xf32>
    %76 = vector.extract_strided_slice %73 {offsets = [0, 64], sizes = [8, 32], strides = [1, 1]} : vector<8x128xf32> to vector<8x32xf32>
    %cst_20 = arith.constant 2.000000e+00 : f32
    %77 = vector.broadcast %cst_20 : f32 to vector<8x32xf32>
    %78 = arith.mulf %77, %76 : vector<8x32xf32>
    %cst_21 = arith.constant 1.000000e+00 : f32
    %79 = vector.broadcast %cst_21 : f32 to vector<8x32xf32>
    %80 = arith.subf %78, %79 : vector<8x32xf32>
    %81 = vector.extract_strided_slice %73 {offsets = [0, 96], sizes = [8, 32], strides = [1, 1]} : vector<8x128xf32> to vector<8x32xf32>
    %82 = arith.mulf %75, %41 : vector<8x32xf32>
    %83 = arith.mulf %74, %80 : vector<8x32xf32>
    %84 = arith.addf %82, %83 : vector<8x32xf32>
    %85 = math.tanh %84 : vector<8x32xf32>
    %86 = arith.mulf %81, %85 : vector<8x32xf32>
    %87 = vector.extract_strided_slice %8 {offsets = [16, 0], sizes = [8, 128], strides = [1, 1]} : vector<64x128xf32> to vector<8x128xf32>
    %cst_22 = arith.constant dense<0.000000e+00> : vector<8x128xf32>
    %88 = tpu.matmul %64, %1, %cst_22 {dimension_numbers = #tpu.dot_dimension_numbers<[1], [0], [0], [1], [0, 0, 1, 1], [], []>} : vector<8x32xf32>, vector<32x128xf32>, vector<8x128xf32> -> vector<8x128xf32>
    %89 = arith.addf %87, %88 : vector<8x128xf32>
    %90 = arith.negf %89 : vector<8x128xf32>
    %91 = math.exp %90 : vector<8x128xf32>
    %cst_23 = arith.constant 1.000000e+00 : f32
    %92 = vector.broadcast %cst_23 : f32 to vector<8x128xf32>
    %93 = arith.addf %92, %91 : vector<8x128xf32>
    %94 = arith.divf %92, %93 : vector<8x128xf32>
    %95 = vector.extract_strided_slice %94 {offsets = [0, 0], sizes = [8, 32], strides = [1, 1]} : vector<8x128xf32> to vector<8x32xf32>
    %96 = vector.extract_strided_slice %94 {offsets = [0, 32], sizes = [8, 32], strides = [1, 1]} : vector<8x128xf32> to vector<8x32xf32>
    %97 = vector.extract_strided_slice %94 {offsets = [0, 64], sizes = [8, 32], strides = [1, 1]} : vector<8x128xf32> to vector<8x32xf32>
    %cst_24 = arith.constant 2.000000e+00 : f32
    %98 = vector.broadcast %cst_24 : f32 to vector<8x32xf32>
    %99 = arith.mulf %98, %97 : vector<8x32xf32>
    %cst_25 = arith.constant 1.000000e+00 : f32
    %100 = vector.broadcast %cst_25 : f32 to vector<8x32xf32>
    %101 = arith.subf %99, %100 : vector<8x32xf32>
    %102 = vector.extract_strided_slice %94 {offsets = [0, 96], sizes = [8, 32], strides = [1, 1]} : vector<8x128xf32> to vector<8x32xf32>
    %103 = arith.mulf %96, %62 : vector<8x32xf32>
    %104 = arith.mulf %95, %101 : vector<8x32xf32>
    %105 = arith.addf %103, %104 : vector<8x32xf32>
    %106 = math.tanh %105 : vector<8x32xf32>
    %107 = arith.mulf %102, %106 : vector<8x32xf32>
    %108 = tpu.concatenate %107, %86 in 1 : vector<8x32xf32>, vector<8x32xf32> -> vector<8x64xf32>
    %cst_26 = arith.constant dense<0.000000e+00> : vector<8x128xf32>
    %109 = tpu.matmul %108, %3, %cst_26 {dimension_numbers = #tpu.dot_dimension_numbers<[1], [0], [0], [1], [0, 0, 1, 1], [], []>} : vector<8x64xf32>, vector<64x128xf32>, vector<8x128xf32> -> vector<8x128xf32>
    %110 = vector.broadcast %4 : vector<1x128xf32> to vector<8x128xf32>
    %111 = arith.addf %109, %110 : vector<8x128xf32>
    %112 = arith.negf %111 : vector<8x128xf32>
    %113 = math.exp %112 : vector<8x128xf32>
    %cst_27 = arith.constant 1.000000e+00 : f32
    %114 = vector.broadcast %cst_27 : f32 to vector<8x128xf32>
    %115 = arith.addf %114, %113 : vector<8x128xf32>
    %116 = arith.divf %114, %115 : vector<8x128xf32>
    %117 = vector.extract_strided_slice %116 {offsets = [0, 0], sizes = [8, 32], strides = [1, 1]} : vector<8x128xf32> to vector<8x32xf32>
    %118 = vector.extract_strided_slice %116 {offsets = [0, 32], sizes = [8, 32], strides = [1, 1]} : vector<8x128xf32> to vector<8x32xf32>
    %119 = vector.extract_strided_slice %116 {offsets = [0, 64], sizes = [8, 32], strides = [1, 1]} : vector<8x128xf32> to vector<8x32xf32>
    %cst_28 = arith.constant 2.000000e+00 : f32
    %120 = vector.broadcast %cst_28 : f32 to vector<8x32xf32>
    %121 = arith.mulf %120, %119 : vector<8x32xf32>
    %cst_29 = arith.constant 1.000000e+00 : f32
    %122 = vector.broadcast %cst_29 : f32 to vector<8x32xf32>
    %123 = arith.subf %121, %122 : vector<8x32xf32>
    %124 = vector.extract_strided_slice %116 {offsets = [0, 96], sizes = [8, 32], strides = [1, 1]} : vector<8x128xf32> to vector<8x32xf32>
    %125 = arith.mulf %118, %84 : vector<8x32xf32>
    %126 = arith.mulf %117, %123 : vector<8x32xf32>
    %127 = arith.addf %125, %126 : vector<8x32xf32>
    %128 = math.tanh %127 : vector<8x32xf32>
    %129 = arith.mulf %124, %128 : vector<8x32xf32>
    %130 = vector.extract_strided_slice %8 {offsets = [24, 0], sizes = [8, 128], strides = [1, 1]} : vector<64x128xf32> to vector<8x128xf32>
    %cst_30 = arith.constant dense<0.000000e+00> : vector<8x128xf32>
    %131 = tpu.matmul %107, %1, %cst_30 {dimension_numbers = #tpu.dot_dimension_numbers<[1], [0], [0], [1], [0, 0, 1, 1], [], []>} : vector<8x32xf32>, vector<32x128xf32>, vector<8x128xf32> -> vector<8x128xf32>
    %132 = arith.addf %130, %131 : vector<8x128xf32>
    %133 = arith.negf %132 : vector<8x128xf32>
    %134 = math.exp %133 : vector<8x128xf32>
    %cst_31 = arith.constant 1.000000e+00 : f32
    %135 = vector.broadcast %cst_31 : f32 to vector<8x128xf32>
    %136 = arith.addf %135, %134 : vector<8x128xf32>
    %137 = arith.divf %135, %136 : vector<8x128xf32>
    %138 = vector.extract_strided_slice %137 {offsets = [0, 0], sizes = [8, 32], strides = [1, 1]} : vector<8x128xf32> to vector<8x32xf32>
    %139 = vector.extract_strided_slice %137 {offsets = [0, 32], sizes = [8, 32], strides = [1, 1]} : vector<8x128xf32> to vector<8x32xf32>
    %140 = vector.extract_strided_slice %137 {offsets = [0, 64], sizes = [8, 32], strides = [1, 1]} : vector<8x128xf32> to vector<8x32xf32>
    %cst_32 = arith.constant 2.000000e+00 : f32
    %141 = vector.broadcast %cst_32 : f32 to vector<8x32xf32>
    %142 = arith.mulf %141, %140 : vector<8x32xf32>
    %cst_33 = arith.constant 1.000000e+00 : f32
    %143 = vector.broadcast %cst_33 : f32 to vector<8x32xf32>
    %144 = arith.subf %142, %143 : vector<8x32xf32>
    %145 = vector.extract_strided_slice %137 {offsets = [0, 96], sizes = [8, 32], strides = [1, 1]} : vector<8x128xf32> to vector<8x32xf32>
    %146 = arith.mulf %139, %105 : vector<8x32xf32>
    %147 = arith.mulf %138, %144 : vector<8x32xf32>
    %148 = arith.addf %146, %147 : vector<8x32xf32>
    %149 = math.tanh %148 : vector<8x32xf32>
    %150 = arith.mulf %145, %149 : vector<8x32xf32>
    %151 = tpu.concatenate %150, %129 in 1 : vector<8x32xf32>, vector<8x32xf32> -> vector<8x64xf32>
    %cst_34 = arith.constant dense<0.000000e+00> : vector<8x128xf32>
    %152 = tpu.matmul %151, %3, %cst_34 {dimension_numbers = #tpu.dot_dimension_numbers<[1], [0], [0], [1], [0, 0, 1, 1], [], []>} : vector<8x64xf32>, vector<64x128xf32>, vector<8x128xf32> -> vector<8x128xf32>
    %153 = vector.broadcast %4 : vector<1x128xf32> to vector<8x128xf32>
    %154 = arith.addf %152, %153 : vector<8x128xf32>
    %155 = arith.negf %154 : vector<8x128xf32>
    %156 = math.exp %155 : vector<8x128xf32>
    %cst_35 = arith.constant 1.000000e+00 : f32
    %157 = vector.broadcast %cst_35 : f32 to vector<8x128xf32>
    %158 = arith.addf %157, %156 : vector<8x128xf32>
    %159 = arith.divf %157, %158 : vector<8x128xf32>
    %160 = vector.extract_strided_slice %159 {offsets = [0, 0], sizes = [8, 32], strides = [1, 1]} : vector<8x128xf32> to vector<8x32xf32>
    %161 = vector.extract_strided_slice %159 {offsets = [0, 32], sizes = [8, 32], strides = [1, 1]} : vector<8x128xf32> to vector<8x32xf32>
    %162 = vector.extract_strided_slice %159 {offsets = [0, 64], sizes = [8, 32], strides = [1, 1]} : vector<8x128xf32> to vector<8x32xf32>
    %cst_36 = arith.constant 2.000000e+00 : f32
    %163 = vector.broadcast %cst_36 : f32 to vector<8x32xf32>
    %164 = arith.mulf %163, %162 : vector<8x32xf32>
    %cst_37 = arith.constant 1.000000e+00 : f32
    %165 = vector.broadcast %cst_37 : f32 to vector<8x32xf32>
    %166 = arith.subf %164, %165 : vector<8x32xf32>
    %167 = vector.extract_strided_slice %159 {offsets = [0, 96], sizes = [8, 32], strides = [1, 1]} : vector<8x128xf32> to vector<8x32xf32>
    %168 = arith.mulf %161, %127 : vector<8x32xf32>
    %169 = arith.mulf %160, %166 : vector<8x32xf32>
    %170 = arith.addf %168, %169 : vector<8x32xf32>
    %171 = math.tanh %170 : vector<8x32xf32>
    %172 = arith.mulf %167, %171 : vector<8x32xf32>
    %173 = vector.extract_strided_slice %8 {offsets = [32, 0], sizes = [8, 128], strides = [1, 1]} : vector<64x128xf32> to vector<8x128xf32>
    %cst_38 = arith.constant dense<0.000000e+00> : vector<8x128xf32>
    %174 = tpu.matmul %150, %1, %cst_38 {dimension_numbers = #tpu.dot_dimension_numbers<[1], [0], [0], [1], [0, 0, 1, 1], [], []>} : vector<8x32xf32>, vector<32x128xf32>, vector<8x128xf32> -> vector<8x128xf32>
    %175 = arith.addf %173, %174 : vector<8x128xf32>
    %176 = arith.negf %175 : vector<8x128xf32>
    %177 = math.exp %176 : vector<8x128xf32>
    %cst_39 = arith.constant 1.000000e+00 : f32
    %178 = vector.broadcast %cst_39 : f32 to vector<8x128xf32>
    %179 = arith.addf %178, %177 : vector<8x128xf32>
    %180 = arith.divf %178, %179 : vector<8x128xf32>
    %181 = vector.extract_strided_slice %180 {offsets = [0, 0], sizes = [8, 32], strides = [1, 1]} : vector<8x128xf32> to vector<8x32xf32>
    %182 = vector.extract_strided_slice %180 {offsets = [0, 32], sizes = [8, 32], strides = [1, 1]} : vector<8x128xf32> to vector<8x32xf32>
    %183 = vector.extract_strided_slice %180 {offsets = [0, 64], sizes = [8, 32], strides = [1, 1]} : vector<8x128xf32> to vector<8x32xf32>
    %cst_40 = arith.constant 2.000000e+00 : f32
    %184 = vector.broadcast %cst_40 : f32 to vector<8x32xf32>
    %185 = arith.mulf %184, %183 : vector<8x32xf32>
    %cst_41 = arith.constant 1.000000e+00 : f32
    %186 = vector.broadcast %cst_41 : f32 to vector<8x32xf32>
    %187 = arith.subf %185, %186 : vector<8x32xf32>
    %188 = vector.extract_strided_slice %180 {offsets = [0, 96], sizes = [8, 32], strides = [1, 1]} : vector<8x128xf32> to vector<8x32xf32>
    %189 = arith.mulf %182, %148 : vector<8x32xf32>
    %190 = arith.mulf %181, %187 : vector<8x32xf32>
    %191 = arith.addf %189, %190 : vector<8x32xf32>
    %192 = math.tanh %191 : vector<8x32xf32>
    %193 = arith.mulf %188, %192 : vector<8x32xf32>
    %194 = tpu.concatenate %193, %172 in 1 : vector<8x32xf32>, vector<8x32xf32> -> vector<8x64xf32>
    %cst_42 = arith.constant dense<0.000000e+00> : vector<8x128xf32>
    %195 = tpu.matmul %194, %3, %cst_42 {dimension_numbers = #tpu.dot_dimension_numbers<[1], [0], [0], [1], [0, 0, 1, 1], [], []>} : vector<8x64xf32>, vector<64x128xf32>, vector<8x128xf32> -> vector<8x128xf32>
    %196 = vector.broadcast %4 : vector<1x128xf32> to vector<8x128xf32>
    %197 = arith.addf %195, %196 : vector<8x128xf32>
    %198 = arith.negf %197 : vector<8x128xf32>
    %199 = math.exp %198 : vector<8x128xf32>
    %cst_43 = arith.constant 1.000000e+00 : f32
    %200 = vector.broadcast %cst_43 : f32 to vector<8x128xf32>
    %201 = arith.addf %200, %199 : vector<8x128xf32>
    %202 = arith.divf %200, %201 : vector<8x128xf32>
    %203 = vector.extract_strided_slice %202 {offsets = [0, 0], sizes = [8, 32], strides = [1, 1]} : vector<8x128xf32> to vector<8x32xf32>
    %204 = vector.extract_strided_slice %202 {offsets = [0, 32], sizes = [8, 32], strides = [1, 1]} : vector<8x128xf32> to vector<8x32xf32>
    %205 = vector.extract_strided_slice %202 {offsets = [0, 64], sizes = [8, 32], strides = [1, 1]} : vector<8x128xf32> to vector<8x32xf32>
    %cst_44 = arith.constant 2.000000e+00 : f32
    %206 = vector.broadcast %cst_44 : f32 to vector<8x32xf32>
    %207 = arith.mulf %206, %205 : vector<8x32xf32>
    %cst_45 = arith.constant 1.000000e+00 : f32
    %208 = vector.broadcast %cst_45 : f32 to vector<8x32xf32>
    %209 = arith.subf %207, %208 : vector<8x32xf32>
    %210 = vector.extract_strided_slice %202 {offsets = [0, 96], sizes = [8, 32], strides = [1, 1]} : vector<8x128xf32> to vector<8x32xf32>
    %211 = arith.mulf %204, %170 : vector<8x32xf32>
    %212 = arith.mulf %203, %209 : vector<8x32xf32>
    %213 = arith.addf %211, %212 : vector<8x32xf32>
    %214 = math.tanh %213 : vector<8x32xf32>
    %215 = arith.mulf %210, %214 : vector<8x32xf32>
    %216 = vector.extract_strided_slice %8 {offsets = [40, 0], sizes = [8, 128], strides = [1, 1]} : vector<64x128xf32> to vector<8x128xf32>
    %cst_46 = arith.constant dense<0.000000e+00> : vector<8x128xf32>
    %217 = tpu.matmul %193, %1, %cst_46 {dimension_numbers = #tpu.dot_dimension_numbers<[1], [0], [0], [1], [0, 0, 1, 1], [], []>} : vector<8x32xf32>, vector<32x128xf32>, vector<8x128xf32> -> vector<8x128xf32>
    %218 = arith.addf %216, %217 : vector<8x128xf32>
    %219 = arith.negf %218 : vector<8x128xf32>
    %220 = math.exp %219 : vector<8x128xf32>
    %cst_47 = arith.constant 1.000000e+00 : f32
    %221 = vector.broadcast %cst_47 : f32 to vector<8x128xf32>
    %222 = arith.addf %221, %220 : vector<8x128xf32>
    %223 = arith.divf %221, %222 : vector<8x128xf32>
    %224 = vector.extract_strided_slice %223 {offsets = [0, 0], sizes = [8, 32], strides = [1, 1]} : vector<8x128xf32> to vector<8x32xf32>
    %225 = vector.extract_strided_slice %223 {offsets = [0, 32], sizes = [8, 32], strides = [1, 1]} : vector<8x128xf32> to vector<8x32xf32>
    %226 = vector.extract_strided_slice %223 {offsets = [0, 64], sizes = [8, 32], strides = [1, 1]} : vector<8x128xf32> to vector<8x32xf32>
    %cst_48 = arith.constant 2.000000e+00 : f32
    %227 = vector.broadcast %cst_48 : f32 to vector<8x32xf32>
    %228 = arith.mulf %227, %226 : vector<8x32xf32>
    %cst_49 = arith.constant 1.000000e+00 : f32
    %229 = vector.broadcast %cst_49 : f32 to vector<8x32xf32>
    %230 = arith.subf %228, %229 : vector<8x32xf32>
    %231 = vector.extract_strided_slice %223 {offsets = [0, 96], sizes = [8, 32], strides = [1, 1]} : vector<8x128xf32> to vector<8x32xf32>
    %232 = arith.mulf %225, %191 : vector<8x32xf32>
    %233 = arith.mulf %224, %230 : vector<8x32xf32>
    %234 = arith.addf %232, %233 : vector<8x32xf32>
    %235 = math.tanh %234 : vector<8x32xf32>
    %236 = arith.mulf %231, %235 : vector<8x32xf32>
    %237 = tpu.concatenate %236, %215 in 1 : vector<8x32xf32>, vector<8x32xf32> -> vector<8x64xf32>
    %cst_50 = arith.constant dense<0.000000e+00> : vector<8x128xf32>
    %238 = tpu.matmul %237, %3, %cst_50 {dimension_numbers = #tpu.dot_dimension_numbers<[1], [0], [0], [1], [0, 0, 1, 1], [], []>} : vector<8x64xf32>, vector<64x128xf32>, vector<8x128xf32> -> vector<8x128xf32>
    %239 = vector.broadcast %4 : vector<1x128xf32> to vector<8x128xf32>
    %240 = arith.addf %238, %239 : vector<8x128xf32>
    %241 = arith.negf %240 : vector<8x128xf32>
    %242 = math.exp %241 : vector<8x128xf32>
    %cst_51 = arith.constant 1.000000e+00 : f32
    %243 = vector.broadcast %cst_51 : f32 to vector<8x128xf32>
    %244 = arith.addf %243, %242 : vector<8x128xf32>
    %245 = arith.divf %243, %244 : vector<8x128xf32>
    %246 = vector.extract_strided_slice %245 {offsets = [0, 0], sizes = [8, 32], strides = [1, 1]} : vector<8x128xf32> to vector<8x32xf32>
    %247 = vector.extract_strided_slice %245 {offsets = [0, 32], sizes = [8, 32], strides = [1, 1]} : vector<8x128xf32> to vector<8x32xf32>
    %248 = vector.extract_strided_slice %245 {offsets = [0, 64], sizes = [8, 32], strides = [1, 1]} : vector<8x128xf32> to vector<8x32xf32>
    %cst_52 = arith.constant 2.000000e+00 : f32
    %249 = vector.broadcast %cst_52 : f32 to vector<8x32xf32>
    %250 = arith.mulf %249, %248 : vector<8x32xf32>
    %cst_53 = arith.constant 1.000000e+00 : f32
    %251 = vector.broadcast %cst_53 : f32 to vector<8x32xf32>
    %252 = arith.subf %250, %251 : vector<8x32xf32>
    %253 = vector.extract_strided_slice %245 {offsets = [0, 96], sizes = [8, 32], strides = [1, 1]} : vector<8x128xf32> to vector<8x32xf32>
    %254 = arith.mulf %247, %213 : vector<8x32xf32>
    %255 = arith.mulf %246, %252 : vector<8x32xf32>
    %256 = arith.addf %254, %255 : vector<8x32xf32>
    %257 = math.tanh %256 : vector<8x32xf32>
    %258 = arith.mulf %253, %257 : vector<8x32xf32>
    %259 = vector.extract_strided_slice %8 {offsets = [48, 0], sizes = [8, 128], strides = [1, 1]} : vector<64x128xf32> to vector<8x128xf32>
    %cst_54 = arith.constant dense<0.000000e+00> : vector<8x128xf32>
    %260 = tpu.matmul %236, %1, %cst_54 {dimension_numbers = #tpu.dot_dimension_numbers<[1], [0], [0], [1], [0, 0, 1, 1], [], []>} : vector<8x32xf32>, vector<32x128xf32>, vector<8x128xf32> -> vector<8x128xf32>
    %261 = arith.addf %259, %260 : vector<8x128xf32>
    %262 = arith.negf %261 : vector<8x128xf32>
    %263 = math.exp %262 : vector<8x128xf32>
    %cst_55 = arith.constant 1.000000e+00 : f32
    %264 = vector.broadcast %cst_55 : f32 to vector<8x128xf32>
    %265 = arith.addf %264, %263 : vector<8x128xf32>
    %266 = arith.divf %264, %265 : vector<8x128xf32>
    %267 = vector.extract_strided_slice %266 {offsets = [0, 0], sizes = [8, 32], strides = [1, 1]} : vector<8x128xf32> to vector<8x32xf32>
    %268 = vector.extract_strided_slice %266 {offsets = [0, 32], sizes = [8, 32], strides = [1, 1]} : vector<8x128xf32> to vector<8x32xf32>
    %269 = vector.extract_strided_slice %266 {offsets = [0, 64], sizes = [8, 32], strides = [1, 1]} : vector<8x128xf32> to vector<8x32xf32>
    %cst_56 = arith.constant 2.000000e+00 : f32
    %270 = vector.broadcast %cst_56 : f32 to vector<8x32xf32>
    %271 = arith.mulf %270, %269 : vector<8x32xf32>
    %cst_57 = arith.constant 1.000000e+00 : f32
    %272 = vector.broadcast %cst_57 : f32 to vector<8x32xf32>
    %273 = arith.subf %271, %272 : vector<8x32xf32>
    %274 = vector.extract_strided_slice %266 {offsets = [0, 96], sizes = [8, 32], strides = [1, 1]} : vector<8x128xf32> to vector<8x32xf32>
    %275 = arith.mulf %268, %234 : vector<8x32xf32>
    %276 = arith.mulf %267, %273 : vector<8x32xf32>
    %277 = arith.addf %275, %276 : vector<8x32xf32>
    %278 = math.tanh %277 : vector<8x32xf32>
    %279 = arith.mulf %274, %278 : vector<8x32xf32>
    %280 = tpu.concatenate %279, %258 in 1 : vector<8x32xf32>, vector<8x32xf32> -> vector<8x64xf32>
    %cst_58 = arith.constant dense<0.000000e+00> : vector<8x128xf32>
    %281 = tpu.matmul %280, %3, %cst_58 {dimension_numbers = #tpu.dot_dimension_numbers<[1], [0], [0], [1], [0, 0, 1, 1], [], []>} : vector<8x64xf32>, vector<64x128xf32>, vector<8x128xf32> -> vector<8x128xf32>
    %282 = vector.broadcast %4 : vector<1x128xf32> to vector<8x128xf32>
    %283 = arith.addf %281, %282 : vector<8x128xf32>
    %284 = arith.negf %283 : vector<8x128xf32>
    %285 = math.exp %284 : vector<8x128xf32>
    %cst_59 = arith.constant 1.000000e+00 : f32
    %286 = vector.broadcast %cst_59 : f32 to vector<8x128xf32>
    %287 = arith.addf %286, %285 : vector<8x128xf32>
    %288 = arith.divf %286, %287 : vector<8x128xf32>
    %289 = vector.extract_strided_slice %288 {offsets = [0, 0], sizes = [8, 32], strides = [1, 1]} : vector<8x128xf32> to vector<8x32xf32>
    %290 = vector.extract_strided_slice %288 {offsets = [0, 32], sizes = [8, 32], strides = [1, 1]} : vector<8x128xf32> to vector<8x32xf32>
    %291 = vector.extract_strided_slice %288 {offsets = [0, 64], sizes = [8, 32], strides = [1, 1]} : vector<8x128xf32> to vector<8x32xf32>
    %cst_60 = arith.constant 2.000000e+00 : f32
    %292 = vector.broadcast %cst_60 : f32 to vector<8x32xf32>
    %293 = arith.mulf %292, %291 : vector<8x32xf32>
    %cst_61 = arith.constant 1.000000e+00 : f32
    %294 = vector.broadcast %cst_61 : f32 to vector<8x32xf32>
    %295 = arith.subf %293, %294 : vector<8x32xf32>
    %296 = vector.extract_strided_slice %288 {offsets = [0, 96], sizes = [8, 32], strides = [1, 1]} : vector<8x128xf32> to vector<8x32xf32>
    %297 = arith.mulf %290, %256 : vector<8x32xf32>
    %298 = arith.mulf %289, %295 : vector<8x32xf32>
    %299 = arith.addf %297, %298 : vector<8x32xf32>
    %300 = math.tanh %299 : vector<8x32xf32>
    %301 = arith.mulf %296, %300 : vector<8x32xf32>
    %302 = vector.extract_strided_slice %8 {offsets = [56, 0], sizes = [8, 128], strides = [1, 1]} : vector<64x128xf32> to vector<8x128xf32>
    %cst_62 = arith.constant dense<0.000000e+00> : vector<8x128xf32>
    %303 = tpu.matmul %279, %1, %cst_62 {dimension_numbers = #tpu.dot_dimension_numbers<[1], [0], [0], [1], [0, 0, 1, 1], [], []>} : vector<8x32xf32>, vector<32x128xf32>, vector<8x128xf32> -> vector<8x128xf32>
    %304 = arith.addf %302, %303 : vector<8x128xf32>
    %305 = arith.negf %304 : vector<8x128xf32>
    %306 = math.exp %305 : vector<8x128xf32>
    %cst_63 = arith.constant 1.000000e+00 : f32
    %307 = vector.broadcast %cst_63 : f32 to vector<8x128xf32>
    %308 = arith.addf %307, %306 : vector<8x128xf32>
    %309 = arith.divf %307, %308 : vector<8x128xf32>
    %310 = vector.extract_strided_slice %309 {offsets = [0, 0], sizes = [8, 32], strides = [1, 1]} : vector<8x128xf32> to vector<8x32xf32>
    %311 = vector.extract_strided_slice %309 {offsets = [0, 32], sizes = [8, 32], strides = [1, 1]} : vector<8x128xf32> to vector<8x32xf32>
    %312 = vector.extract_strided_slice %309 {offsets = [0, 64], sizes = [8, 32], strides = [1, 1]} : vector<8x128xf32> to vector<8x32xf32>
    %cst_64 = arith.constant 2.000000e+00 : f32
    %313 = vector.broadcast %cst_64 : f32 to vector<8x32xf32>
    %314 = arith.mulf %313, %312 : vector<8x32xf32>
    %cst_65 = arith.constant 1.000000e+00 : f32
    %315 = vector.broadcast %cst_65 : f32 to vector<8x32xf32>
    %316 = arith.subf %314, %315 : vector<8x32xf32>
    %317 = vector.extract_strided_slice %309 {offsets = [0, 96], sizes = [8, 32], strides = [1, 1]} : vector<8x128xf32> to vector<8x32xf32>
    %318 = arith.mulf %311, %277 : vector<8x32xf32>
    %319 = arith.mulf %310, %316 : vector<8x32xf32>
    %320 = arith.addf %318, %319 : vector<8x32xf32>
    %321 = math.tanh %320 : vector<8x32xf32>
    %322 = arith.mulf %317, %321 : vector<8x32xf32>
    %323 = tpu.concatenate %322, %301 in 1 : vector<8x32xf32>, vector<8x32xf32> -> vector<8x64xf32>
    %cst_66 = arith.constant dense<0.000000e+00> : vector<8x128xf32>
    %324 = tpu.matmul %323, %3, %cst_66 {dimension_numbers = #tpu.dot_dimension_numbers<[1], [0], [0], [1], [0, 0, 1, 1], [], []>} : vector<8x64xf32>, vector<64x128xf32>, vector<8x128xf32> -> vector<8x128xf32>
    %325 = vector.broadcast %4 : vector<1x128xf32> to vector<8x128xf32>
    %326 = arith.addf %324, %325 : vector<8x128xf32>
    %327 = arith.negf %326 : vector<8x128xf32>
    %328 = math.exp %327 : vector<8x128xf32>
    %cst_67 = arith.constant 1.000000e+00 : f32
    %329 = vector.broadcast %cst_67 : f32 to vector<8x128xf32>
    %330 = arith.addf %329, %328 : vector<8x128xf32>
    %331 = arith.divf %329, %330 : vector<8x128xf32>
    %332 = vector.extract_strided_slice %331 {offsets = [0, 0], sizes = [8, 32], strides = [1, 1]} : vector<8x128xf32> to vector<8x32xf32>
    %333 = vector.extract_strided_slice %331 {offsets = [0, 32], sizes = [8, 32], strides = [1, 1]} : vector<8x128xf32> to vector<8x32xf32>
    %334 = vector.extract_strided_slice %331 {offsets = [0, 64], sizes = [8, 32], strides = [1, 1]} : vector<8x128xf32> to vector<8x32xf32>
    %cst_68 = arith.constant 2.000000e+00 : f32
    %335 = vector.broadcast %cst_68 : f32 to vector<8x32xf32>
    %336 = arith.mulf %335, %334 : vector<8x32xf32>
    %cst_69 = arith.constant 1.000000e+00 : f32
    %337 = vector.broadcast %cst_69 : f32 to vector<8x32xf32>
    %338 = arith.subf %336, %337 : vector<8x32xf32>
    %339 = vector.extract_strided_slice %331 {offsets = [0, 96], sizes = [8, 32], strides = [1, 1]} : vector<8x128xf32> to vector<8x32xf32>
    %340 = arith.mulf %333, %299 : vector<8x32xf32>
    %341 = arith.mulf %332, %338 : vector<8x32xf32>
    %342 = arith.addf %340, %341 : vector<8x32xf32>
    %343 = math.tanh %342 : vector<8x32xf32>
    %344 = arith.mulf %339, %343 : vector<8x32xf32>
    %345 = arith.negf %344 : vector<8x32xf32>
    %346 = math.exp %345 : vector<8x32xf32>
    %cst_70 = arith.constant 1.000000e+00 : f32
    %347 = vector.broadcast %cst_70 : f32 to vector<8x32xf32>
    %348 = arith.addf %347, %346 : vector<8x32xf32>
    %349 = arith.divf %347, %348 : vector<8x32xf32>
    %350 = arith.mulf %344, %349 : vector<8x32xf32>
    %cst_71 = arith.constant -2.200000e+00 : f32
    %351 = vector.broadcast %cst_71 : f32 to vector<8x32xf32>
    %352 = arith.cmpf oge, %344, %351 : vector<8x32xf32>
    %cst_72 = arith.constant -1.800000e+00 : f32
    %353 = vector.broadcast %cst_72 : f32 to vector<8x32xf32>
    %354 = arith.cmpf olt, %344, %353 : vector<8x32xf32>
    %355 = arith.andi %352, %354 : vector<8x32xi1>
    %356 = arith.extui %355 : vector<8x32xi1> to vector<8x32xi32>
    %357 = arith.sitofp %356 : vector<8x32xi32> to vector<8x32xf32>
    %cst_73 = arith.constant -1.800000e+00 : f32
    %358 = vector.broadcast %cst_73 : f32 to vector<8x32xf32>
    %359 = arith.cmpf oge, %344, %358 : vector<8x32xf32>
    %cst_74 = arith.constant -1.400000e+00 : f32
    %360 = vector.broadcast %cst_74 : f32 to vector<8x32xf32>
    %361 = arith.cmpf olt, %344, %360 : vector<8x32xf32>
    %362 = arith.andi %359, %361 : vector<8x32xi1>
    %363 = arith.extui %362 : vector<8x32xi1> to vector<8x32xi32>
    %364 = arith.sitofp %363 : vector<8x32xi32> to vector<8x32xf32>
    %cst_75 = arith.constant -1.400000e+00 : f32
    %365 = vector.broadcast %cst_75 : f32 to vector<8x32xf32>
    %366 = arith.cmpf oge, %344, %365 : vector<8x32xf32>
    %cst_76 = arith.constant -1.000000e+00 : f32
    %367 = vector.broadcast %cst_76 : f32 to vector<8x32xf32>
    %368 = arith.cmpf olt, %344, %367 : vector<8x32xf32>
    %369 = arith.andi %366, %368 : vector<8x32xi1>
    %370 = arith.extui %369 : vector<8x32xi1> to vector<8x32xi32>
    %371 = arith.sitofp %370 : vector<8x32xi32> to vector<8x32xf32>
    %cst_77 = arith.constant -1.000000e+00 : f32
    %372 = vector.broadcast %cst_77 : f32 to vector<8x32xf32>
    %373 = arith.cmpf oge, %344, %372 : vector<8x32xf32>
    %cst_78 = arith.constant -6.000000e-01 : f32
    %374 = vector.broadcast %cst_78 : f32 to vector<8x32xf32>
    %375 = arith.cmpf olt, %344, %374 : vector<8x32xf32>
    %376 = arith.andi %373, %375 : vector<8x32xi1>
    %377 = arith.extui %376 : vector<8x32xi1> to vector<8x32xi32>
    %378 = arith.sitofp %377 : vector<8x32xi32> to vector<8x32xf32>
    %cst_79 = arith.constant -6.000000e-01 : f32
    %379 = vector.broadcast %cst_79 : f32 to vector<8x32xf32>
    %380 = arith.cmpf oge, %344, %379 : vector<8x32xf32>
    %cst_80 = arith.constant -0.199999988 : f32
    %381 = vector.broadcast %cst_80 : f32 to vector<8x32xf32>
    %382 = arith.cmpf olt, %344, %381 : vector<8x32xf32>
    %383 = arith.andi %380, %382 : vector<8x32xi1>
    %384 = arith.extui %383 : vector<8x32xi1> to vector<8x32xi32>
    %385 = arith.sitofp %384 : vector<8x32xi32> to vector<8x32xf32>
    %cst_81 = arith.constant -0.199999988 : f32
    %386 = vector.broadcast %cst_81 : f32 to vector<8x32xf32>
    %387 = arith.cmpf oge, %344, %386 : vector<8x32xf32>
    %cst_82 = arith.constant 0.200000048 : f32
    %388 = vector.broadcast %cst_82 : f32 to vector<8x32xf32>
    %389 = arith.cmpf olt, %344, %388 : vector<8x32xf32>
    %390 = arith.andi %387, %389 : vector<8x32xi1>
    %391 = arith.extui %390 : vector<8x32xi1> to vector<8x32xi32>
    %392 = arith.sitofp %391 : vector<8x32xi32> to vector<8x32xf32>
    %cst_83 = arith.constant 0.200000048 : f32
    %393 = vector.broadcast %cst_83 : f32 to vector<8x32xf32>
    %394 = arith.cmpf oge, %344, %393 : vector<8x32xf32>
    %cst_84 = arith.constant 6.000000e-01 : f32
    %395 = vector.broadcast %cst_84 : f32 to vector<8x32xf32>
    %396 = arith.cmpf olt, %344, %395 : vector<8x32xf32>
    %397 = arith.andi %394, %396 : vector<8x32xi1>
    %398 = arith.extui %397 : vector<8x32xi1> to vector<8x32xi32>
    %399 = arith.sitofp %398 : vector<8x32xi32> to vector<8x32xf32>
    %cst_85 = arith.constant 6.000000e-01 : f32
    %400 = vector.broadcast %cst_85 : f32 to vector<8x32xf32>
    %401 = arith.cmpf oge, %344, %400 : vector<8x32xf32>
    %cst_86 = arith.constant 1.000000e+00 : f32
    %402 = vector.broadcast %cst_86 : f32 to vector<8x32xf32>
    %403 = arith.cmpf olt, %344, %402 : vector<8x32xf32>
    %404 = arith.andi %401, %403 : vector<8x32xi1>
    %405 = arith.extui %404 : vector<8x32xi1> to vector<8x32xi32>
    %406 = arith.sitofp %405 : vector<8x32xi32> to vector<8x32xf32>
    %cst_87 = arith.constant 1.000000e+00 : f32
    %407 = vector.broadcast %cst_87 : f32 to vector<8x32xf32>
    %408 = arith.cmpf oge, %344, %407 : vector<8x32xf32>
    %cst_88 = arith.constant 1.4000001 : f32
    %409 = vector.broadcast %cst_88 : f32 to vector<8x32xf32>
    %410 = arith.cmpf olt, %344, %409 : vector<8x32xf32>
    %411 = arith.andi %408, %410 : vector<8x32xi1>
    %412 = arith.extui %411 : vector<8x32xi1> to vector<8x32xi32>
    %413 = arith.sitofp %412 : vector<8x32xi32> to vector<8x32xf32>
    %cst_89 = arith.constant 1.4000001 : f32
    %414 = vector.broadcast %cst_89 : f32 to vector<8x32xf32>
    %415 = arith.cmpf oge, %344, %414 : vector<8x32xf32>
    %cst_90 = arith.constant 1.800000e+00 : f32
    %416 = vector.broadcast %cst_90 : f32 to vector<8x32xf32>
    %417 = arith.cmpf olt, %344, %416 : vector<8x32xf32>
    %418 = arith.andi %415, %417 : vector<8x32xi1>
    %419 = arith.extui %418 : vector<8x32xi1> to vector<8x32xi32>
    %420 = arith.sitofp %419 : vector<8x32xi32> to vector<8x32xf32>
    %cst_91 = arith.constant 1.800000e+00 : f32
    %421 = vector.broadcast %cst_91 : f32 to vector<8x32xf32>
    %422 = arith.cmpf oge, %344, %421 : vector<8x32xf32>
    %cst_92 = arith.constant 2.200000e+00 : f32
    %423 = vector.broadcast %cst_92 : f32 to vector<8x32xf32>
    %424 = arith.cmpf olt, %344, %423 : vector<8x32xf32>
    %425 = arith.andi %422, %424 : vector<8x32xi1>
    %426 = arith.extui %425 : vector<8x32xi1> to vector<8x32xi32>
    %427 = arith.sitofp %426 : vector<8x32xi32> to vector<8x32xf32>
    %cst_93 = arith.constant -2.200000e+00 : f32
    %428 = vector.broadcast %cst_93 : f32 to vector<8x32xf32>
    %429 = arith.subf %344, %428 : vector<8x32xf32>
    %cst_94 = arith.constant 2.49999952 : f32
    %430 = vector.broadcast %cst_94 : f32 to vector<8x32xf32>
    %431 = arith.mulf %429, %430 : vector<8x32xf32>
    %432 = arith.mulf %431, %357 : vector<8x32xf32>
    %cst_95 = arith.constant -1.400000e+00 : f32
    %433 = vector.broadcast %cst_95 : f32 to vector<8x32xf32>
    %434 = arith.subf %433, %344 : vector<8x32xf32>
    %cst_96 = arith.constant 2.49999952 : f32
    %435 = vector.broadcast %cst_96 : f32 to vector<8x32xf32>
    %436 = arith.mulf %434, %435 : vector<8x32xf32>
    %437 = arith.mulf %436, %364 : vector<8x32xf32>
    %438 = arith.addf %432, %437 : vector<8x32xf32>
    %cst_97 = arith.constant -1.800000e+00 : f32
    %439 = vector.broadcast %cst_97 : f32 to vector<8x32xf32>
    %440 = arith.subf %344, %439 : vector<8x32xf32>
    %cst_98 = arith.constant 2.49999952 : f32
    %441 = vector.broadcast %cst_98 : f32 to vector<8x32xf32>
    %442 = arith.mulf %440, %441 : vector<8x32xf32>
    %443 = arith.mulf %442, %364 : vector<8x32xf32>
    %cst_99 = arith.constant -1.000000e+00 : f32
    %444 = vector.broadcast %cst_99 : f32 to vector<8x32xf32>
    %445 = arith.subf %444, %344 : vector<8x32xf32>
    %cst_100 = arith.constant 2.49999952 : f32
    %446 = vector.broadcast %cst_100 : f32 to vector<8x32xf32>
    %447 = arith.mulf %445, %446 : vector<8x32xf32>
    %448 = arith.mulf %447, %371 : vector<8x32xf32>
    %449 = arith.addf %443, %448 : vector<8x32xf32>
    %cst_101 = arith.constant -1.400000e+00 : f32
    %450 = vector.broadcast %cst_101 : f32 to vector<8x32xf32>
    %451 = arith.subf %344, %450 : vector<8x32xf32>
    %cst_102 = arith.constant 2.49999952 : f32
    %452 = vector.broadcast %cst_102 : f32 to vector<8x32xf32>
    %453 = arith.mulf %451, %452 : vector<8x32xf32>
    %454 = arith.mulf %453, %371 : vector<8x32xf32>
    %cst_103 = arith.constant -6.000000e-01 : f32
    %455 = vector.broadcast %cst_103 : f32 to vector<8x32xf32>
    %456 = arith.subf %455, %344 : vector<8x32xf32>
    %cst_104 = arith.constant 2.49999952 : f32
    %457 = vector.broadcast %cst_104 : f32 to vector<8x32xf32>
    %458 = arith.mulf %456, %457 : vector<8x32xf32>
    %459 = arith.mulf %458, %378 : vector<8x32xf32>
    %460 = arith.addf %454, %459 : vector<8x32xf32>
    %cst_105 = arith.constant -1.000000e+00 : f32
    %461 = vector.broadcast %cst_105 : f32 to vector<8x32xf32>
    %462 = arith.subf %344, %461 : vector<8x32xf32>
    %cst_106 = arith.constant 2.49999952 : f32
    %463 = vector.broadcast %cst_106 : f32 to vector<8x32xf32>
    %464 = arith.mulf %462, %463 : vector<8x32xf32>
    %465 = arith.mulf %464, %378 : vector<8x32xf32>
    %cst_107 = arith.constant -0.199999988 : f32
    %466 = vector.broadcast %cst_107 : f32 to vector<8x32xf32>
    %467 = arith.subf %466, %344 : vector<8x32xf32>
    %cst_108 = arith.constant 2.49999952 : f32
    %468 = vector.broadcast %cst_108 : f32 to vector<8x32xf32>
    %469 = arith.mulf %467, %468 : vector<8x32xf32>
    %470 = arith.mulf %469, %385 : vector<8x32xf32>
    %471 = arith.addf %465, %470 : vector<8x32xf32>
    %cst_109 = arith.constant -6.000000e-01 : f32
    %472 = vector.broadcast %cst_109 : f32 to vector<8x32xf32>
    %473 = arith.subf %344, %472 : vector<8x32xf32>
    %cst_110 = arith.constant 2.49999952 : f32
    %474 = vector.broadcast %cst_110 : f32 to vector<8x32xf32>
    %475 = arith.mulf %473, %474 : vector<8x32xf32>
    %476 = arith.mulf %475, %385 : vector<8x32xf32>
    %cst_111 = arith.constant 0.200000048 : f32
    %477 = vector.broadcast %cst_111 : f32 to vector<8x32xf32>
    %478 = arith.subf %477, %344 : vector<8x32xf32>
    %cst_112 = arith.constant 2.49999952 : f32
    %479 = vector.broadcast %cst_112 : f32 to vector<8x32xf32>
    %480 = arith.mulf %478, %479 : vector<8x32xf32>
    %481 = arith.mulf %480, %392 : vector<8x32xf32>
    %482 = arith.addf %476, %481 : vector<8x32xf32>
    %cst_113 = arith.constant -0.199999988 : f32
    %483 = vector.broadcast %cst_113 : f32 to vector<8x32xf32>
    %484 = arith.subf %344, %483 : vector<8x32xf32>
    %cst_114 = arith.constant 2.49999952 : f32
    %485 = vector.broadcast %cst_114 : f32 to vector<8x32xf32>
    %486 = arith.mulf %484, %485 : vector<8x32xf32>
    %487 = arith.mulf %486, %392 : vector<8x32xf32>
    %cst_115 = arith.constant 6.000000e-01 : f32
    %488 = vector.broadcast %cst_115 : f32 to vector<8x32xf32>
    %489 = arith.subf %488, %344 : vector<8x32xf32>
    %cst_116 = arith.constant 2.49999952 : f32
    %490 = vector.broadcast %cst_116 : f32 to vector<8x32xf32>
    %491 = arith.mulf %489, %490 : vector<8x32xf32>
    %492 = arith.mulf %491, %399 : vector<8x32xf32>
    %493 = arith.addf %487, %492 : vector<8x32xf32>
    %cst_117 = arith.constant 0.200000048 : f32
    %494 = vector.broadcast %cst_117 : f32 to vector<8x32xf32>
    %495 = arith.subf %344, %494 : vector<8x32xf32>
    %cst_118 = arith.constant 2.49999952 : f32
    %496 = vector.broadcast %cst_118 : f32 to vector<8x32xf32>
    %497 = arith.mulf %495, %496 : vector<8x32xf32>
    %498 = arith.mulf %497, %399 : vector<8x32xf32>
    %cst_119 = arith.constant 1.000000e+00 : f32
    %499 = vector.broadcast %cst_119 : f32 to vector<8x32xf32>
    %500 = arith.subf %499, %344 : vector<8x32xf32>
    %cst_120 = arith.constant 2.49999952 : f32
    %501 = vector.broadcast %cst_120 : f32 to vector<8x32xf32>
    %502 = arith.mulf %500, %501 : vector<8x32xf32>
    %503 = arith.mulf %502, %406 : vector<8x32xf32>
    %504 = arith.addf %498, %503 : vector<8x32xf32>
    %cst_121 = arith.constant 6.000000e-01 : f32
    %505 = vector.broadcast %cst_121 : f32 to vector<8x32xf32>
    %506 = arith.subf %344, %505 : vector<8x32xf32>
    %cst_122 = arith.constant 2.49999952 : f32
    %507 = vector.broadcast %cst_122 : f32 to vector<8x32xf32>
    %508 = arith.mulf %506, %507 : vector<8x32xf32>
    %509 = arith.mulf %508, %406 : vector<8x32xf32>
    %cst_123 = arith.constant 1.4000001 : f32
    %510 = vector.broadcast %cst_123 : f32 to vector<8x32xf32>
    %511 = arith.subf %510, %344 : vector<8x32xf32>
    %cst_124 = arith.constant 2.49999952 : f32
    %512 = vector.broadcast %cst_124 : f32 to vector<8x32xf32>
    %513 = arith.mulf %511, %512 : vector<8x32xf32>
    %514 = arith.mulf %513, %413 : vector<8x32xf32>
    %515 = arith.addf %509, %514 : vector<8x32xf32>
    %cst_125 = arith.constant 1.000000e+00 : f32
    %516 = vector.broadcast %cst_125 : f32 to vector<8x32xf32>
    %517 = arith.subf %344, %516 : vector<8x32xf32>
    %cst_126 = arith.constant 2.49999952 : f32
    %518 = vector.broadcast %cst_126 : f32 to vector<8x32xf32>
    %519 = arith.mulf %517, %518 : vector<8x32xf32>
    %520 = arith.mulf %519, %413 : vector<8x32xf32>
    %cst_127 = arith.constant 1.800000e+00 : f32
    %521 = vector.broadcast %cst_127 : f32 to vector<8x32xf32>
    %522 = arith.subf %521, %344 : vector<8x32xf32>
    %cst_128 = arith.constant 2.49999952 : f32
    %523 = vector.broadcast %cst_128 : f32 to vector<8x32xf32>
    %524 = arith.mulf %522, %523 : vector<8x32xf32>
    %525 = arith.mulf %524, %420 : vector<8x32xf32>
    %526 = arith.addf %520, %525 : vector<8x32xf32>
    %cst_129 = arith.constant 1.4000001 : f32
    %527 = vector.broadcast %cst_129 : f32 to vector<8x32xf32>
    %528 = arith.subf %344, %527 : vector<8x32xf32>
    %cst_130 = arith.constant 2.49999952 : f32
    %529 = vector.broadcast %cst_130 : f32 to vector<8x32xf32>
    %530 = arith.mulf %528, %529 : vector<8x32xf32>
    %531 = arith.mulf %530, %420 : vector<8x32xf32>
    %cst_131 = arith.constant 2.200000e+00 : f32
    %532 = vector.broadcast %cst_131 : f32 to vector<8x32xf32>
    %533 = arith.subf %532, %344 : vector<8x32xf32>
    %cst_132 = arith.constant 2.49999952 : f32
    %534 = vector.broadcast %cst_132 : f32 to vector<8x32xf32>
    %535 = arith.mulf %533, %534 : vector<8x32xf32>
    %536 = arith.mulf %535, %427 : vector<8x32xf32>
    %537 = arith.addf %531, %536 : vector<8x32xf32>
    %cst_133 = arith.constant -2.200000e+00 : f32
    %538 = vector.broadcast %cst_133 : f32 to vector<8x32xf32>
    %539 = arith.subf %344, %538 : vector<8x32xf32>
    %cst_134 = arith.constant 1.24999988 : f32
    %540 = vector.broadcast %cst_134 : f32 to vector<8x32xf32>
    %541 = arith.mulf %539, %540 : vector<8x32xf32>
    %542 = arith.mulf %541, %438 : vector<8x32xf32>
    %cst_135 = arith.constant -1.000000e+00 : f32
    %543 = vector.broadcast %cst_135 : f32 to vector<8x32xf32>
    %544 = arith.subf %543, %344 : vector<8x32xf32>
    %cst_136 = arith.constant 1.24999988 : f32
    %545 = vector.broadcast %cst_136 : f32 to vector<8x32xf32>
    %546 = arith.mulf %544, %545 : vector<8x32xf32>
    %547 = arith.mulf %546, %449 : vector<8x32xf32>
    %548 = arith.addf %542, %547 : vector<8x32xf32>
    %cst_137 = arith.constant -1.800000e+00 : f32
    %549 = vector.broadcast %cst_137 : f32 to vector<8x32xf32>
    %550 = arith.subf %344, %549 : vector<8x32xf32>
    %cst_138 = arith.constant 1.24999988 : f32
    %551 = vector.broadcast %cst_138 : f32 to vector<8x32xf32>
    %552 = arith.mulf %550, %551 : vector<8x32xf32>
    %553 = arith.mulf %552, %449 : vector<8x32xf32>
    %cst_139 = arith.constant -6.000000e-01 : f32
    %554 = vector.broadcast %cst_139 : f32 to vector<8x32xf32>
    %555 = arith.subf %554, %344 : vector<8x32xf32>
    %cst_140 = arith.constant 1.24999988 : f32
    %556 = vector.broadcast %cst_140 : f32 to vector<8x32xf32>
    %557 = arith.mulf %555, %556 : vector<8x32xf32>
    %558 = arith.mulf %557, %460 : vector<8x32xf32>
    %559 = arith.addf %553, %558 : vector<8x32xf32>
    %cst_141 = arith.constant -1.400000e+00 : f32
    %560 = vector.broadcast %cst_141 : f32 to vector<8x32xf32>
    %561 = arith.subf %344, %560 : vector<8x32xf32>
    %cst_142 = arith.constant 1.24999988 : f32
    %562 = vector.broadcast %cst_142 : f32 to vector<8x32xf32>
    %563 = arith.mulf %561, %562 : vector<8x32xf32>
    %564 = arith.mulf %563, %460 : vector<8x32xf32>
    %cst_143 = arith.constant -0.199999988 : f32
    %565 = vector.broadcast %cst_143 : f32 to vector<8x32xf32>
    %566 = arith.subf %565, %344 : vector<8x32xf32>
    %cst_144 = arith.constant 1.24999988 : f32
    %567 = vector.broadcast %cst_144 : f32 to vector<8x32xf32>
    %568 = arith.mulf %566, %567 : vector<8x32xf32>
    %569 = arith.mulf %568, %471 : vector<8x32xf32>
    %570 = arith.addf %564, %569 : vector<8x32xf32>
    %cst_145 = arith.constant -1.000000e+00 : f32
    %571 = vector.broadcast %cst_145 : f32 to vector<8x32xf32>
    %572 = arith.subf %344, %571 : vector<8x32xf32>
    %cst_146 = arith.constant 1.24999988 : f32
    %573 = vector.broadcast %cst_146 : f32 to vector<8x32xf32>
    %574 = arith.mulf %572, %573 : vector<8x32xf32>
    %575 = arith.mulf %574, %471 : vector<8x32xf32>
    %cst_147 = arith.constant 0.200000048 : f32
    %576 = vector.broadcast %cst_147 : f32 to vector<8x32xf32>
    %577 = arith.subf %576, %344 : vector<8x32xf32>
    %cst_148 = arith.constant 1.24999988 : f32
    %578 = vector.broadcast %cst_148 : f32 to vector<8x32xf32>
    %579 = arith.mulf %577, %578 : vector<8x32xf32>
    %580 = arith.mulf %579, %482 : vector<8x32xf32>
    %581 = arith.addf %575, %580 : vector<8x32xf32>
    %cst_149 = arith.constant -6.000000e-01 : f32
    %582 = vector.broadcast %cst_149 : f32 to vector<8x32xf32>
    %583 = arith.subf %344, %582 : vector<8x32xf32>
    %cst_150 = arith.constant 1.24999988 : f32
    %584 = vector.broadcast %cst_150 : f32 to vector<8x32xf32>
    %585 = arith.mulf %583, %584 : vector<8x32xf32>
    %586 = arith.mulf %585, %482 : vector<8x32xf32>
    %cst_151 = arith.constant 6.000000e-01 : f32
    %587 = vector.broadcast %cst_151 : f32 to vector<8x32xf32>
    %588 = arith.subf %587, %344 : vector<8x32xf32>
    %cst_152 = arith.constant 1.24999988 : f32
    %589 = vector.broadcast %cst_152 : f32 to vector<8x32xf32>
    %590 = arith.mulf %588, %589 : vector<8x32xf32>
    %591 = arith.mulf %590, %493 : vector<8x32xf32>
    %592 = arith.addf %586, %591 : vector<8x32xf32>
    %cst_153 = arith.constant -0.199999988 : f32
    %593 = vector.broadcast %cst_153 : f32 to vector<8x32xf32>
    %594 = arith.subf %344, %593 : vector<8x32xf32>
    %cst_154 = arith.constant 1.24999988 : f32
    %595 = vector.broadcast %cst_154 : f32 to vector<8x32xf32>
    %596 = arith.mulf %594, %595 : vector<8x32xf32>
    %597 = arith.mulf %596, %493 : vector<8x32xf32>
    %cst_155 = arith.constant 1.000000e+00 : f32
    %598 = vector.broadcast %cst_155 : f32 to vector<8x32xf32>
    %599 = arith.subf %598, %344 : vector<8x32xf32>
    %cst_156 = arith.constant 1.24999988 : f32
    %600 = vector.broadcast %cst_156 : f32 to vector<8x32xf32>
    %601 = arith.mulf %599, %600 : vector<8x32xf32>
    %602 = arith.mulf %601, %504 : vector<8x32xf32>
    %603 = arith.addf %597, %602 : vector<8x32xf32>
    %cst_157 = arith.constant 0.200000048 : f32
    %604 = vector.broadcast %cst_157 : f32 to vector<8x32xf32>
    %605 = arith.subf %344, %604 : vector<8x32xf32>
    %cst_158 = arith.constant 1.24999988 : f32
    %606 = vector.broadcast %cst_158 : f32 to vector<8x32xf32>
    %607 = arith.mulf %605, %606 : vector<8x32xf32>
    %608 = arith.mulf %607, %504 : vector<8x32xf32>
    %cst_159 = arith.constant 1.4000001 : f32
    %609 = vector.broadcast %cst_159 : f32 to vector<8x32xf32>
    %610 = arith.subf %609, %344 : vector<8x32xf32>
    %cst_160 = arith.constant 1.24999988 : f32
    %611 = vector.broadcast %cst_160 : f32 to vector<8x32xf32>
    %612 = arith.mulf %610, %611 : vector<8x32xf32>
    %613 = arith.mulf %612, %515 : vector<8x32xf32>
    %614 = arith.addf %608, %613 : vector<8x32xf32>
    %cst_161 = arith.constant 6.000000e-01 : f32
    %615 = vector.broadcast %cst_161 : f32 to vector<8x32xf32>
    %616 = arith.subf %344, %615 : vector<8x32xf32>
    %cst_162 = arith.constant 1.24999988 : f32
    %617 = vector.broadcast %cst_162 : f32 to vector<8x32xf32>
    %618 = arith.mulf %616, %617 : vector<8x32xf32>
    %619 = arith.mulf %618, %515 : vector<8x32xf32>
    %cst_163 = arith.constant 1.800000e+00 : f32
    %620 = vector.broadcast %cst_163 : f32 to vector<8x32xf32>
    %621 = arith.subf %620, %344 : vector<8x32xf32>
    %cst_164 = arith.constant 1.24999988 : f32
    %622 = vector.broadcast %cst_164 : f32 to vector<8x32xf32>
    %623 = arith.mulf %621, %622 : vector<8x32xf32>
    %624 = arith.mulf %623, %526 : vector<8x32xf32>
    %625 = arith.addf %619, %624 : vector<8x32xf32>
    %cst_165 = arith.constant 1.000000e+00 : f32
    %626 = vector.broadcast %cst_165 : f32 to vector<8x32xf32>
    %627 = arith.subf %344, %626 : vector<8x32xf32>
    %cst_166 = arith.constant 1.24999988 : f32
    %628 = vector.broadcast %cst_166 : f32 to vector<8x32xf32>
    %629 = arith.mulf %627, %628 : vector<8x32xf32>
    %630 = arith.mulf %629, %526 : vector<8x32xf32>
    %cst_167 = arith.constant 2.200000e+00 : f32
    %631 = vector.broadcast %cst_167 : f32 to vector<8x32xf32>
    %632 = arith.subf %631, %344 : vector<8x32xf32>
    %cst_168 = arith.constant 1.24999988 : f32
    %633 = vector.broadcast %cst_168 : f32 to vector<8x32xf32>
    %634 = arith.mulf %632, %633 : vector<8x32xf32>
    %635 = arith.mulf %634, %537 : vector<8x32xf32>
    %636 = arith.addf %630, %635 : vector<8x32xf32>
    %cst_169 = arith.constant -2.200000e+00 : f32
    %637 = vector.broadcast %cst_169 : f32 to vector<8x32xf32>
    %638 = arith.subf %344, %637 : vector<8x32xf32>
    %cst_170 = arith.constant 0.833333313 : f32
    %639 = vector.broadcast %cst_170 : f32 to vector<8x32xf32>
    %640 = arith.mulf %638, %639 : vector<8x32xf32>
    %641 = arith.mulf %640, %548 : vector<8x32xf32>
    %cst_171 = arith.constant -6.000000e-01 : f32
    %642 = vector.broadcast %cst_171 : f32 to vector<8x32xf32>
    %643 = arith.subf %642, %344 : vector<8x32xf32>
    %cst_172 = arith.constant 0.833333313 : f32
    %644 = vector.broadcast %cst_172 : f32 to vector<8x32xf32>
    %645 = arith.mulf %643, %644 : vector<8x32xf32>
    %646 = arith.mulf %645, %559 : vector<8x32xf32>
    %647 = arith.addf %641, %646 : vector<8x32xf32>
    %cst_173 = arith.constant -1.800000e+00 : f32
    %648 = vector.broadcast %cst_173 : f32 to vector<8x32xf32>
    %649 = arith.subf %344, %648 : vector<8x32xf32>
    %cst_174 = arith.constant 0.833333313 : f32
    %650 = vector.broadcast %cst_174 : f32 to vector<8x32xf32>
    %651 = arith.mulf %649, %650 : vector<8x32xf32>
    %652 = arith.mulf %651, %559 : vector<8x32xf32>
    %cst_175 = arith.constant -0.199999988 : f32
    %653 = vector.broadcast %cst_175 : f32 to vector<8x32xf32>
    %654 = arith.subf %653, %344 : vector<8x32xf32>
    %cst_176 = arith.constant 0.833333313 : f32
    %655 = vector.broadcast %cst_176 : f32 to vector<8x32xf32>
    %656 = arith.mulf %654, %655 : vector<8x32xf32>
    %657 = arith.mulf %656, %570 : vector<8x32xf32>
    %658 = arith.addf %652, %657 : vector<8x32xf32>
    %cst_177 = arith.constant -1.400000e+00 : f32
    %659 = vector.broadcast %cst_177 : f32 to vector<8x32xf32>
    %660 = arith.subf %344, %659 : vector<8x32xf32>
    %cst_178 = arith.constant 0.833333313 : f32
    %661 = vector.broadcast %cst_178 : f32 to vector<8x32xf32>
    %662 = arith.mulf %660, %661 : vector<8x32xf32>
    %663 = arith.mulf %662, %570 : vector<8x32xf32>
    %cst_179 = arith.constant 0.200000048 : f32
    %664 = vector.broadcast %cst_179 : f32 to vector<8x32xf32>
    %665 = arith.subf %664, %344 : vector<8x32xf32>
    %cst_180 = arith.constant 0.833333313 : f32
    %666 = vector.broadcast %cst_180 : f32 to vector<8x32xf32>
    %667 = arith.mulf %665, %666 : vector<8x32xf32>
    %668 = arith.mulf %667, %581 : vector<8x32xf32>
    %669 = arith.addf %663, %668 : vector<8x32xf32>
    %cst_181 = arith.constant -1.000000e+00 : f32
    %670 = vector.broadcast %cst_181 : f32 to vector<8x32xf32>
    %671 = arith.subf %344, %670 : vector<8x32xf32>
    %cst_182 = arith.constant 0.833333313 : f32
    %672 = vector.broadcast %cst_182 : f32 to vector<8x32xf32>
    %673 = arith.mulf %671, %672 : vector<8x32xf32>
    %674 = arith.mulf %673, %581 : vector<8x32xf32>
    %cst_183 = arith.constant 6.000000e-01 : f32
    %675 = vector.broadcast %cst_183 : f32 to vector<8x32xf32>
    %676 = arith.subf %675, %344 : vector<8x32xf32>
    %cst_184 = arith.constant 0.833333313 : f32
    %677 = vector.broadcast %cst_184 : f32 to vector<8x32xf32>
    %678 = arith.mulf %676, %677 : vector<8x32xf32>
    %679 = arith.mulf %678, %592 : vector<8x32xf32>
    %680 = arith.addf %674, %679 : vector<8x32xf32>
    %cst_185 = arith.constant -6.000000e-01 : f32
    %681 = vector.broadcast %cst_185 : f32 to vector<8x32xf32>
    %682 = arith.subf %344, %681 : vector<8x32xf32>
    %cst_186 = arith.constant 0.833333313 : f32
    %683 = vector.broadcast %cst_186 : f32 to vector<8x32xf32>
    %684 = arith.mulf %682, %683 : vector<8x32xf32>
    %685 = arith.mulf %684, %592 : vector<8x32xf32>
    %cst_187 = arith.constant 1.000000e+00 : f32
    %686 = vector.broadcast %cst_187 : f32 to vector<8x32xf32>
    %687 = arith.subf %686, %344 : vector<8x32xf32>
    %cst_188 = arith.constant 0.833333313 : f32
    %688 = vector.broadcast %cst_188 : f32 to vector<8x32xf32>
    %689 = arith.mulf %687, %688 : vector<8x32xf32>
    %690 = arith.mulf %689, %603 : vector<8x32xf32>
    %691 = arith.addf %685, %690 : vector<8x32xf32>
    %cst_189 = arith.constant -0.199999988 : f32
    %692 = vector.broadcast %cst_189 : f32 to vector<8x32xf32>
    %693 = arith.subf %344, %692 : vector<8x32xf32>
    %cst_190 = arith.constant 0.833333313 : f32
    %694 = vector.broadcast %cst_190 : f32 to vector<8x32xf32>
    %695 = arith.mulf %693, %694 : vector<8x32xf32>
    %696 = arith.mulf %695, %603 : vector<8x32xf32>
    %cst_191 = arith.constant 1.4000001 : f32
    %697 = vector.broadcast %cst_191 : f32 to vector<8x32xf32>
    %698 = arith.subf %697, %344 : vector<8x32xf32>
    %cst_192 = arith.constant 0.833333313 : f32
    %699 = vector.broadcast %cst_192 : f32 to vector<8x32xf32>
    %700 = arith.mulf %698, %699 : vector<8x32xf32>
    %701 = arith.mulf %700, %614 : vector<8x32xf32>
    %702 = arith.addf %696, %701 : vector<8x32xf32>
    %cst_193 = arith.constant 0.200000048 : f32
    %703 = vector.broadcast %cst_193 : f32 to vector<8x32xf32>
    %704 = arith.subf %344, %703 : vector<8x32xf32>
    %cst_194 = arith.constant 0.833333313 : f32
    %705 = vector.broadcast %cst_194 : f32 to vector<8x32xf32>
    %706 = arith.mulf %704, %705 : vector<8x32xf32>
    %707 = arith.mulf %706, %614 : vector<8x32xf32>
    %cst_195 = arith.constant 1.800000e+00 : f32
    %708 = vector.broadcast %cst_195 : f32 to vector<8x32xf32>
    %709 = arith.subf %708, %344 : vector<8x32xf32>
    %cst_196 = arith.constant 0.833333313 : f32
    %710 = vector.broadcast %cst_196 : f32 to vector<8x32xf32>
    %711 = arith.mulf %709, %710 : vector<8x32xf32>
    %712 = arith.mulf %711, %625 : vector<8x32xf32>
    %713 = arith.addf %707, %712 : vector<8x32xf32>
    %cst_197 = arith.constant 6.000000e-01 : f32
    %714 = vector.broadcast %cst_197 : f32 to vector<8x32xf32>
    %715 = arith.subf %344, %714 : vector<8x32xf32>
    %cst_198 = arith.constant 0.833333313 : f32
    %716 = vector.broadcast %cst_198 : f32 to vector<8x32xf32>
    %717 = arith.mulf %715, %716 : vector<8x32xf32>
    %718 = arith.mulf %717, %625 : vector<8x32xf32>
    %cst_199 = arith.constant 2.200000e+00 : f32
    %719 = vector.broadcast %cst_199 : f32 to vector<8x32xf32>
    %720 = arith.subf %719, %344 : vector<8x32xf32>
    %cst_200 = arith.constant 0.833333313 : f32
    %721 = vector.broadcast %cst_200 : f32 to vector<8x32xf32>
    %722 = arith.mulf %720, %721 : vector<8x32xf32>
    %723 = arith.mulf %722, %636 : vector<8x32xf32>
    %724 = arith.addf %718, %723 : vector<8x32xf32>
    %725 = tpu.concatenate %350, %647, %658, %669, %680, %691, %702, %713, %724 in 1 : vector<8x32xf32>, vector<8x32xf32>, vector<8x32xf32>, vector<8x32xf32>, vector<8x32xf32>, vector<8x32xf32>, vector<8x32xf32>, vector<8x32xf32>, vector<8x32xf32> -> vector<8x288xf32>
    %c0_201 = arith.constant 0 : index
    %c0_202 = arith.constant 0 : index
    %726 = vector.load %arg2[%c0_201, %c0_202] : memref<288x16xf32, #tpu.memory_space<vmem>>, vector<288x16xf32>
    %cst_203 = arith.constant dense<0.000000e+00> : vector<8x16xf32>
    %727 = tpu.matmul %725, %726, %cst_203 {dimension_numbers = #tpu.dot_dimension_numbers<[1], [0], [0], [1], [0, 0, 1, 1], [], []>} : vector<8x288xf32>, vector<288x16xf32>, vector<8x16xf32> -> vector<8x16xf32>
    %728 = arith.negf %727 : vector<8x16xf32>
    %729 = math.exp %728 : vector<8x16xf32>
    %cst_204 = arith.constant 1.000000e+00 : f32
    %730 = vector.broadcast %cst_204 : f32 to vector<8x16xf32>
    %731 = arith.addf %730, %729 : vector<8x16xf32>
    %732 = arith.divf %730, %731 : vector<8x16xf32>
    %733 = arith.mulf %727, %732 : vector<8x16xf32>
    %cst_205 = arith.constant -2.200000e+00 : f32
    %734 = vector.broadcast %cst_205 : f32 to vector<8x16xf32>
    %735 = arith.cmpf oge, %727, %734 : vector<8x16xf32>
    %cst_206 = arith.constant -1.800000e+00 : f32
    %736 = vector.broadcast %cst_206 : f32 to vector<8x16xf32>
    %737 = arith.cmpf olt, %727, %736 : vector<8x16xf32>
    %738 = arith.andi %735, %737 : vector<8x16xi1>
    %739 = arith.extui %738 : vector<8x16xi1> to vector<8x16xi32>
    %740 = arith.sitofp %739 : vector<8x16xi32> to vector<8x16xf32>
    %cst_207 = arith.constant -1.800000e+00 : f32
    %741 = vector.broadcast %cst_207 : f32 to vector<8x16xf32>
    %742 = arith.cmpf oge, %727, %741 : vector<8x16xf32>
    %cst_208 = arith.constant -1.400000e+00 : f32
    %743 = vector.broadcast %cst_208 : f32 to vector<8x16xf32>
    %744 = arith.cmpf olt, %727, %743 : vector<8x16xf32>
    %745 = arith.andi %742, %744 : vector<8x16xi1>
    %746 = arith.extui %745 : vector<8x16xi1> to vector<8x16xi32>
    %747 = arith.sitofp %746 : vector<8x16xi32> to vector<8x16xf32>
    %cst_209 = arith.constant -1.400000e+00 : f32
    %748 = vector.broadcast %cst_209 : f32 to vector<8x16xf32>
    %749 = arith.cmpf oge, %727, %748 : vector<8x16xf32>
    %cst_210 = arith.constant -1.000000e+00 : f32
    %750 = vector.broadcast %cst_210 : f32 to vector<8x16xf32>
    %751 = arith.cmpf olt, %727, %750 : vector<8x16xf32>
    %752 = arith.andi %749, %751 : vector<8x16xi1>
    %753 = arith.extui %752 : vector<8x16xi1> to vector<8x16xi32>
    %754 = arith.sitofp %753 : vector<8x16xi32> to vector<8x16xf32>
    %cst_211 = arith.constant -1.000000e+00 : f32
    %755 = vector.broadcast %cst_211 : f32 to vector<8x16xf32>
    %756 = arith.cmpf oge, %727, %755 : vector<8x16xf32>
    %cst_212 = arith.constant -6.000000e-01 : f32
    %757 = vector.broadcast %cst_212 : f32 to vector<8x16xf32>
    %758 = arith.cmpf olt, %727, %757 : vector<8x16xf32>
    %759 = arith.andi %756, %758 : vector<8x16xi1>
    %760 = arith.extui %759 : vector<8x16xi1> to vector<8x16xi32>
    %761 = arith.sitofp %760 : vector<8x16xi32> to vector<8x16xf32>
    %cst_213 = arith.constant -6.000000e-01 : f32
    %762 = vector.broadcast %cst_213 : f32 to vector<8x16xf32>
    %763 = arith.cmpf oge, %727, %762 : vector<8x16xf32>
    %cst_214 = arith.constant -0.199999988 : f32
    %764 = vector.broadcast %cst_214 : f32 to vector<8x16xf32>
    %765 = arith.cmpf olt, %727, %764 : vector<8x16xf32>
    %766 = arith.andi %763, %765 : vector<8x16xi1>
    %767 = arith.extui %766 : vector<8x16xi1> to vector<8x16xi32>
    %768 = arith.sitofp %767 : vector<8x16xi32> to vector<8x16xf32>
    %cst_215 = arith.constant -0.199999988 : f32
    %769 = vector.broadcast %cst_215 : f32 to vector<8x16xf32>
    %770 = arith.cmpf oge, %727, %769 : vector<8x16xf32>
    %cst_216 = arith.constant 0.200000048 : f32
    %771 = vector.broadcast %cst_216 : f32 to vector<8x16xf32>
    %772 = arith.cmpf olt, %727, %771 : vector<8x16xf32>
    %773 = arith.andi %770, %772 : vector<8x16xi1>
    %774 = arith.extui %773 : vector<8x16xi1> to vector<8x16xi32>
    %775 = arith.sitofp %774 : vector<8x16xi32> to vector<8x16xf32>
    %cst_217 = arith.constant 0.200000048 : f32
    %776 = vector.broadcast %cst_217 : f32 to vector<8x16xf32>
    %777 = arith.cmpf oge, %727, %776 : vector<8x16xf32>
    %cst_218 = arith.constant 6.000000e-01 : f32
    %778 = vector.broadcast %cst_218 : f32 to vector<8x16xf32>
    %779 = arith.cmpf olt, %727, %778 : vector<8x16xf32>
    %780 = arith.andi %777, %779 : vector<8x16xi1>
    %781 = arith.extui %780 : vector<8x16xi1> to vector<8x16xi32>
    %782 = arith.sitofp %781 : vector<8x16xi32> to vector<8x16xf32>
    %cst_219 = arith.constant 6.000000e-01 : f32
    %783 = vector.broadcast %cst_219 : f32 to vector<8x16xf32>
    %784 = arith.cmpf oge, %727, %783 : vector<8x16xf32>
    %cst_220 = arith.constant 1.000000e+00 : f32
    %785 = vector.broadcast %cst_220 : f32 to vector<8x16xf32>
    %786 = arith.cmpf olt, %727, %785 : vector<8x16xf32>
    %787 = arith.andi %784, %786 : vector<8x16xi1>
    %788 = arith.extui %787 : vector<8x16xi1> to vector<8x16xi32>
    %789 = arith.sitofp %788 : vector<8x16xi32> to vector<8x16xf32>
    %cst_221 = arith.constant 1.000000e+00 : f32
    %790 = vector.broadcast %cst_221 : f32 to vector<8x16xf32>
    %791 = arith.cmpf oge, %727, %790 : vector<8x16xf32>
    %cst_222 = arith.constant 1.4000001 : f32
    %792 = vector.broadcast %cst_222 : f32 to vector<8x16xf32>
    %793 = arith.cmpf olt, %727, %792 : vector<8x16xf32>
    %794 = arith.andi %791, %793 : vector<8x16xi1>
    %795 = arith.extui %794 : vector<8x16xi1> to vector<8x16xi32>
    %796 = arith.sitofp %795 : vector<8x16xi32> to vector<8x16xf32>
    %cst_223 = arith.constant 1.4000001 : f32
    %797 = vector.broadcast %cst_223 : f32 to vector<8x16xf32>
    %798 = arith.cmpf oge, %727, %797 : vector<8x16xf32>
    %cst_224 = arith.constant 1.800000e+00 : f32
    %799 = vector.broadcast %cst_224 : f32 to vector<8x16xf32>
    %800 = arith.cmpf olt, %727, %799 : vector<8x16xf32>
    %801 = arith.andi %798, %800 : vector<8x16xi1>
    %802 = arith.extui %801 : vector<8x16xi1> to vector<8x16xi32>
    %803 = arith.sitofp %802 : vector<8x16xi32> to vector<8x16xf32>
    %cst_225 = arith.constant 1.800000e+00 : f32
    %804 = vector.broadcast %cst_225 : f32 to vector<8x16xf32>
    %805 = arith.cmpf oge, %727, %804 : vector<8x16xf32>
    %cst_226 = arith.constant 2.200000e+00 : f32
    %806 = vector.broadcast %cst_226 : f32 to vector<8x16xf32>
    %807 = arith.cmpf olt, %727, %806 : vector<8x16xf32>
    %808 = arith.andi %805, %807 : vector<8x16xi1>
    %809 = arith.extui %808 : vector<8x16xi1> to vector<8x16xi32>
    %810 = arith.sitofp %809 : vector<8x16xi32> to vector<8x16xf32>
    %cst_227 = arith.constant -2.200000e+00 : f32
    %811 = vector.broadcast %cst_227 : f32 to vector<8x16xf32>
    %812 = arith.subf %727, %811 : vector<8x16xf32>
    %cst_228 = arith.constant 2.49999952 : f32
    %813 = vector.broadcast %cst_228 : f32 to vector<8x16xf32>
    %814 = arith.mulf %812, %813 : vector<8x16xf32>
    %815 = arith.mulf %814, %740 : vector<8x16xf32>
    %cst_229 = arith.constant -1.400000e+00 : f32
    %816 = vector.broadcast %cst_229 : f32 to vector<8x16xf32>
    %817 = arith.subf %816, %727 : vector<8x16xf32>
    %cst_230 = arith.constant 2.49999952 : f32
    %818 = vector.broadcast %cst_230 : f32 to vector<8x16xf32>
    %819 = arith.mulf %817, %818 : vector<8x16xf32>
    %820 = arith.mulf %819, %747 : vector<8x16xf32>
    %821 = arith.addf %815, %820 : vector<8x16xf32>
    %cst_231 = arith.constant -1.800000e+00 : f32
    %822 = vector.broadcast %cst_231 : f32 to vector<8x16xf32>
    %823 = arith.subf %727, %822 : vector<8x16xf32>
    %cst_232 = arith.constant 2.49999952 : f32
    %824 = vector.broadcast %cst_232 : f32 to vector<8x16xf32>
    %825 = arith.mulf %823, %824 : vector<8x16xf32>
    %826 = arith.mulf %825, %747 : vector<8x16xf32>
    %cst_233 = arith.constant -1.000000e+00 : f32
    %827 = vector.broadcast %cst_233 : f32 to vector<8x16xf32>
    %828 = arith.subf %827, %727 : vector<8x16xf32>
    %cst_234 = arith.constant 2.49999952 : f32
    %829 = vector.broadcast %cst_234 : f32 to vector<8x16xf32>
    %830 = arith.mulf %828, %829 : vector<8x16xf32>
    %831 = arith.mulf %830, %754 : vector<8x16xf32>
    %832 = arith.addf %826, %831 : vector<8x16xf32>
    %cst_235 = arith.constant -1.400000e+00 : f32
    %833 = vector.broadcast %cst_235 : f32 to vector<8x16xf32>
    %834 = arith.subf %727, %833 : vector<8x16xf32>
    %cst_236 = arith.constant 2.49999952 : f32
    %835 = vector.broadcast %cst_236 : f32 to vector<8x16xf32>
    %836 = arith.mulf %834, %835 : vector<8x16xf32>
    %837 = arith.mulf %836, %754 : vector<8x16xf32>
    %cst_237 = arith.constant -6.000000e-01 : f32
    %838 = vector.broadcast %cst_237 : f32 to vector<8x16xf32>
    %839 = arith.subf %838, %727 : vector<8x16xf32>
    %cst_238 = arith.constant 2.49999952 : f32
    %840 = vector.broadcast %cst_238 : f32 to vector<8x16xf32>
    %841 = arith.mulf %839, %840 : vector<8x16xf32>
    %842 = arith.mulf %841, %761 : vector<8x16xf32>
    %843 = arith.addf %837, %842 : vector<8x16xf32>
    %cst_239 = arith.constant -1.000000e+00 : f32
    %844 = vector.broadcast %cst_239 : f32 to vector<8x16xf32>
    %845 = arith.subf %727, %844 : vector<8x16xf32>
    %cst_240 = arith.constant 2.49999952 : f32
    %846 = vector.broadcast %cst_240 : f32 to vector<8x16xf32>
    %847 = arith.mulf %845, %846 : vector<8x16xf32>
    %848 = arith.mulf %847, %761 : vector<8x16xf32>
    %cst_241 = arith.constant -0.199999988 : f32
    %849 = vector.broadcast %cst_241 : f32 to vector<8x16xf32>
    %850 = arith.subf %849, %727 : vector<8x16xf32>
    %cst_242 = arith.constant 2.49999952 : f32
    %851 = vector.broadcast %cst_242 : f32 to vector<8x16xf32>
    %852 = arith.mulf %850, %851 : vector<8x16xf32>
    %853 = arith.mulf %852, %768 : vector<8x16xf32>
    %854 = arith.addf %848, %853 : vector<8x16xf32>
    %cst_243 = arith.constant -6.000000e-01 : f32
    %855 = vector.broadcast %cst_243 : f32 to vector<8x16xf32>
    %856 = arith.subf %727, %855 : vector<8x16xf32>
    %cst_244 = arith.constant 2.49999952 : f32
    %857 = vector.broadcast %cst_244 : f32 to vector<8x16xf32>
    %858 = arith.mulf %856, %857 : vector<8x16xf32>
    %859 = arith.mulf %858, %768 : vector<8x16xf32>
    %cst_245 = arith.constant 0.200000048 : f32
    %860 = vector.broadcast %cst_245 : f32 to vector<8x16xf32>
    %861 = arith.subf %860, %727 : vector<8x16xf32>
    %cst_246 = arith.constant 2.49999952 : f32
    %862 = vector.broadcast %cst_246 : f32 to vector<8x16xf32>
    %863 = arith.mulf %861, %862 : vector<8x16xf32>
    %864 = arith.mulf %863, %775 : vector<8x16xf32>
    %865 = arith.addf %859, %864 : vector<8x16xf32>
    %cst_247 = arith.constant -0.199999988 : f32
    %866 = vector.broadcast %cst_247 : f32 to vector<8x16xf32>
    %867 = arith.subf %727, %866 : vector<8x16xf32>
    %cst_248 = arith.constant 2.49999952 : f32
    %868 = vector.broadcast %cst_248 : f32 to vector<8x16xf32>
    %869 = arith.mulf %867, %868 : vector<8x16xf32>
    %870 = arith.mulf %869, %775 : vector<8x16xf32>
    %cst_249 = arith.constant 6.000000e-01 : f32
    %871 = vector.broadcast %cst_249 : f32 to vector<8x16xf32>
    %872 = arith.subf %871, %727 : vector<8x16xf32>
    %cst_250 = arith.constant 2.49999952 : f32
    %873 = vector.broadcast %cst_250 : f32 to vector<8x16xf32>
    %874 = arith.mulf %872, %873 : vector<8x16xf32>
    %875 = arith.mulf %874, %782 : vector<8x16xf32>
    %876 = arith.addf %870, %875 : vector<8x16xf32>
    %cst_251 = arith.constant 0.200000048 : f32
    %877 = vector.broadcast %cst_251 : f32 to vector<8x16xf32>
    %878 = arith.subf %727, %877 : vector<8x16xf32>
    %cst_252 = arith.constant 2.49999952 : f32
    %879 = vector.broadcast %cst_252 : f32 to vector<8x16xf32>
    %880 = arith.mulf %878, %879 : vector<8x16xf32>
    %881 = arith.mulf %880, %782 : vector<8x16xf32>
    %cst_253 = arith.constant 1.000000e+00 : f32
    %882 = vector.broadcast %cst_253 : f32 to vector<8x16xf32>
    %883 = arith.subf %882, %727 : vector<8x16xf32>
    %cst_254 = arith.constant 2.49999952 : f32
    %884 = vector.broadcast %cst_254 : f32 to vector<8x16xf32>
    %885 = arith.mulf %883, %884 : vector<8x16xf32>
    %886 = arith.mulf %885, %789 : vector<8x16xf32>
    %887 = arith.addf %881, %886 : vector<8x16xf32>
    %cst_255 = arith.constant 6.000000e-01 : f32
    %888 = vector.broadcast %cst_255 : f32 to vector<8x16xf32>
    %889 = arith.subf %727, %888 : vector<8x16xf32>
    %cst_256 = arith.constant 2.49999952 : f32
    %890 = vector.broadcast %cst_256 : f32 to vector<8x16xf32>
    %891 = arith.mulf %889, %890 : vector<8x16xf32>
    %892 = arith.mulf %891, %789 : vector<8x16xf32>
    %cst_257 = arith.constant 1.4000001 : f32
    %893 = vector.broadcast %cst_257 : f32 to vector<8x16xf32>
    %894 = arith.subf %893, %727 : vector<8x16xf32>
    %cst_258 = arith.constant 2.49999952 : f32
    %895 = vector.broadcast %cst_258 : f32 to vector<8x16xf32>
    %896 = arith.mulf %894, %895 : vector<8x16xf32>
    %897 = arith.mulf %896, %796 : vector<8x16xf32>
    %898 = arith.addf %892, %897 : vector<8x16xf32>
    %cst_259 = arith.constant 1.000000e+00 : f32
    %899 = vector.broadcast %cst_259 : f32 to vector<8x16xf32>
    %900 = arith.subf %727, %899 : vector<8x16xf32>
    %cst_260 = arith.constant 2.49999952 : f32
    %901 = vector.broadcast %cst_260 : f32 to vector<8x16xf32>
    %902 = arith.mulf %900, %901 : vector<8x16xf32>
    %903 = arith.mulf %902, %796 : vector<8x16xf32>
    %cst_261 = arith.constant 1.800000e+00 : f32
    %904 = vector.broadcast %cst_261 : f32 to vector<8x16xf32>
    %905 = arith.subf %904, %727 : vector<8x16xf32>
    %cst_262 = arith.constant 2.49999952 : f32
    %906 = vector.broadcast %cst_262 : f32 to vector<8x16xf32>
    %907 = arith.mulf %905, %906 : vector<8x16xf32>
    %908 = arith.mulf %907, %803 : vector<8x16xf32>
    %909 = arith.addf %903, %908 : vector<8x16xf32>
    %cst_263 = arith.constant 1.4000001 : f32
    %910 = vector.broadcast %cst_263 : f32 to vector<8x16xf32>
    %911 = arith.subf %727, %910 : vector<8x16xf32>
    %cst_264 = arith.constant 2.49999952 : f32
    %912 = vector.broadcast %cst_264 : f32 to vector<8x16xf32>
    %913 = arith.mulf %911, %912 : vector<8x16xf32>
    %914 = arith.mulf %913, %803 : vector<8x16xf32>
    %cst_265 = arith.constant 2.200000e+00 : f32
    %915 = vector.broadcast %cst_265 : f32 to vector<8x16xf32>
    %916 = arith.subf %915, %727 : vector<8x16xf32>
    %cst_266 = arith.constant 2.49999952 : f32
    %917 = vector.broadcast %cst_266 : f32 to vector<8x16xf32>
    %918 = arith.mulf %916, %917 : vector<8x16xf32>
    %919 = arith.mulf %918, %810 : vector<8x16xf32>
    %920 = arith.addf %914, %919 : vector<8x16xf32>
    %cst_267 = arith.constant -2.200000e+00 : f32
    %921 = vector.broadcast %cst_267 : f32 to vector<8x16xf32>
    %922 = arith.subf %727, %921 : vector<8x16xf32>
    %cst_268 = arith.constant 1.24999988 : f32
    %923 = vector.broadcast %cst_268 : f32 to vector<8x16xf32>
    %924 = arith.mulf %922, %923 : vector<8x16xf32>
    %925 = arith.mulf %924, %821 : vector<8x16xf32>
    %cst_269 = arith.constant -1.000000e+00 : f32
    %926 = vector.broadcast %cst_269 : f32 to vector<8x16xf32>
    %927 = arith.subf %926, %727 : vector<8x16xf32>
    %cst_270 = arith.constant 1.24999988 : f32
    %928 = vector.broadcast %cst_270 : f32 to vector<8x16xf32>
    %929 = arith.mulf %927, %928 : vector<8x16xf32>
    %930 = arith.mulf %929, %832 : vector<8x16xf32>
    %931 = arith.addf %925, %930 : vector<8x16xf32>
    %cst_271 = arith.constant -1.800000e+00 : f32
    %932 = vector.broadcast %cst_271 : f32 to vector<8x16xf32>
    %933 = arith.subf %727, %932 : vector<8x16xf32>
    %cst_272 = arith.constant 1.24999988 : f32
    %934 = vector.broadcast %cst_272 : f32 to vector<8x16xf32>
    %935 = arith.mulf %933, %934 : vector<8x16xf32>
    %936 = arith.mulf %935, %832 : vector<8x16xf32>
    %cst_273 = arith.constant -6.000000e-01 : f32
    %937 = vector.broadcast %cst_273 : f32 to vector<8x16xf32>
    %938 = arith.subf %937, %727 : vector<8x16xf32>
    %cst_274 = arith.constant 1.24999988 : f32
    %939 = vector.broadcast %cst_274 : f32 to vector<8x16xf32>
    %940 = arith.mulf %938, %939 : vector<8x16xf32>
    %941 = arith.mulf %940, %843 : vector<8x16xf32>
    %942 = arith.addf %936, %941 : vector<8x16xf32>
    %cst_275 = arith.constant -1.400000e+00 : f32
    %943 = vector.broadcast %cst_275 : f32 to vector<8x16xf32>
    %944 = arith.subf %727, %943 : vector<8x16xf32>
    %cst_276 = arith.constant 1.24999988 : f32
    %945 = vector.broadcast %cst_276 : f32 to vector<8x16xf32>
    %946 = arith.mulf %944, %945 : vector<8x16xf32>
    %947 = arith.mulf %946, %843 : vector<8x16xf32>
    %cst_277 = arith.constant -0.199999988 : f32
    %948 = vector.broadcast %cst_277 : f32 to vector<8x16xf32>
    %949 = arith.subf %948, %727 : vector<8x16xf32>
    %cst_278 = arith.constant 1.24999988 : f32
    %950 = vector.broadcast %cst_278 : f32 to vector<8x16xf32>
    %951 = arith.mulf %949, %950 : vector<8x16xf32>
    %952 = arith.mulf %951, %854 : vector<8x16xf32>
    %953 = arith.addf %947, %952 : vector<8x16xf32>
    %cst_279 = arith.constant -1.000000e+00 : f32
    %954 = vector.broadcast %cst_279 : f32 to vector<8x16xf32>
    %955 = arith.subf %727, %954 : vector<8x16xf32>
    %cst_280 = arith.constant 1.24999988 : f32
    %956 = vector.broadcast %cst_280 : f32 to vector<8x16xf32>
    %957 = arith.mulf %955, %956 : vector<8x16xf32>
    %958 = arith.mulf %957, %854 : vector<8x16xf32>
    %cst_281 = arith.constant 0.200000048 : f32
    %959 = vector.broadcast %cst_281 : f32 to vector<8x16xf32>
    %960 = arith.subf %959, %727 : vector<8x16xf32>
    %cst_282 = arith.constant 1.24999988 : f32
    %961 = vector.broadcast %cst_282 : f32 to vector<8x16xf32>
    %962 = arith.mulf %960, %961 : vector<8x16xf32>
    %963 = arith.mulf %962, %865 : vector<8x16xf32>
    %964 = arith.addf %958, %963 : vector<8x16xf32>
    %cst_283 = arith.constant -6.000000e-01 : f32
    %965 = vector.broadcast %cst_283 : f32 to vector<8x16xf32>
    %966 = arith.subf %727, %965 : vector<8x16xf32>
    %cst_284 = arith.constant 1.24999988 : f32
    %967 = vector.broadcast %cst_284 : f32 to vector<8x16xf32>
    %968 = arith.mulf %966, %967 : vector<8x16xf32>
    %969 = arith.mulf %968, %865 : vector<8x16xf32>
    %cst_285 = arith.constant 6.000000e-01 : f32
    %970 = vector.broadcast %cst_285 : f32 to vector<8x16xf32>
    %971 = arith.subf %970, %727 : vector<8x16xf32>
    %cst_286 = arith.constant 1.24999988 : f32
    %972 = vector.broadcast %cst_286 : f32 to vector<8x16xf32>
    %973 = arith.mulf %971, %972 : vector<8x16xf32>
    %974 = arith.mulf %973, %876 : vector<8x16xf32>
    %975 = arith.addf %969, %974 : vector<8x16xf32>
    %cst_287 = arith.constant -0.199999988 : f32
    %976 = vector.broadcast %cst_287 : f32 to vector<8x16xf32>
    %977 = arith.subf %727, %976 : vector<8x16xf32>
    %cst_288 = arith.constant 1.24999988 : f32
    %978 = vector.broadcast %cst_288 : f32 to vector<8x16xf32>
    %979 = arith.mulf %977, %978 : vector<8x16xf32>
    %980 = arith.mulf %979, %876 : vector<8x16xf32>
    %cst_289 = arith.constant 1.000000e+00 : f32
    %981 = vector.broadcast %cst_289 : f32 to vector<8x16xf32>
    %982 = arith.subf %981, %727 : vector<8x16xf32>
    %cst_290 = arith.constant 1.24999988 : f32
    %983 = vector.broadcast %cst_290 : f32 to vector<8x16xf32>
    %984 = arith.mulf %982, %983 : vector<8x16xf32>
    %985 = arith.mulf %984, %887 : vector<8x16xf32>
    %986 = arith.addf %980, %985 : vector<8x16xf32>
    %cst_291 = arith.constant 0.200000048 : f32
    %987 = vector.broadcast %cst_291 : f32 to vector<8x16xf32>
    %988 = arith.subf %727, %987 : vector<8x16xf32>
    %cst_292 = arith.constant 1.24999988 : f32
    %989 = vector.broadcast %cst_292 : f32 to vector<8x16xf32>
    %990 = arith.mulf %988, %989 : vector<8x16xf32>
    %991 = arith.mulf %990, %887 : vector<8x16xf32>
    %cst_293 = arith.constant 1.4000001 : f32
    %992 = vector.broadcast %cst_293 : f32 to vector<8x16xf32>
    %993 = arith.subf %992, %727 : vector<8x16xf32>
    %cst_294 = arith.constant 1.24999988 : f32
    %994 = vector.broadcast %cst_294 : f32 to vector<8x16xf32>
    %995 = arith.mulf %993, %994 : vector<8x16xf32>
    %996 = arith.mulf %995, %898 : vector<8x16xf32>
    %997 = arith.addf %991, %996 : vector<8x16xf32>
    %cst_295 = arith.constant 6.000000e-01 : f32
    %998 = vector.broadcast %cst_295 : f32 to vector<8x16xf32>
    %999 = arith.subf %727, %998 : vector<8x16xf32>
    %cst_296 = arith.constant 1.24999988 : f32
    %1000 = vector.broadcast %cst_296 : f32 to vector<8x16xf32>
    %1001 = arith.mulf %999, %1000 : vector<8x16xf32>
    %1002 = arith.mulf %1001, %898 : vector<8x16xf32>
    %cst_297 = arith.constant 1.800000e+00 : f32
    %1003 = vector.broadcast %cst_297 : f32 to vector<8x16xf32>
    %1004 = arith.subf %1003, %727 : vector<8x16xf32>
    %cst_298 = arith.constant 1.24999988 : f32
    %1005 = vector.broadcast %cst_298 : f32 to vector<8x16xf32>
    %1006 = arith.mulf %1004, %1005 : vector<8x16xf32>
    %1007 = arith.mulf %1006, %909 : vector<8x16xf32>
    %1008 = arith.addf %1002, %1007 : vector<8x16xf32>
    %cst_299 = arith.constant 1.000000e+00 : f32
    %1009 = vector.broadcast %cst_299 : f32 to vector<8x16xf32>
    %1010 = arith.subf %727, %1009 : vector<8x16xf32>
    %cst_300 = arith.constant 1.24999988 : f32
    %1011 = vector.broadcast %cst_300 : f32 to vector<8x16xf32>
    %1012 = arith.mulf %1010, %1011 : vector<8x16xf32>
    %1013 = arith.mulf %1012, %909 : vector<8x16xf32>
    %cst_301 = arith.constant 2.200000e+00 : f32
    %1014 = vector.broadcast %cst_301 : f32 to vector<8x16xf32>
    %1015 = arith.subf %1014, %727 : vector<8x16xf32>
    %cst_302 = arith.constant 1.24999988 : f32
    %1016 = vector.broadcast %cst_302 : f32 to vector<8x16xf32>
    %1017 = arith.mulf %1015, %1016 : vector<8x16xf32>
    %1018 = arith.mulf %1017, %920 : vector<8x16xf32>
    %1019 = arith.addf %1013, %1018 : vector<8x16xf32>
    %cst_303 = arith.constant -2.200000e+00 : f32
    %1020 = vector.broadcast %cst_303 : f32 to vector<8x16xf32>
    %1021 = arith.subf %727, %1020 : vector<8x16xf32>
    %cst_304 = arith.constant 0.833333313 : f32
    %1022 = vector.broadcast %cst_304 : f32 to vector<8x16xf32>
    %1023 = arith.mulf %1021, %1022 : vector<8x16xf32>
    %1024 = arith.mulf %1023, %931 : vector<8x16xf32>
    %cst_305 = arith.constant -6.000000e-01 : f32
    %1025 = vector.broadcast %cst_305 : f32 to vector<8x16xf32>
    %1026 = arith.subf %1025, %727 : vector<8x16xf32>
    %cst_306 = arith.constant 0.833333313 : f32
    %1027 = vector.broadcast %cst_306 : f32 to vector<8x16xf32>
    %1028 = arith.mulf %1026, %1027 : vector<8x16xf32>
    %1029 = arith.mulf %1028, %942 : vector<8x16xf32>
    %1030 = arith.addf %1024, %1029 : vector<8x16xf32>
    %cst_307 = arith.constant -1.800000e+00 : f32
    %1031 = vector.broadcast %cst_307 : f32 to vector<8x16xf32>
    %1032 = arith.subf %727, %1031 : vector<8x16xf32>
    %cst_308 = arith.constant 0.833333313 : f32
    %1033 = vector.broadcast %cst_308 : f32 to vector<8x16xf32>
    %1034 = arith.mulf %1032, %1033 : vector<8x16xf32>
    %1035 = arith.mulf %1034, %942 : vector<8x16xf32>
    %cst_309 = arith.constant -0.199999988 : f32
    %1036 = vector.broadcast %cst_309 : f32 to vector<8x16xf32>
    %1037 = arith.subf %1036, %727 : vector<8x16xf32>
    %cst_310 = arith.constant 0.833333313 : f32
    %1038 = vector.broadcast %cst_310 : f32 to vector<8x16xf32>
    %1039 = arith.mulf %1037, %1038 : vector<8x16xf32>
    %1040 = arith.mulf %1039, %953 : vector<8x16xf32>
    %1041 = arith.addf %1035, %1040 : vector<8x16xf32>
    %cst_311 = arith.constant -1.400000e+00 : f32
    %1042 = vector.broadcast %cst_311 : f32 to vector<8x16xf32>
    %1043 = arith.subf %727, %1042 : vector<8x16xf32>
    %cst_312 = arith.constant 0.833333313 : f32
    %1044 = vector.broadcast %cst_312 : f32 to vector<8x16xf32>
    %1045 = arith.mulf %1043, %1044 : vector<8x16xf32>
    %1046 = arith.mulf %1045, %953 : vector<8x16xf32>
    %cst_313 = arith.constant 0.200000048 : f32
    %1047 = vector.broadcast %cst_313 : f32 to vector<8x16xf32>
    %1048 = arith.subf %1047, %727 : vector<8x16xf32>
    %cst_314 = arith.constant 0.833333313 : f32
    %1049 = vector.broadcast %cst_314 : f32 to vector<8x16xf32>
    %1050 = arith.mulf %1048, %1049 : vector<8x16xf32>
    %1051 = arith.mulf %1050, %964 : vector<8x16xf32>
    %1052 = arith.addf %1046, %1051 : vector<8x16xf32>
    %cst_315 = arith.constant -1.000000e+00 : f32
    %1053 = vector.broadcast %cst_315 : f32 to vector<8x16xf32>
    %1054 = arith.subf %727, %1053 : vector<8x16xf32>
    %cst_316 = arith.constant 0.833333313 : f32
    %1055 = vector.broadcast %cst_316 : f32 to vector<8x16xf32>
    %1056 = arith.mulf %1054, %1055 : vector<8x16xf32>
    %1057 = arith.mulf %1056, %964 : vector<8x16xf32>
    %cst_317 = arith.constant 6.000000e-01 : f32
    %1058 = vector.broadcast %cst_317 : f32 to vector<8x16xf32>
    %1059 = arith.subf %1058, %727 : vector<8x16xf32>
    %cst_318 = arith.constant 0.833333313 : f32
    %1060 = vector.broadcast %cst_318 : f32 to vector<8x16xf32>
    %1061 = arith.mulf %1059, %1060 : vector<8x16xf32>
    %1062 = arith.mulf %1061, %975 : vector<8x16xf32>
    %1063 = arith.addf %1057, %1062 : vector<8x16xf32>
    %cst_319 = arith.constant -6.000000e-01 : f32
    %1064 = vector.broadcast %cst_319 : f32 to vector<8x16xf32>
    %1065 = arith.subf %727, %1064 : vector<8x16xf32>
    %cst_320 = arith.constant 0.833333313 : f32
    %1066 = vector.broadcast %cst_320 : f32 to vector<8x16xf32>
    %1067 = arith.mulf %1065, %1066 : vector<8x16xf32>
    %1068 = arith.mulf %1067, %975 : vector<8x16xf32>
    %cst_321 = arith.constant 1.000000e+00 : f32
    %1069 = vector.broadcast %cst_321 : f32 to vector<8x16xf32>
    %1070 = arith.subf %1069, %727 : vector<8x16xf32>
    %cst_322 = arith.constant 0.833333313 : f32
    %1071 = vector.broadcast %cst_322 : f32 to vector<8x16xf32>
    %1072 = arith.mulf %1070, %1071 : vector<8x16xf32>
    %1073 = arith.mulf %1072, %986 : vector<8x16xf32>
    %1074 = arith.addf %1068, %1073 : vector<8x16xf32>
    %cst_323 = arith.constant -0.199999988 : f32
    %1075 = vector.broadcast %cst_323 : f32 to vector<8x16xf32>
    %1076 = arith.subf %727, %1075 : vector<8x16xf32>
    %cst_324 = arith.constant 0.833333313 : f32
    %1077 = vector.broadcast %cst_324 : f32 to vector<8x16xf32>
    %1078 = arith.mulf %1076, %1077 : vector<8x16xf32>
    %1079 = arith.mulf %1078, %986 : vector<8x16xf32>
    %cst_325 = arith.constant 1.4000001 : f32
    %1080 = vector.broadcast %cst_325 : f32 to vector<8x16xf32>
    %1081 = arith.subf %1080, %727 : vector<8x16xf32>
    %cst_326 = arith.constant 0.833333313 : f32
    %1082 = vector.broadcast %cst_326 : f32 to vector<8x16xf32>
    %1083 = arith.mulf %1081, %1082 : vector<8x16xf32>
    %1084 = arith.mulf %1083, %997 : vector<8x16xf32>
    %1085 = arith.addf %1079, %1084 : vector<8x16xf32>
    %cst_327 = arith.constant 0.200000048 : f32
    %1086 = vector.broadcast %cst_327 : f32 to vector<8x16xf32>
    %1087 = arith.subf %727, %1086 : vector<8x16xf32>
    %cst_328 = arith.constant 0.833333313 : f32
    %1088 = vector.broadcast %cst_328 : f32 to vector<8x16xf32>
    %1089 = arith.mulf %1087, %1088 : vector<8x16xf32>
    %1090 = arith.mulf %1089, %997 : vector<8x16xf32>
    %cst_329 = arith.constant 1.800000e+00 : f32
    %1091 = vector.broadcast %cst_329 : f32 to vector<8x16xf32>
    %1092 = arith.subf %1091, %727 : vector<8x16xf32>
    %cst_330 = arith.constant 0.833333313 : f32
    %1093 = vector.broadcast %cst_330 : f32 to vector<8x16xf32>
    %1094 = arith.mulf %1092, %1093 : vector<8x16xf32>
    %1095 = arith.mulf %1094, %1008 : vector<8x16xf32>
    %1096 = arith.addf %1090, %1095 : vector<8x16xf32>
    %cst_331 = arith.constant 6.000000e-01 : f32
    %1097 = vector.broadcast %cst_331 : f32 to vector<8x16xf32>
    %1098 = arith.subf %727, %1097 : vector<8x16xf32>
    %cst_332 = arith.constant 0.833333313 : f32
    %1099 = vector.broadcast %cst_332 : f32 to vector<8x16xf32>
    %1100 = arith.mulf %1098, %1099 : vector<8x16xf32>
    %1101 = arith.mulf %1100, %1008 : vector<8x16xf32>
    %cst_333 = arith.constant 2.200000e+00 : f32
    %1102 = vector.broadcast %cst_333 : f32 to vector<8x16xf32>
    %1103 = arith.subf %1102, %727 : vector<8x16xf32>
    %cst_334 = arith.constant 0.833333313 : f32
    %1104 = vector.broadcast %cst_334 : f32 to vector<8x16xf32>
    %1105 = arith.mulf %1103, %1104 : vector<8x16xf32>
    %1106 = arith.mulf %1105, %1019 : vector<8x16xf32>
    %1107 = arith.addf %1101, %1106 : vector<8x16xf32>
    %1108 = tpu.concatenate %733, %1030, %1041, %1052, %1063, %1074, %1085, %1096, %1107 in 1 : vector<8x16xf32>, vector<8x16xf32>, vector<8x16xf32>, vector<8x16xf32>, vector<8x16xf32>, vector<8x16xf32>, vector<8x16xf32>, vector<8x16xf32>, vector<8x16xf32> -> vector<8x144xf32>
    %c0_335 = arith.constant 0 : index
    %c0_336 = arith.constant 0 : index
    %1109 = vector.load %arg3[%c0_335, %c0_336] : memref<144x8xf32, #tpu.memory_space<vmem>>, vector<144x8xf32>
    %cst_337 = arith.constant dense<0.000000e+00> : vector<8x8xf32>
    %1110 = tpu.matmul %1108, %1109, %cst_337 {dimension_numbers = #tpu.dot_dimension_numbers<[1], [0], [0], [1], [0, 0, 1, 1], [], []>} : vector<8x144xf32>, vector<144x8xf32>, vector<8x8xf32> -> vector<8x8xf32>
    %1111 = vector.extract_strided_slice %1110 {offsets = [0, 0], sizes = [2, 8], strides = [1, 1]} : vector<8x8xf32> to vector<2x8xf32>
    %c0_338 = arith.constant 0 : index
    %c0_339 = arith.constant 0 : index
    %1112 = vector.load %arg4[%c0_338, %c0_339] : memref<2x8xf32, #tpu.memory_space<vmem>>, vector<2x8xf32>
    tpu.vector_store %arg4[%c0_338, %c0_339], %1111 {strides = array<i32>} : memref<2x8xf32, #tpu.memory_space<vmem>>, vector<2x8xf32>,
    return
  }
}

</mosaic_0001>

<bundles_post_ra>
// kernel: lstm_kan_forward.1
= control target key start
LH: loop header
LB: loop body
LE: loop exit
PB: predicated region body
PF: predicated region fallthrough
CT: control target
= control target key end

     0   :  { %vm70_vm0 = vcmask 1043456   ;;  %vm45_vm1 = vcmask 31744   ;;  %s4266_s0 = inlined_call_operand.vmem [shape: f32[64,4], index: 0, kind: input, shape index: {}]   ;;  %s4267_s1 = inlined_call_operand.vmem [shape: f32[120,128], index: 1, kind: input, shape index: {}]   ;;  %s4268_s2 = inlined_call_operand.vmem [shape: f32[288,16], index: 2, kind: input, shape index: {}]   ;;  %s4269_s3 = inlined_call_operand.vmem [shape: f32[144,8], index: 3, kind: input, shape index: {}]   ;;  %s4270_s4 = inlined_call_operand.hbm [shape: f32[2,8], index: 4, kind: output, shape index: {}]  }
   0x1   :  { %v18_v0 = vld [vmem:[%s4267_s1] sm:$0xf]  ;;  %v34_v2 = vld [vmem:[%s4266_s0 + $0x8] sm:$0xff] }
   0x2   :  { %v33_v1 = vld [vmem:[%s4266_s0] sm:$0xff]  ;;  %2787 = vmatprep.subr.msk.mxu0 %vm70_vm0, %v18_v0 }
   0x3   :  { %2789 = vmatprep.mubr.msk.f32.mxu0 %vm45_vm1, %v33_v1 }
   0x4   :  { %9 = vsyncpa [#allocation3], 0  ;;  %2788 = vmatpush3.msk.msra.mxu0 %vm70_vm0, %v18_v0  ;;  %v3434_v3 = vld [vmem:[%s4267_s1 + $0x28] ss:$0 sm:$0xff]  ;;  %s3384_s23 = smov 64   ;;  %v24_v15 = vld [vmem:[%s4267_s1 + $0x30] sm:$0xff] }
   0x5   :  { %2790 = vmatmul.mubr.msk.f32.vlgmr.msra.gmra.mrb[0].mxu0 %vm45_vm1, %v34_v2  ;;  %v25_v16 = vld [vmem:[%s4267_s1 + $0x38] sm:$0xff]  ;;  %v26_v17 = vld [vmem:[%s4267_s1 + $0x40] sm:$0xff]  ;;  %v3385_v18 = vmov 0.0|0.0   ;;  %v27_v20 = vld [vmem:[%s4267_s1 + $0x48] sm:$0xff]  ;;  %vm3386_vm2 = vmmov 0   ;;  %v3387_v21 = vmov 0.0  }
   0x6   :  { %3033 = vmatprep.subr.bf16.mxu1 %v3385_v18  ;;  %v3450_v19 = vpack.c.bf16 %v25_v16, %v24_v15  ;;  %2809 = vmatprep.mubr.msk.f32.mxu1 %vm3386_vm2, %v3387_v21  ;;  %v3459_v22 = vpack.c.bf16 %v27_v20, %v26_v17  ;;  %s3388_s6 = smov 96   ;;  %s3389_s7 = smov 32   ;;  %v19_v26 = vld [vmem:[%s4267_s1 + $0x8] sm:$0xff]  ;;  %v20_v27 = vld [vmem:[%s4267_s1 + $0x10] sm:$0xff]  ;;  %vm205_vm3 = vcmask 261120   ;;  %v21_v29 = vld [vmem:[%s4267_s1 + $0x18] sm:$0xff] }
   0x7   :  { %3045 = vmatprep.subr.bf16.mxu0 %v3385_v18  ;;  %v3477_v28 = vpack.c.bf16 %v20_v27, %v19_v26  ;;  %v22_v30 = vld [vmem:[%s4267_s1 + $0x20] sm:$0xff]  ;;  %v3504_v33 = vld [vmem:[%s4267_s1 + $0x70] ss:$0 sm:$0xff]  ;;  %v36_v63 = vld [vmem:[%s4266_s0 + $0x18] sm:$0xff]  ;;  %vm4271_vm4 = vcmask 523264   ;;  %s3391_s15 = smov 48  }
   0x8   :  { %3035 = vmatpush3.bf16.msra.mxu1 %v3450_v19  ;;  %3047 = vmatpush3.bf16.msra.mxu0 %v3450_v19  ;;  %v3487_v32 = vpack.c.bf16 %v22_v30, %v21_v29  ;;  %v35_v62 = vld [vmem:[%s4266_s0 + $0x10] sm:$0xff]  ;;  %v37_v0 = vld [vmem:[%s4266_s0 + $0x20] sm:$0xff]  ;;  %v29_v2 = vld [vmem:[%s4267_s1 + $0x58] sm:$0xff]  ;;  %s3392_s19 = smov 80  }
   0x9   :  { %3036 = vmatprep.subr.bf16.mxu1 %v3385_v18  ;;  %3048 = vmatprep.subr.bf16.mxu0 %v3385_v18  ;;  %v28_v1 = vld [vmem:[%s4267_s1 + $0x50] sm:$0xff] }
   0xa   :  { %2792 = vmatprep.mubr.msk.f32.mxu0 %vm45_vm1, %v35_v62 }
   0xb   :  { %2793 = vmatmul.mubr.msk.f32.gmra.mrb[2].mxu0 %vm45_vm1, %v36_v63 }
   0xc   :  { %3038 = vmatpush3.bf16.msra.mxu1 %v3459_v22  ;;  %3050 = vmatpush3.bf16.msra.mxu0 %v3459_v22 }
   0xd   :  { %3039 = vmatprep.subr.bf16.mxu1 %v3385_v18  ;;  %3051 = vmatprep.subr.bf16.mxu0 %v3385_v18 }
   0xe   :  { %2795 = vmatprep.mubr.msk.f32.mxu0 %vm45_vm1, %v37_v0 }
  0xd8   :  { %v3436_v4 = vpop.f32.mrb[0].mxu0 }
  0xd9   :  { %v140_v5 = vpop.f32.mrb[1].mxu0  ;;  %v146_v38 = vadd.f32 %v3436_v4, %v3434_v3  ;;  %v3536_v4 = vpack.c.bf16 %v29_v2, %v28_v1 }
  0xda   :  { %v141_v6 = vadd.f32 %v3434_v3, %v140_v5  ;;  %v30_v5 = vld [vmem:[%s4267_s1 + $0x60] sm:$0xff] }
  0xdb   :  { %3053 = vmatpush3.bf16.msra.mxu0 %v3536_v4 }
  0xdc   :  { %v2541_v7 = vmul.f32 -1.442695, %v141_v6  ;;  %v38_v6 = vld [vmem:[%s4266_s0 + $0x28] sm:$0xff]  ;;  %3054 = vmatprep.subr.bf16.mxu0 %v3385_v18 }
  0xdd   :  { %2796 = vmatmul.mubr.msk.f32.gmra.mrb[4].mxu0 %vm45_vm1, %v38_v6 }
  0xde   :  { %3256 = vpow2.f32 %v2541_v7  ;;  %v31_v7 = vld [vmem:[%s4267_s1 + $0x68] sm:$0xff]  ;;  %v3568_v16 = vpop.f32.mrb[2].mxu0 }
  0xdf   :  { %v150_v17 = vpop.f32.mrb[3].mxu0 }
  0xe0   :  { %v151_v30 = vadd.f32 %v3434_v3, %v150_v17 }
  0xe8   :  { %v3257_v8 = vpop.eup %3256 }
  0xe9   :  { %v182_v9 = vadd.f32 1.0, %v3257_v8  ;;  %v39_v8 = vld [vmem:[%s4266_s0 + $0x30] sm:$0xff] }
  0xea   :  { %2798 = vmatprep.mubr.msk.f32.mxu0 %vm45_vm1, %v39_v8 }
  0xeb   :  { %3258 = vrcp.f32 %v182_v9  ;;  %v3552_v9 = vpack.c.bf16 %v31_v7, %v30_v5 }
  0xed   :  { %3056 = vmatpush3.bf16.msra.mxu0 %v3552_v9 }
  0xee   :  { %3063 = vmatprep.subr.bf16.mxu0 %v3385_v18 }
  0xf5   :  { %v3259_v10 = vpop.eup %3258 }
  0xf6   :  { %v185_v11 = vmul.f32 2.0, %v3259_v10 }
  0xf8   :  { %v2542_v12 = vadd.f32 -1.0, %v185_v11 }
  0xfa   :  { %188 = vrot.lane.b32.xlu0 %v2542_v12, %s3384_s23 }
 0x16c   :  { %v189_v13 = vpop.permute.xlu0 %188 }
 0x16d   :  { %v191_v14 = vmul.f32 %v3259_v10, %v189_v13 }
 0x16f   :  { %3260 = vtanh.f32 %v191_v14 }
 0x179   :  { %v3261_v23 = vpop.eup %3260 }
 0x17a   :  { %194 = vrot.lane.b32.xlu0 %v3261_v23, %s3388_s6 }
 0x17e   :  { %377 = vrot.lane.b32.xlu0 %v191_v14, %s3389_s7 }
 0x1b0   :  { %v3570_v20 = vpop.f32.mrb[4].mxu0 }
 0x1b1   :  { %v3572_v23 = vpop.f32.mrb[5].mxu0 }
 0x1ec   :  { %v195_v24 = vpop.permute.xlu0 %194 }
 0x1ed   :  { %v197_v25 = vmul.f32 %v3259_v10, %v195_v24  ;;  %v40_v10 = vld [vmem:[%s4266_s0 + $0x38] sm:$0xff] }
 0x1ee   :  { %2799 = vmatmul.mubr.msk.f32.gmra.mrb[6].mxu0 %vm45_vm1, %v40_v10  ;;  %v156_v10 = vadd.f32 %v3568_v16, %v3434_v3 }
 0x1ef   :  { %203 = vrot.lane.b32.xlu1 %v197_v25, %s3389_s7  ;;  %2839 = vmatprep.mubr.msk.f32.mxu0 %vm3386_vm2, %v3387_v21 }
 0x1f0   :  { %v378_v58 = vpop.permute.xlu0 %377 }
 0x261   :  { %v204_v31 = vpop.permute.xlu1 %203 }
 0x262   :  { %2810 = vmatmul.mubr.msk.f32.vlgmr.msra.gmra.mrb[0].mxu1 %vm205_vm3, %v204_v31 }
 0x263   :  { %3041 = vmatpush3.bf16.msra.mxu1 %v3477_v28  ;;  %2820 = vmatprep.mubr.msk.f32.mxu1 %vm3386_vm2, %v3387_v21 }
 0x264   :  { %3042 = vmatprep.subr.bf16.mxu1 %v3385_v18 }
 0x267   :  { %3044 = vmatpush3.bf16.msra.mxu1 %v3487_v32 }
 0x268   :  { %3057 = vmatprep.subr.bf16.mxu1 %v3385_v18 }
 0x26a   :  { %2821 = vmatmul.mubr.msk.f32.vlgmr.msra.gmra.mrb[2].mxu1 %vm205_vm3, %v204_v31 }
 0x26b   :  { %3059 = vmatpush3.bf16.msra.mxu1 %v3477_v28  ;;  %2850 = vmatprep.mubr.msk.f32.mxu1 %vm3386_vm2, %v3387_v21 }
 0x26c   :  { %3060 = vmatprep.subr.bf16.mxu1 %v3385_v18 }
 0x26f   :  { %3062 = vmatpush3.bf16.msra.mxu1 %v3487_v32 }
 0x270   :  { %3075 = vmatprep.subr.bf16.mxu1 %v3385_v18 }
 0x2c1   :  { %v3574_v24 = vpop.f32.mrb[6].mxu0 }
 0x2c2   :  { %v3576_v25 = vpop.f32.mrb[7].mxu0 }
 0x335   :  { %v274_v34 = vpop.f32.mrb[0].mxu1 }
 0x336   :  { %v275_v35 = vadd.f32 %v3504_v33, %v274_v34  ;;  %v2811_v36 = vpop.f32.mrb[1].mxu1 }
 0x338   :  { %v2545_v37 = vmul.f32 -1.442695, %v275_v35 }
 0x33a   :  { %3262 = vpow2.f32 %v2545_v37 }
 0x33d   :  { %v363_v39 = vpop.f32.mrb[2].mxu1 }
 0x33e   :  { %v367_v40 = vadd.f32 %v363_v39, %v146_v38  ;;  %v2822_v41 = vpop.f32.mrb[3].mxu1 }
 0x340   :  { %v2548_v42 = vmul.f32 -1.442695, %v367_v40 }
 0x342   :  { %3264 = vpow2.f32 %v2548_v42 }
 0x344   :  { %v3263_v43 = vpop.eup %3262 }
 0x345   :  { %v281_v44 = vadd.f32 1.0, %v3263_v43 }
 0x347   :  { %3266 = vrcp.f32 %v281_v44 }
 0x34c   :  { %v3265_v45 = vpop.eup %3264 }
 0x34d   :  { %v371_v46 = vadd.f32 1.0, %v3265_v45 }
 0x34f   :  { %3268 = vrcp.f32 %v371_v46 }
 0x351   :  { %v3267_v47 = vpop.eup %3266 }
 0x352   :  { %v284_v51 = vmul.f32 2.0, %v3267_v47 }
 0x354   :  { %v2546_v52 = vadd.f32 -1.0, %v284_v51 }
 0x359   :  { %v3269_v48 = vpop.eup %3268 }
 0x35a   :  { %v374_v49 = vmul.f32 2.0, %v3269_v48  ;;  %v380_v59 = vmul.f32 %v3269_v48, %v378_v58 }
 0x35c   :  { %v2549_v50 = vadd.f32 -1.0, %v374_v49 }
 0x35e   :  { %382 = vrot.lane.b32.xlu1 %v2549_v50, %s3384_s23 }
 0x362   :  { %287 = vrot.lane.b32.xlu1 %v2546_v52, %s3384_s23 }
 0x3d0   :  { %v383_v53 = vpop.permute.xlu1 %382 }
 0x3d1   :  { %v385_v54 = vmul.f32 %v3269_v48, %v383_v53 }
 0x3d3   :  { %387 = vrot.lane.b32.xlu0 %v385_v54, %s3389_s7 }
 0x3d4   :  { %v288_v55 = vpop.permute.xlu1 %287 }
 0x3d5   :  { %v3512_v56 = vmul.f32 %v3267_v47, %v288_v55 }
 0x3d7   :  { %3270 = vtanh.f32 %v3512_v56 }
 0x3e1   :  { %v3271_v57 = vpop.eup %3270 }
 0x3e2   :  { %293 = vrot.lane.b32.xlu1 %v3271_v57, %s3388_s6 }
 0x445   :  { %v388_v60 = vpop.permute.xlu0 %387 }
 0x446   :  { %v3516_v61 = vadd.f32 %v388_v60, %v380_v59 }
 0x448   :  { %3272 = vtanh.f32 %v3516_v61 }
 0x452   :  { %v3273_v11 = vpop.eup %3272 }
 0x453   :  { %393 = vrot.lane.b32.xlu0 %v3273_v11, %s3384_s23 }
 0x454   :  { %v294_v12 = vpop.permute.xlu1 %293 }
 0x455   :  { %v296_v13 = vmul.f32 %v3267_v47, %v294_v12 }
 0x457   :  { %402 = vrot.lane.b32.xlu0 %v296_v13, %s3384_s23 }
 0x4c5   :  { %v394_v14 = vpop.permute.xlu0 %393 }
 0x4c6   :  { %v396_v15 = vmul.f32 %v3269_v48, %v394_v14 }
 0x4c8   :  { %398 = vrot.lane.b32.xlu1 %v396_v15, %s3389_s7 }
 0x4c9   :  { %v403_v26 = vpop.permute.xlu0 %402 }
 0x53a   :  { %v399_v27 = vpop.permute.xlu1 %398 }
 0x53b   :  { %v405_v29 = vsel %vm205_vm3, %v399_v27, %v403_v26  ;;  %2851 = vmatmul.mubr.msk.f32.vlgmr.msra.gmra.mrb[4].mxu1 %vm205_vm3, %v399_v27 }
 0x53c   :  { %2840 = vmatmul.mubr.msk.f32.vlgmr.msra.gmra.mrb[8].mxu0 %vm4271_vm4, %v405_v29  ;;  %3077 = vmatpush3.bf16.msra.mxu1 %v3477_v28 }
 0x53d   :  { %3065 = vmatpush3.bf16.msra.mxu0 %v3450_v19  ;;  %3078 = vmatprep.subr.bf16.mxu1 %v3385_v18 }
 0x53e   :  { %3066 = vmatprep.subr.bf16.mxu0 %v3385_v18  ;;  %2880 = vmatprep.mubr.msk.f32.mxu1 %vm3386_vm2, %v3387_v21 }
 0x53f   :  { %2869 = vmatprep.mubr.msk.f32.mxu0 %vm3386_vm2, %v3387_v21 }
 0x540   :  { %3080 = vmatpush3.bf16.msra.mxu1 %v3487_v32 }
 0x541   :  { %3068 = vmatpush3.bf16.msra.mxu0 %v3459_v22  ;;  %3111 = vmatprep.subr.bf16.mxu1 %v3385_v18 }
 0x542   :  { %3069 = vmatprep.subr.bf16.mxu0 %v3385_v18 }
 0x545   :  { %3071 = vmatpush3.bf16.msra.mxu0 %v3536_v4 }
 0x546   :  { %3072 = vmatprep.subr.bf16.mxu0 %v3385_v18 }
 0x549   :  { %3074 = vmatpush3.bf16.msra.mxu0 %v3552_v9 }
 0x54a   :  { %3081 = vmatprep.subr.bf16.mxu0 %v3385_v18 }
 0x60e   :  { %v577_v31 = vpop.f32.mrb[4].mxu1 }
 0x60f   :  { %v581_v34 = vadd.f32 %v577_v31, %v151_v30  ;;  %v476_v35 = vpop.f32.mrb[8].mxu0  ;;  %v2852_v36 = vpop.f32.mrb[5].mxu1 }
 0x610   :  { %v477_v37 = vadd.f32 %v3504_v33, %v476_v35  ;;  %v2841_v38 = vpop.f32.mrb[9].mxu0 }
 0x611   :  { %v2554_v39 = vmul.f32 -1.442695, %v581_v34 }
 0x612   :  { %v2551_v40 = vmul.f32 -1.442695, %v477_v37 }
 0x613   :  { %3274 = vpow2.f32 %v2554_v39 }
 0x614   :  { %3276 = vpow2.f32 %v2551_v40 }
 0x61d   :  { %v3275_v41 = vpop.eup %3274 }
 0x61e   :  { %v3277_v42 = vpop.eup %3276  ;;  %v585_v43 = vadd.f32 1.0, %v3275_v41 }
 0x61f   :  { %v483_v44 = vadd.f32 1.0, %v3277_v42 }
 0x620   :  { %3278 = vrcp.f32 %v585_v43 }
 0x621   :  { %3280 = vrcp.f32 %v483_v44 }
 0x62a   :  { %v3279_v45 = vpop.eup %3278 }
 0x62b   :  { %v3281_v46 = vpop.eup %3280  ;;  %v588_v47 = vmul.f32 2.0, %v3279_v45  ;;  %v590_v57 = vmul.f32 %v3279_v45, %v3516_v61 }
 0x62c   :  { %v486_v48 = vmul.f32 2.0, %v3281_v46 }
 0x62d   :  { %v2555_v49 = vadd.f32 -1.0, %v588_v47 }
 0x62e   :  { %v2552_v50 = vadd.f32 -1.0, %v486_v48 }
 0x62f   :  { %592 = vrot.lane.b32.xlu0 %v2555_v49, %s3384_s23 }
 0x630   :  { %494 = vrot.lane.b32.xlu1 %v2552_v50, %s3384_s23 }
 0x634   :  { %489 = vrot.lane.b32.xlu1 %v3512_v56, %s3389_s7 }
 0x6a1   :  { %v593_v51 = vpop.permute.xlu0 %592 }
 0x6a2   :  { %v595_v52 = vmul.f32 %v3279_v45, %v593_v51  ;;  %v495_v53 = vpop.permute.xlu1 %494 }
 0x6a3   :  { %v497_v54 = vmul.f32 %v3281_v46, %v495_v53 }
 0x6a4   :  { %597 = vrot.lane.b32.xlu1 %v595_v52, %s3389_s7 }
 0x6a5   :  { %499 = vrot.lane.b32.xlu0 %v497_v54, %s3389_s7 }
 0x6a6   :  { %v490_v55 = vpop.permute.xlu1 %489 }
 0x6a7   :  { %v492_v58 = vmul.f32 %v3281_v46, %v490_v55 }
 0x716   :  { %v598_v59 = vpop.permute.xlu1 %597 }
 0x717   :  { %v3606_v60 = vadd.f32 %v598_v59, %v590_v57  ;;  %v500_v62 = vpop.permute.xlu0 %499 }
 0x718   :  { %v3608_v63 = vadd.f32 %v500_v62, %v492_v58 }
 0x719   :  { %3282 = vtanh.f32 %v3606_v60 }
 0x71a   :  { %3284 = vtanh.f32 %v3608_v63 }
 0x723   :  { %v3283_v56 = vpop.eup %3282 }
 0x724   :  { %v3285_v0 = vpop.eup %3284  ;;  %603 = vrot.lane.b32.xlu1 %v3283_v56, %s3384_s23 }
 0x725   :  { %505 = vrot.lane.b32.xlu0 %v3285_v0, %s3384_s23  ;;  %v161_v0 = vadd.f32 %v3434_v3, %v3572_v23 }
 0x796   :  { %v604_v1 = vpop.permute.xlu1 %603 }
 0x797   :  { %v606_v2 = vmul.f32 %v3279_v45, %v604_v1  ;;  %v506_v61 = vpop.permute.xlu0 %505 }
 0x798   :  { %v508_v5 = vmul.f32 %v3281_v46, %v506_v61 }
 0x799   :  { %608 = vrot.lane.b32.xlu0 %v606_v2, %s3389_s7 }
 0x79a   :  { %612 = vrot.lane.b32.xlu1 %v508_v5, %s3384_s23 }
 0x80b   :  { %v609_v6 = vpop.permute.xlu0 %608 }
 0x80c   :  { %v613_v7 = vpop.permute.xlu1 %612  ;;  %2881 = vmatmul.mubr.msk.f32.vlgmr.msra.gmra.mrb[6].mxu1 %vm205_vm3, %v609_v6 }
 0x80d   :  { %v615_v8 = vsel %vm205_vm3, %v609_v6, %v613_v7  ;;  %3113 = vmatpush3.bf16.msra.mxu1 %v3477_v28  ;;  %2940 = vmatprep.mubr.msk.f32.mxu1 %vm3386_vm2, %v3387_v21 }
 0x80e   :  { %2870 = vmatmul.mubr.msk.f32.vlgmr.msra.gmra.mrb[10].mxu0 %vm4271_vm4, %v615_v8  ;;  %3114 = vmatprep.subr.bf16.mxu1 %v3385_v18 }
 0x80f   :  { %3083 = vmatpush3.bf16.msra.mxu0 %v3450_v19  ;;  %2899 = vmatprep.mubr.msk.f32.mxu0 %vm3386_vm2, %v3387_v21 }
 0x810   :  { %3084 = vmatprep.subr.bf16.mxu0 %v3385_v18 }
 0x811   :  { %3116 = vmatpush3.bf16.msra.mxu1 %v3487_v32 }
 0x812   :  { %3117 = vmatprep.subr.bf16.mxu1 %v3385_v18 }
 0x813   :  { %3086 = vmatpush3.bf16.msra.mxu0 %v3459_v22 }
 0x814   :  { %3087 = vmatprep.subr.bf16.mxu0 %v3385_v18 }
 0x817   :  { %3089 = vmatpush3.bf16.msra.mxu0 %v3536_v4 }
 0x818   :  { %3090 = vmatprep.subr.bf16.mxu0 %v3385_v18 }
 0x81b   :  { %3092 = vmatpush3.bf16.msra.mxu0 %v3552_v9 }
 0x81c   :  { %3093 = vmatprep.subr.bf16.mxu0 %v3385_v18 }
 0x8df   :  { %v782_v11 = vpop.f32.mrb[6].mxu1 }
 0x8e0   :  { %v786_v12 = vadd.f32 %v782_v11, %v156_v10  ;;  %v2882_v13 = vpop.f32.mrb[7].mxu1 }
 0x8e1   :  { %v685_v14 = vpop.f32.mrb[10].mxu0 }
 0x8e2   :  { %v2560_v15 = vmul.f32 -1.442695, %v786_v12  ;;  %v686_v17 = vadd.f32 %v3504_v33, %v685_v14  ;;  %v2871_v26 = vpop.f32.mrb[11].mxu0 }
 0x8e4   :  { %3286 = vpow2.f32 %v2560_v15  ;;  %v2557_v27 = vmul.f32 -1.442695, %v686_v17 }
 0x8e6   :  { %3288 = vpow2.f32 %v2557_v27 }
 0x8ee   :  { %v3287_v29 = vpop.eup %3286 }
 0x8ef   :  { %v790_v30 = vadd.f32 1.0, %v3287_v29 }
 0x8f0   :  { %v3289_v31 = vpop.eup %3288 }
 0x8f1   :  { %3290 = vrcp.f32 %v790_v30  ;;  %v692_v34 = vadd.f32 1.0, %v3289_v31 }
 0x8f3   :  { %3292 = vrcp.f32 %v692_v34 }
 0x8fb   :  { %v3291_v35 = vpop.eup %3290 }
 0x8fc   :  { %v793_v36 = vmul.f32 2.0, %v3291_v35  ;;  %v795_v44 = vmul.f32 %v3291_v35, %v3606_v60 }
 0x8fd   :  { %v3293_v16 = vpop.eup %3292 }
 0x8fe   :  { %v2561_v37 = vadd.f32 -1.0, %v793_v36  ;;  %v695_v38 = vmul.f32 2.0, %v3293_v16  ;;  %v697_v47 = vmul.f32 %v3293_v16, %v3608_v63 }
 0x900   :  { %797 = vrot.lane.b32.xlu1 %v2561_v37, %s3384_s23  ;;  %v2558_v39 = vadd.f32 -1.0, %v695_v38 }
 0x902   :  { %699 = vrot.lane.b32.xlu0 %v2558_v39, %s3384_s23 }
 0x972   :  { %v798_v40 = vpop.permute.xlu1 %797 }
 0x973   :  { %v800_v41 = vmul.f32 %v3291_v35, %v798_v40 }
 0x974   :  { %v700_v42 = vpop.permute.xlu0 %699 }
 0x975   :  { %v702_v43 = vmul.f32 %v3293_v16, %v700_v42  ;;  %802 = vrot.lane.b32.xlu1 %v800_v41, %s3389_s7 }
 0x977   :  { %704 = vrot.lane.b32.xlu0 %v702_v43, %s3389_s7 }
 0x9e7   :  { %v803_v45 = vpop.permute.xlu1 %802 }
 0x9e8   :  { %v3643_v46 = vadd.f32 %v803_v45, %v795_v44 }
 0x9e9   :  { %v705_v48 = vpop.permute.xlu0 %704 }
 0x9ea   :  { %3294 = vtanh.f32 %v3643_v46  ;;  %v707_v49 = vadd.f32 %v705_v48, %v697_v47 }
 0x9ec   :  { %3296 = vtanh.f32 %v707_v49 }
 0x9f4   :  { %v3295_v50 = vpop.eup %3294 }
 0x9f5   :  { %808 = vrot.lane.b32.xlu1 %v3295_v50, %s3384_s23 }
 0x9f6   :  { %v3297_v51 = vpop.eup %3296 }
 0x9f7   :  { %710 = vrot.lane.b32.xlu0 %v3297_v51, %s3384_s23 }
 0xa67   :  { %v809_v52 = vpop.permute.xlu1 %808 }
 0xa68   :  { %v811_v53 = vmul.f32 %v3291_v35, %v809_v52 }
 0xa69   :  { %v711_v54 = vpop.permute.xlu0 %710 }
 0xa6a   :  { %v713_v55 = vmul.f32 %v3293_v16, %v711_v54  ;;  %813 = vrot.lane.b32.xlu0 %v811_v53, %s3389_s7 }
 0xa6c   :  { %817 = vrot.lane.b32.xlu1 %v713_v55, %s3384_s23 }
 0xadc   :  { %v814_v57 = vpop.permute.xlu0 %813 }
 0xade   :  { %v818_v58 = vpop.permute.xlu1 %817 }
 0xadf   :  { %v820_v59 = vsel %vm205_vm3, %v814_v57, %v818_v58 }
 0xae0   :  { %2900 = vmatmul.mubr.msk.f32.vlgmr.msra.gmra.mrb[12].mxu0 %vm4271_vm4, %v820_v59 }
 0xae1   :  { %3095 = vmatpush3.bf16.msra.mxu0 %v3477_v28  ;;  %2910 = vmatprep.mubr.msk.f32.mxu0 %vm3386_vm2, %v3387_v21 }
 0xae2   :  { %3096 = vmatprep.subr.bf16.mxu0 %v3385_v18 }
 0xae5   :  { %3098 = vmatpush3.bf16.msra.mxu0 %v3487_v32 }
 0xae6   :  { %3099 = vmatprep.subr.bf16.mxu0 %v3385_v18 }
 0xae8   :  { %2911 = vmatmul.mubr.msk.f32.vlgmr.msra.gmra.mrb[14].mxu0 %vm205_vm3, %v814_v57 }
 0xae9   :  { %3101 = vmatpush3.bf16.msra.mxu0 %v3450_v19  ;;  %2929 = vmatprep.mubr.msk.f32.mxu0 %vm3386_vm2, %v3387_v21 }
 0xaea   :  { %3102 = vmatprep.subr.bf16.mxu0 %v3385_v18 }
 0xaed   :  { %3104 = vmatpush3.bf16.msra.mxu0 %v3459_v22 }
 0xaee   :  { %3105 = vmatprep.subr.bf16.mxu0 %v3385_v18 }
 0xaf1   :  { %3107 = vmatpush3.bf16.msra.mxu0 %v3536_v4 }
 0xaf2   :  { %3108 = vmatprep.subr.bf16.mxu0 %v3385_v18 }
 0xaf5   :  { %3110 = vmatpush3.bf16.msra.mxu0 %v3552_v9 }
 0xaf6   :  { %3129 = vmatprep.subr.bf16.mxu0 %v3385_v18 }
 0xbb3   :  { %v890_v60 = vpop.f32.mrb[12].mxu0 }
 0xbb4   :  { %v891_v62 = vadd.f32 %v3504_v33, %v890_v60  ;;  %v2901_v63 = vpop.f32.mrb[13].mxu0 }
 0xbb6   :  { %v2563_v56 = vmul.f32 -1.442695, %v891_v62 }
 0xbb8   :  { %3298 = vpow2.f32 %v2563_v56 }
 0xbbb   :  { %v987_v1 = vpop.f32.mrb[14].mxu0 }
 0xbbc   :  { %v991_v2 = vadd.f32 %v987_v1, %v161_v0  ;;  %v2912_v61 = vpop.f32.mrb[15].mxu0 }
 0xbbe   :  { %v2566_v5 = vmul.f32 -1.442695, %v991_v2 }
 0xbc0   :  { %3300 = vpow2.f32 %v2566_v5 }
 0xbc2   :  { %v3299_v6 = vpop.eup %3298 }
 0xbc3   :  { %v897_v7 = vadd.f32 1.0, %v3299_v6 }
 0xbc5   :  { %3302 = vrcp.f32 %v897_v7 }
 0xbca   :  { %v3301_v8 = vpop.eup %3300 }
 0xbcb   :  { %v995_v10 = vadd.f32 1.0, %v3301_v8 }
 0xbcd   :  { %3304 = vrcp.f32 %v995_v10 }
 0xbcf   :  { %v3303_v11 = vpop.eup %3302 }
 0xbd0   :  { %v900_v12 = vmul.f32 2.0, %v3303_v11  ;;  %v902_v30 = vmul.f32 %v3303_v11, %v707_v49 }
 0xbd2   :  { %v2564_v13 = vadd.f32 -1.0, %v900_v12 }
 0xbd4   :  { %904 = vrot.lane.b32.xlu0 %v2564_v13, %s3384_s23 }
 0xbd7   :  { %v3305_v14 = vpop.eup %3304 }
 0xbd8   :  { %v998_v15 = vmul.f32 2.0, %v3305_v14  ;;  %v1000_v35 = vmul.f32 %v3305_v14, %v3643_v46  ;;  %v166_v46 = vadd.f32 %v3570_v20, %v3434_v3 }
 0xbda   :  { %v2567_v17 = vadd.f32 -1.0, %v998_v15 }
 0xbdc   :  { %1002 = vrot.lane.b32.xlu1 %v2567_v17, %s3384_s23 }
 0xc46   :  { %v905_v23 = vpop.permute.xlu0 %904 }
 0xc47   :  { %v907_v26 = vmul.f32 %v3303_v11, %v905_v23 }
 0xc49   :  { %909 = vrot.lane.b32.xlu0 %v907_v26, %s3389_s7 }
 0xc4e   :  { %v1003_v27 = vpop.permute.xlu1 %1002 }
 0xc4f   :  { %v1005_v29 = vmul.f32 %v3305_v14, %v1003_v27 }
 0xc51   :  { %1007 = vrot.lane.b32.xlu1 %v1005_v29, %s3389_s7 }
 0xcbb   :  { %v910_v31 = vpop.permute.xlu0 %909 }
 0xcbc   :  { %v3677_v34 = vadd.f32 %v910_v31, %v902_v30 }
 0xcbe   :  { %3306 = vtanh.f32 %v3677_v34 }
 0xcc3   :  { %v1008_v36 = vpop.permute.xlu1 %1007 }
 0xcc4   :  { %v1010_v16 = vadd.f32 %v1008_v36, %v1000_v35 }
 0xcc6   :  { %3308 = vtanh.f32 %v1010_v16 }
 0xcc8   :  { %v3307_v37 = vpop.eup %3306 }
 0xcc9   :  { %915 = vrot.lane.b32.xlu0 %v3307_v37, %s3384_s23 }
 0xcd0   :  { %v3309_v38 = vpop.eup %3308 }
 0xcd1   :  { %1013 = vrot.lane.b32.xlu1 %v3309_v38, %s3384_s23 }
 0xd3b   :  { %v916_v39 = vpop.permute.xlu0 %915 }
 0xd3c   :  { %v918_v40 = vmul.f32 %v3303_v11, %v916_v39 }
 0xd3e   :  { %1022 = vrot.lane.b32.xlu1 %v918_v40, %s3384_s23 }
 0xd43   :  { %v1014_v41 = vpop.permute.xlu1 %1013 }
 0xd44   :  { %v1016_v42 = vmul.f32 %v3305_v14, %v1014_v41 }
 0xd46   :  { %1018 = vrot.lane.b32.xlu0 %v1016_v42, %s3389_s7 }
 0xdb0   :  { %v1023_v43 = vpop.permute.xlu1 %1022 }
 0xdb8   :  { %v1019_v44 = vpop.permute.xlu0 %1018 }
 0xdb9   :  { %v1025_v45 = vsel %vm205_vm3, %v1019_v44, %v1023_v43  ;;  %2941 = vmatmul.mubr.msk.f32.vlgmr.msra.gmra.mrb[8].mxu1 %vm205_vm3, %v1019_v44 }
 0xdba   :  { %2930 = vmatmul.mubr.msk.f32.vlgmr.msra.gmra.mrb[16].mxu0 %vm4271_vm4, %v1025_v45  ;;  %3119 = vmatpush3.bf16.msra.mxu1 %v3450_v19 }
 0xdbb   :  { %3120 = vmatprep.subr.bf16.mxu1 %v3385_v18  ;;  %3131 = vmatpush3.bf16.msra.mxu0 %v3477_v28 }
 0xdbc   :  { %3132 = vmatprep.subr.bf16.mxu0 %v3385_v18  ;;  %2970 = vmatprep.mubr.msk.f32.mxu0 %vm3386_vm2, %v3387_v21 }
 0xdbd   :  { %2959 = vmatprep.mubr.msk.f32.mxu1 %vm3386_vm2, %v3387_v21 }
 0xdbe   :  { %3122 = vmatpush3.bf16.msra.mxu1 %v3459_v22 }
 0xdbf   :  { %3123 = vmatprep.subr.bf16.mxu1 %v3385_v18  ;;  %3134 = vmatpush3.bf16.msra.mxu0 %v3487_v32 }
 0xdc0   :  { %3135 = vmatprep.subr.bf16.mxu0 %v3385_v18 }
 0xdc2   :  { %3125 = vmatpush3.bf16.msra.mxu1 %v3536_v4 }
 0xdc3   :  { %3126 = vmatprep.subr.bf16.mxu1 %v3385_v18 }
 0xdc6   :  { %3128 = vmatpush3.bf16.msra.mxu1 %v3552_v9 }
 0xdc7   :  { %3147 = vmatprep.subr.bf16.mxu1 %v3385_v18 }
 0xe8c   :  { %v1192_v47 = vpop.f32.mrb[8].mxu1 }
 0xe8d   :  { %v1196_v48 = vadd.f32 %v1192_v47, %v166_v46  ;;  %v1095_v49 = vpop.f32.mrb[16].mxu0  ;;  %v2942_v50 = vpop.f32.mrb[9].mxu1 }
 0xe8e   :  { %v1096_v51 = vadd.f32 %v3504_v33, %v1095_v49  ;;  %v2931_v52 = vpop.f32.mrb[17].mxu0 }
 0xe8f   :  { %v2572_v53 = vmul.f32 -1.442695, %v1196_v48 }
 0xe90   :  { %v2569_v54 = vmul.f32 -1.442695, %v1096_v51 }
 0xe91   :  { %3310 = vpow2.f32 %v2572_v53 }
 0xe92   :  { %3312 = vpow2.f32 %v2569_v54 }
 0xe9b   :  { %v3311_v55 = vpop.eup %3310 }
 0xe9c   :  { %v3313_v57 = vpop.eup %3312  ;;  %v1200_v58 = vadd.f32 1.0, %v3311_v55 }
 0xe9d   :  { %v1102_v59 = vadd.f32 1.0, %v3313_v57 }
 0xe9e   :  { %3314 = vrcp.f32 %v1200_v58 }
 0xe9f   :  { %3316 = vrcp.f32 %v1102_v59 }
 0xea8   :  { %v3315_v60 = vpop.eup %3314 }
 0xea9   :  { %v3317_v62 = vpop.eup %3316  ;;  %v1203_v20 = vmul.f32 2.0, %v3315_v60  ;;  %v1205_v6 = vmul.f32 %v3315_v60, %v1010_v16 }
 0xeaa   :  { %v1105_v63 = vmul.f32 2.0, %v3317_v62  ;;  %v1107_v8 = vmul.f32 %v3317_v62, %v3677_v34 }
 0xeab   :  { %v2573_v56 = vadd.f32 -1.0, %v1203_v20 }
 0xeac   :  { %v2570_v0 = vadd.f32 -1.0, %v1105_v63 }
 0xead   :  { %1207 = vrot.lane.b32.xlu1 %v2573_v56, %s3384_s23 }
 0xeae   :  { %1109 = vrot.lane.b32.xlu0 %v2570_v0, %s3384_s23 }
 0xf1f   :  { %v1208_v1 = vpop.permute.xlu1 %1207 }
 0xf20   :  { %v1210_v2 = vmul.f32 %v3315_v60, %v1208_v1  ;;  %v1110_v61 = vpop.permute.xlu0 %1109 }
 0xf21   :  { %v1112_v5 = vmul.f32 %v3317_v62, %v1110_v61 }
 0xf22   :  { %1212 = vrot.lane.b32.xlu1 %v1210_v2, %s3389_s7 }
 0xf23   :  { %1114 = vrot.lane.b32.xlu0 %v1112_v5, %s3389_s7 }
 0xf94   :  { %v1213_v7 = vpop.permute.xlu1 %1212 }
 0xf95   :  { %v3712_v10 = vadd.f32 %v1213_v7, %v1205_v6  ;;  %v1115_v11 = vpop.permute.xlu0 %1114 }
 0xf96   :  { %v3714_v12 = vadd.f32 %v1115_v11, %v1107_v8 }
 0xf97   :  { %3318 = vtanh.f32 %v3712_v10 }
 0xf98   :  { %3320 = vtanh.f32 %v3714_v12 }
 0xfa1   :  { %v3319_v13 = vpop.eup %3318 }
 0xfa2   :  { %v3321_v14 = vpop.eup %3320  ;;  %1218 = vrot.lane.b32.xlu1 %v3319_v13, %s3384_s23 }
 0xfa3   :  { %1120 = vrot.lane.b32.xlu0 %v3321_v14, %s3384_s23 }
0x1014   :  { %v1219_v15 = vpop.permute.xlu1 %1218 }
0x1015   :  { %v1221_v17 = vmul.f32 %v3315_v60, %v1219_v15  ;;  %v1121_v23 = vpop.permute.xlu0 %1120 }
0x1016   :  { %v1123_v26 = vmul.f32 %v3317_v62, %v1121_v23 }
0x1017   :  { %1223 = vrot.lane.b32.xlu0 %v1221_v17, %s3389_s7 }
0x1018   :  { %1227 = vrot.lane.b32.xlu1 %v1123_v26, %s3384_s23 }
0x1089   :  { %v1224_v27 = vpop.permute.xlu0 %1223 }
0x108a   :  { %v1228_v29 = vpop.permute.xlu1 %1227  ;;  %2971 = vmatmul.mubr.msk.f32.vlgmr.msra.gmra.mrb[18].mxu0 %vm205_vm3, %v1224_v27 }
0x108b   :  { %v1230_v30 = vsel %vm205_vm3, %v1224_v27, %v1228_v29  ;;  %3137 = vmatpush3.bf16.msra.mxu0 %v3450_v19  ;;  %2989 = vmatprep.mubr.msk.f32.mxu0 %vm3386_vm2, %v3387_v21 }
0x108c   :  { %2960 = vmatmul.mubr.msk.f32.vlgmr.msra.gmra.mrb[10].mxu1 %vm4271_vm4, %v1230_v30  ;;  %3138 = vmatprep.subr.bf16.mxu0 %v3385_v18 }
0x108d   :  { %3149 = vmatpush3.bf16.msra.mxu1 %v3477_v28  ;;  %3000 = vmatprep.mubr.msk.f32.mxu1 %vm3386_vm2, %v3387_v21  ;;  %v171_v28 = vadd.f32 %v3434_v3, %v3576_v25 }
0x108e   :  { %3150 = vmatprep.subr.bf16.mxu1 %v3385_v18 }
0x108f   :  { %3140 = vmatpush3.bf16.msra.mxu0 %v3459_v22 }
0x1090   :  { %3141 = vmatprep.subr.bf16.mxu0 %v3385_v18 }
0x1091   :  { %3152 = vmatpush3.bf16.msra.mxu1 %v3487_v32 }
0x1092   :  { %3153 = vmatprep.subr.bf16.mxu1 %v3385_v18 }
0x1093   :  { %3143 = vmatpush3.bf16.msra.mxu0 %v3536_v4 }
0x1094   :  { %3144 = vmatprep.subr.bf16.mxu0 %v3385_v18 }
0x1097   :  { %3146 = vmatpush3.bf16.msra.mxu0 %v3552_v9 }
0x115d   :  { %v1397_v31 = vpop.f32.mrb[18].mxu0 }
0x115e   :  { %v1401_v34 = vadd.f32 %v1397_v31, %v171_v28  ;;  %v2972_v35 = vpop.f32.mrb[19].mxu0 }
0x115f   :  { %v1300_v36 = vpop.f32.mrb[10].mxu1 }
0x1160   :  { %v2578_v16 = vmul.f32 -1.442695, %v1401_v34  ;;  %v1301_v37 = vadd.f32 %v3504_v33, %v1300_v36  ;;  %v2961_v38 = vpop.f32.mrb[11].mxu1 }
0x1162   :  { %3322 = vpow2.f32 %v2578_v16  ;;  %v2575_v32 = vmul.f32 -1.442695, %v1301_v37 }
0x1164   :  { %3324 = vpow2.f32 %v2575_v32 }
0x116c   :  { %v3323_v39 = vpop.eup %3322 }
0x116d   :  { %v1405_v40 = vadd.f32 1.0, %v3323_v39 }
0x116e   :  { %v3325_v41 = vpop.eup %3324 }
0x116f   :  { %3326 = vrcp.f32 %v1405_v40  ;;  %v1307_v42 = vadd.f32 1.0, %v3325_v41 }
0x1171   :  { %3328 = vrcp.f32 %v1307_v42 }
0x1179   :  { %v3327_v43 = vpop.eup %3326 }
0x117a   :  { %v1408_v44 = vmul.f32 2.0, %v3327_v43  ;;  %v1410_v52 = vmul.f32 %v3327_v43, %v3712_v10 }
0x117b   :  { %v3329_v25 = vpop.eup %3328 }
0x117c   :  { %v2579_v45 = vadd.f32 -1.0, %v1408_v44  ;;  %v1310_v46 = vmul.f32 2.0, %v3329_v25  ;;  %v1312_v55 = vmul.f32 %v3329_v25, %v3714_v12 }
0x117e   :  { %1412 = vrot.lane.b32.xlu1 %v2579_v45, %s3384_s23  ;;  %v2576_v47 = vadd.f32 -1.0, %v1310_v46 }
0x1180   :  { %1314 = vrot.lane.b32.xlu0 %v2576_v47, %s3384_s23 }
0x11f0   :  { %v1413_v48 = vpop.permute.xlu1 %1412 }
0x11f1   :  { %v1415_v49 = vmul.f32 %v3327_v43, %v1413_v48 }
0x11f2   :  { %v1315_v50 = vpop.permute.xlu0 %1314 }
0x11f3   :  { %v1317_v51 = vmul.f32 %v3329_v25, %v1315_v50  ;;  %1417 = vrot.lane.b32.xlu1 %v1415_v49, %s3389_s7 }
0x11f5   :  { %1319 = vrot.lane.b32.xlu0 %v1317_v51, %s3389_s7 }
0x1265   :  { %v1418_v53 = vpop.permute.xlu1 %1417 }
0x1266   :  { %v1420_v54 = vadd.f32 %v1418_v53, %v1410_v52 }
0x1267   :  { %v1320_v57 = vpop.permute.xlu0 %1319 }
0x1268   :  { %3330 = vtanh.f32 %v1420_v54  ;;  %v1322_v58 = vadd.f32 %v1320_v57, %v1312_v55 }
0x126a   :  { %3332 = vtanh.f32 %v1322_v58 }
0x1272   :  { %v3331_v59 = vpop.eup %3330 }
0x1273   :  { %1423 = vrot.lane.b32.xlu1 %v3331_v59, %s3384_s23  ;;  %v2006_v59 = vld [vmem:[%s4268_s2 + $0x80] sm:$0xff] }
0x1274   :  { %v3333_v60 = vpop.eup %3332 }
0x1275   :  { %1325 = vrot.lane.b32.xlu0 %v3333_v60, %s3384_s23  ;;  %v2007_v60 = vld [vmem:[%s4268_s2 + $0x88] sm:$0xff] }
0x12e5   :  { %v1424_v62 = vpop.permute.xlu1 %1423 }
0x12e6   :  { %v1426_v20 = vmul.f32 %v3327_v43, %v1424_v62  ;;  %v1990_v62 = vld [vmem:[%s4268_s2] sm:$0xff] }
0x12e7   :  { %v1326_v63 = vpop.permute.xlu0 %1325 }
0x12e8   :  { %v1328_v56 = vmul.f32 %v3329_v25, %v1326_v63  ;;  %1428 = vrot.lane.b32.xlu0 %v1426_v20, %s3389_s7  ;;  %v3165_v20 = vpack.c.bf16 %v2007_v60, %v2006_v59  ;;  %v1991_v63 = vld [vmem:[%s4268_s2 + $0x8] sm:$0xff] }
0x12ea   :  { %1432 = vrot.lane.b32.xlu1 %v1328_v56, %s3384_s23  ;;  %v2008_v56 = vld [vmem:[%s4268_s2 + $0x90] sm:$0xff]  ;;  %3166 = vmatprep.subr.bf16.mxu0 %v3165_v20 }
0x135a   :  { %v1429_v0 = vpop.permute.xlu0 %1428 }
0x135b   :  { %3001 = vmatmul.mubr.msk.f32.vlgmr.msra.gmra.mrb[12].mxu1 %vm205_vm3, %v1429_v0 }
0x135c   :  { %v1433_v1 = vpop.permute.xlu1 %1432  ;;  %3155 = vmatpush3.bf16.msra.mxu1 %v3450_v19  ;;  %3019 = vmatprep.mubr.msk.f32.mxu1 %vm3386_vm2, %v3387_v21  ;;  %v176_v19 = vadd.f32 %v3574_v24, %v3434_v3 }
0x135d   :  { %v1435_v2 = vsel %vm205_vm3, %v1429_v0, %v1433_v1  ;;  %3156 = vmatprep.subr.bf16.mxu1 %v3385_v18  ;;  %v2009_v0 = vld [vmem:[%s4268_s2 + $0x98] sm:$0xff]  ;;  %v3167_v1 = vpack.c.bf16 %v1991_v63, %v1990_v62 }
0x135e   :  { %2990 = vmatmul.mubr.msk.f32.vlgmr.msra.gmra.mrb[20].mxu0 %vm4271_vm4, %v1435_v2  ;;  %v3169_v2 = vpack.c.bf16 %v2009_v0, %v2008_v56 }
0x135f   :  { %3168 = vmatpush3.bf16.msra.mxu0 %v3167_v1 }
0x1360   :  { %3158 = vmatpush3.bf16.msra.mxu1 %v3459_v22  ;;  %3170 = vmatprep.subr.bf16.mxu0 %v3169_v2 }
0x1361   :  { %3159 = vmatprep.subr.bf16.mxu1 %v3385_v18 }
0x1364   :  { %3161 = vmatpush3.bf16.msra.mxu1 %v3536_v4 }
0x1365   :  { %3162 = vmatprep.subr.bf16.mxu1 %v3385_v18 }
0x1368   :  { %3164 = vmatpush3.bf16.msra.mxu1 %v3552_v9 }
0x1369   :  { %3197 = vmatprep.subr.bf16.mxu1 %v3385_v18 }
0x142e   :  { %v1602_v61 = vpop.f32.mrb[12].mxu1 }
0x142f   :  { %v1606_v5 = vadd.f32 %v1602_v61, %v176_v19  ;;  %v3002_v6 = vpop.f32.mrb[13].mxu1  ;;  %v1992_v19 = vld [vmem:[%s4268_s2 + $0x10] sm:$0xff]  ;;  %v1993_v61 = vld [vmem:[%s4268_s2 + $0x18] sm:$0xff] }
0x1430   :  { %v2011_v6 = vld [vmem:[%s4268_s2 + $0xa8] sm:$0xff] }
0x1431   :  { %v2584_v7 = vmul.f32 -1.442695, %v1606_v5  ;;  %v1505_v8 = vpop.f32.mrb[20].mxu0  ;;  %v2010_v5 = vld [vmem:[%s4268_s2 + $0xa0] sm:$0xff] }
0x1432   :  { %v1506_v22 = vadd.f32 %v3504_v33, %v1505_v8  ;;  %v2991_v10 = vpop.f32.mrb[21].mxu0  ;;  %v2023_v8 = vld [vmem:[%s4268_s2 + $0x108] sm:$0xff] }
0x1433   :  { %3334 = vpow2.f32 %v2584_v7  ;;  %v2022_v7 = vld [vmem:[%s4268_s2 + $0x100] sm:$0xff] }
0x1434   :  { %v2581_v11 = vmul.f32 -1.442695, %v1506_v22  ;;  %v3171_v22 = vpack.c.bf16 %v1993_v61, %v1992_v19  ;;  %v3198_v10 = vpack.c.bf16 %v2023_v8, %v2022_v7 }
0x1436   :  { %3336 = vpow2.f32 %v2581_v11  ;;  %v3173_v11 = vpack.c.bf16 %v2011_v6, %v2010_v5  ;;  %3172 = vmatpush3.bf16.msra.mxu0 %v3171_v22 }
0x1438   :  { %3174 = vmatprep.subr.bf16.mxu0 %v3173_v11 }
0x143d   :  { %v3335_v4 = vpop.eup %3334 }
0x143e   :  { %v1610_v12 = vadd.f32 1.0, %v3335_v4  ;;  %v1994_v4 = vld [vmem:[%s4268_s2 + $0x20] sm:$0xff] }
0x1440   :  { %v3337_v13 = vpop.eup %3336  ;;  %3338 = vrcp.f32 %v1610_v12  ;;  %v1995_v12 = vld [vmem:[%s4268_s2 + $0x28] sm:$0xff] }
0x1441   :  { %v1512_v9 = vadd.f32 1.0, %v3337_v13  ;;  %v3175_v13 = vpack.c.bf16 %v1995_v12, %v1994_v4 }
0x1443   :  { %3340 = vrcp.f32 %v1512_v9  ;;  %3176 = vmatpush3.bf16.msra.mxu0 %v3175_v13 }
0x144a   :  { %v3339_v14 = vpop.eup %3338 }
0x144b   :  { %v1613_v15 = vmul.f32 2.0, %v3339_v14  ;;  %v1615_v28 = vmul.f32 %v3339_v14, %v1420_v54 }
0x144d   :  { %v3341_v3 = vpop.eup %3340  ;;  %v2585_v24 = vadd.f32 -1.0, %v1613_v15 }
0x144e   :  { %v1515_v17 = vmul.f32 2.0, %v3341_v3  ;;  %v1517_v35 = vmul.f32 %v3341_v3, %v1322_v58 }
0x144f   :  { %1617 = vrot.lane.b32.xlu1 %v2585_v24, %s3384_s23 }
0x1450   :  { %v2582_v23 = vadd.f32 -1.0, %v1515_v17 }
0x1452   :  { %1519 = vrot.lane.b32.xlu0 %v2582_v23, %s3384_s23 }
0x14c1   :  { %v1618_v26 = vpop.permute.xlu1 %1617 }
0x14c2   :  { %v1620_v27 = vmul.f32 %v3339_v14, %v1618_v26 }
0x14c4   :  { %1622 = vrot.lane.b32.xlu1 %v1620_v27, %s3389_s7  ;;  %v1520_v29 = vpop.permute.xlu0 %1519 }
0x14c5   :  { %v1522_v30 = vmul.f32 %v3341_v3, %v1520_v29 }
0x14c7   :  { %1524 = vrot.lane.b32.xlu0 %v1522_v30, %s3389_s7 }
0x1536   :  { %v1623_v31 = vpop.permute.xlu1 %1622 }
0x1537   :  { %v1625_v34 = vadd.f32 %v1623_v31, %v1615_v28 }
0x1539   :  { %3342 = vtanh.f32 %v1625_v34  ;;  %v1525_v36 = vpop.permute.xlu0 %1524 }
0x153a   :  { %v1527_v16 = vadd.f32 %v1525_v36, %v1517_v35 }
0x153c   :  { %3344 = vtanh.f32 %v1527_v16 }
0x1543   :  { %v3343_v37 = vpop.eup %3342 }
0x1544   :  { %1628 = vrot.lane.b32.xlu1 %v3343_v37, %s3384_s23 }
0x1546   :  { %v3345_v38 = vpop.eup %3344 }
0x1547   :  { %1530 = vrot.lane.b32.xlu0 %v3345_v38, %s3384_s23 }
0x15b6   :  { %v1629_v32 = vpop.permute.xlu1 %1628 }
0x15b7   :  { %v1631_v39 = vmul.f32 %v3339_v14, %v1629_v32 }
0x15b9   :  { %1633 = vrot.lane.b32.xlu0 %v1631_v39, %s3389_s7  ;;  %v1531_v40 = vpop.permute.xlu0 %1530 }
0x15ba   :  { %v1533_v41 = vmul.f32 %v3341_v3, %v1531_v40 }
0x15bc   :  { %1637 = vrot.lane.b32.xlu1 %v1533_v41, %s3384_s23 }
0x162b   :  { %v1634_v42 = vpop.permute.xlu0 %1633 }
0x162e   :  { %v1638_v43 = vpop.permute.xlu1 %1637 }
0x162f   :  { %v1640_v44 = vsel %vm205_vm3, %v1634_v42, %v1638_v43 }
0x1630   :  { %3020 = vmatmul.mubr.msk.f32.vlgmr.msra.gmra.mrb[14].mxu1 %vm4271_vm4, %v1640_v44 }
0x1631   :  { %3030 = vmatprep.mubr.msk.f32.mxu1 %vm3386_vm2, %v3387_v21  ;;  %3199 = vmatpush3.bf16.msra.mxu1 %v3198_v10 }
0x1632   :  { %3200 = vmatprep.subr.bf16.mxu1 %v3385_v18 }
0x1703   :  { %v1710_v25 = vpop.f32.mrb[14].mxu1 }
0x1704   :  { %v1711_v45 = vadd.f32 %v3504_v33, %v1710_v25  ;;  %v3021_v46 = vpop.f32.mrb[15].mxu1 }
0x1706   :  { %v2587_v47 = vmul.f32 -1.442695, %v1711_v45 }
0x1708   :  { %3346 = vpow2.f32 %v2587_v47 }
0x1712   :  { %v3347_v48 = vpop.eup %3346 }
0x1713   :  { %v1717_v49 = vadd.f32 1.0, %v3347_v48 }
0x1715   :  { %3348 = vrcp.f32 %v1717_v49 }
0x171f   :  { %v3349_v50 = vpop.eup %3348 }
0x1720   :  { %v1720_v51 = vmul.f32 2.0, %v3349_v50  ;;  %v1722_v55 = vmul.f32 %v3349_v50, %v1527_v16 }
0x1722   :  { %v2588_v52 = vadd.f32 -1.0, %v1720_v51 }
0x1724   :  { %1724 = vrot.lane.b32.xlu0 %v2588_v52, %s3384_s23 }
0x1796   :  { %v1725_v53 = vpop.permute.xlu0 %1724 }
0x1797   :  { %v1727_v54 = vmul.f32 %v3349_v50, %v1725_v53 }
0x1799   :  { %1729 = vrot.lane.b32.xlu1 %v1727_v54, %s3389_s7 }
0x180b   :  { %v1730_v57 = vpop.permute.xlu1 %1729 }
0x180c   :  { %v1732_v58 = vadd.f32 %v1730_v57, %v1722_v55 }
0x180e   :  { %3350 = vtanh.f32 %v1732_v58 }
0x1818   :  { %v3351_v33 = vpop.eup %3350 }
0x1819   :  { %1735 = vrot.lane.b32.xlu0 %v3351_v33, %s3384_s23 }
0x188b   :  { %v1736_v9 = vpop.permute.xlu0 %1735 }
0x188c   :  { %v3828_v14 = vmul.f32 %v3349_v50, %v1736_v9 }
0x188e   :  { %vm1746_vm5 = vcmp.ge.f32.partialorder %v3828_v14, -2.2  ;;  %vm1747_vm6 = vcmp.lt.f32.partialorder %v3828_v14, -1.8  ;;  %vm1751_vm7 = vcmp.ge.f32.partialorder %v3828_v14, -1.8 }
0x188f   :  { %vm1748_vm8 = vmand %vm1746_vm5, %vm1747_vm6  ;;  %vm1752_vm9 = vcmp.lt.f32.partialorder %v3828_v14, -1.4  ;;  %vm1756_vm10 = vcmp.ge.f32.partialorder %v3828_v14, -1.4  ;;  %vm1757_vm11 = vcmp.lt.f32.partialorder %v3828_v14, -1.0  ;;  %vm1761_vm12 = vcmp.ge.f32.partialorder %v3828_v14, -1.0 }
0x1890   :  { %vm1753_vm13 = vmand %vm1751_vm7, %vm1752_vm9  ;;  %vm1762_vm14 = vcmp.lt.f32.partialorder %v3828_v14, -0.6  ;;  %vm1766_vm15 = vcmp.ge.f32.partialorder %v3828_v14, -0.6  ;;  %vm1767_vm1 = vcmp.lt.f32.partialorder %v3828_v14, -0.19999999 }
0x1891   :  { %vm1758_vm0 = vmand %vm1756_vm10, %vm1757_vm11  ;;  %vm1771_vm2 = vcmp.ge.f32.partialorder %v3828_v14, -0.19999999  ;;  %v1811_v15 = vsub.f32 -1.0, %v3828_v14  ;;  %v2590_v3 = vsel %vm1748_vm8, 1.0, %v3387_v21  ;;  %vm1772_vm6 = vcmp.lt.f32.partialorder %v3828_v14, 0.20000005 }
0x1892   :  { %vm1763_vm5 = vmand %vm1761_vm12, %vm1762_vm14  ;;  %vm1776_vm4 = vcmp.ge.f32.partialorder %v3828_v14, 0.20000005  ;;  %vm1782_vm7 = vcmp.lt.f32.partialorder %v3828_v14, 1.0  ;;  %v2591_v24 = vsel %vm1753_vm13, 1.0, %v3387_v21  ;;  %v2592_v17 = vsel %vm1758_vm0, 1.0, %v3387_v21 }
0x1893   :  { %vm1768_vm9 = vmand %vm1766_vm15, %vm1767_vm1  ;;  %vm1777_vm10 = vcmp.lt.f32.partialorder %v3828_v14, 0.6  ;;  %vm1781_vm11 = vcmp.ge.f32.partialorder %v3828_v14, 0.6  ;;  %v3851_v23 = vsel %vm1763_vm5, 1.0, %v3387_v21  ;;  %v3858_v29 = vsub.f32 1.0, %v3828_v14 }
0x1894   :  { %vm1773_vm8 = vmand %vm1771_vm2, %vm1772_vm6  ;;  %v3854_v26 = vadd.f32 2.2, %v3828_v14  ;;  %v1804_v27 = vsub.f32 -1.4, %v3828_v14  ;;  %v3861_v30 = vsel %vm1768_vm9, 1.0, %v3387_v21  ;;  %v3867_v34 = vadd.f32 -1.0, %v3828_v14 }
0x1895   :  { %vm1778_vm12 = vmand %vm1776_vm4, %vm1777_vm10  ;;  %v3864_v28 = vadd.f32 1.8, %v3828_v14  ;;  %v1812_v31 = vmul.f32 2.4999995, %v1811_v15  ;;  %v2595_v35 = vsel %vm1773_vm8, 1.0, %v3387_v21  ;;  %vm1786_vm4 = vcmp.ge.f32.partialorder %v3828_v14, 1.0 }
0x1896   :  { %v2596_v36 = vsel %vm1778_vm12, 1.0, %v3387_v21  ;;  %vm1783_vm13 = vmand %vm1781_vm11, %vm1782_vm7  ;;  %v1802_v16 = vmul.f32 2.4999995, %v3854_v26  ;;  %v1805_v37 = vmul.f32 2.4999995, %v1804_v27  ;;  %vm1985_vm9 = vcmask 785408  }
0x1897   :  { %v3875_v38 = vsel %vm1783_vm13, 1.0, %v3387_v21  ;;  %v1809_v32 = vmul.f32 2.4999995, %v3864_v28  ;;  %v1813_v39 = vmul.f32 %v2592_v17, %v1812_v31  ;;  %v3879_v40 = vadd.f32 1.4, %v3828_v14 }
0x1898   :  { %v1803_v41 = vmul.f32 %v2590_v3, %v1802_v16  ;;  %v1806_v42 = vmul.f32 %v2591_v24, %v1805_v37  ;;  %v1818_v43 = vsub.f32 -0.6, %v3828_v14  ;;  %v2605_v44 = vadd.f32 0.6, %v3828_v14 }
0x1899   :  { %v1810_v25 = vmul.f32 %v2591_v24, %v1809_v32  ;;  %v1816_v45 = vmul.f32 2.4999995, %v3879_v40  ;;  %v3885_v46 = vsub.f32 0.20000005, %v3828_v14  ;;  %v3888_v47 = vadd.f32 0.19999999, %v3828_v14 }
0x189a   :  { %v1807_v48 = vadd.f32 %v1806_v42, %v1803_v41  ;;  %v1819_v49 = vmul.f32 2.4999995, %v1818_v43  ;;  %v1830_v50 = vmul.f32 2.4999995, %v2605_v44  ;;  %v3891_v51 = vsub.f32 0.6, %v3828_v14 }
0x189b   :  { %v1814_v52 = vadd.f32 %v1813_v39, %v1810_v25  ;;  %v1817_v53 = vmul.f32 %v2592_v17, %v1816_v45  ;;  %v1833_v54 = vmul.f32 2.4999995, %v3885_v46  ;;  %v1837_v55 = vmul.f32 2.4999995, %v3888_v47 }
0x189c   :  { %v1820_v57 = vmul.f32 %v3851_v23, %v1819_v49  ;;  %v1831_v58 = vmul.f32 %v3861_v30, %v1830_v50  ;;  %v1840_v33 = vmul.f32 2.4999995, %v3891_v51  ;;  %v3900_v59 = vadd.f32 -0.20000005, %v3828_v14 }
0x189d   :  { %v1834_v60 = vmul.f32 %v2595_v35, %v1833_v54  ;;  %v1838_v62 = vmul.f32 %v2595_v35, %v1837_v55  ;;  %v1847_v20 = vmul.f32 2.4999995, %v3858_v29  ;;  %v1871_v63 = vmul.f32 1.2499999, %v3854_v26 }
0x189e   :  { %v3904_v56 = vadd.f32 %v1820_v57, %v1817_v53  ;;  %v1841_v0 = vmul.f32 %v2596_v36, %v1840_v33  ;;  %v1844_v1 = vmul.f32 2.4999995, %v3900_v59  ;;  %v1873_v2 = vmul.f32 1.2499999, %v1811_v15 }
0x189f   :  { %v3907_v19 = vadd.f32 %v1834_v60, %v1831_v58  ;;  %v1848_v61 = vmul.f32 %v3875_v38, %v1847_v20  ;;  %v1872_v5 = vmul.f32 %v1871_v63, %v1807_v48  ;;  %v1876_v6 = vmul.f32 1.2499999, %v3864_v28 }
0x18a0   :  { %v1842_v7 = vadd.f32 %v1841_v0, %v1838_v62  ;;  %v1845_v8 = vmul.f32 %v2596_v36, %v1844_v1  ;;  %v1874_v22 = vmul.f32 %v1873_v2, %v1814_v52  ;;  %v1878_v10 = vmul.f32 1.2499999, %v1818_v43 }
0x18a1   :  { %v1877_v11 = vmul.f32 %v1876_v6, %v1814_v52  ;;  %v1891_v4 = vmul.f32 1.2499999, %v2605_v44  ;;  %v1893_v12 = vmul.f32 1.2499999, %v3891_v51  ;;  %v1896_v13 = vmul.f32 1.2499999, %v3888_v47 }
0x18a2   :  { %v3913_v9 = vadd.f32 %v1848_v61, %v1845_v8  ;;  %v1875_v15 = vadd.f32 %v1874_v22, %v1872_v5  ;;  %v1879_v3 = vmul.f32 %v1878_v10, %v3904_v56  ;;  %v1898_v24 = vmul.f32 1.2499999, %v3858_v29 }
0x18a3   :  { %v1892_v17 = vmul.f32 %v1891_v4, %v3907_v19  ;;  %v1894_v27 = vmul.f32 %v1893_v12, %v1842_v7  ;;  %v1897_v31 = vmul.f32 %v1896_v13, %v1842_v7  ;;  %v1916_v35 = vmul.f32 0.8333333, %v3854_v26  ;;  %v2012_v26 = vld [vmem:[%s4268_s2 + $0xb0] sm:$0xff] }
0x18a4   :  { %v3919_v36 = vadd.f32 %v1879_v3, %v1877_v11  ;;  %v1899_v16 = vmul.f32 %v1898_v24, %v3913_v9  ;;  %v1918_v37 = vmul.f32 0.8333333, %v1818_v43  ;;  %v1936_v32 = vmul.f32 0.8333333, %v2605_v44 }
0x18a5   :  { %v3922_v39 = vadd.f32 %v1894_v27, %v1892_v17  ;;  %v1917_v41 = vmul.f32 %v1916_v35, %v1875_v15  ;;  %v1938_v42 = vmul.f32 0.8333333, %v3858_v29  ;;  %vm1787_vm14 = vcmp.lt.f32.partialorder %v3828_v14, 1.4000001  ;;  %v2013_v29 = vld [vmem:[%s4268_s2 + $0xb8] sm:$0xff] }
0x18a6   :  { %v3926_v25 = vadd.f32 %v1899_v16, %v1897_v31  ;;  %v1919_v45 = vmul.f32 %v1918_v37, %v3919_v36  ;;  %vm1788_vm15 = vmand %vm1786_vm4, %vm1787_vm14  ;;  %vm1791_vm0 = vcmp.ge.f32.partialorder %v3828_v14, 1.4000001  ;;  %vm1792_vm1 = vcmp.lt.f32.partialorder %v3828_v14, 1.8 }
0x18a7   :  { %v1937_v43 = vmul.f32 %v1936_v32, %v3922_v39  ;;  %vm1793_vm2 = vmand %vm1791_vm0, %vm1792_vm1  ;;  %vm1796_vm5 = vcmp.ge.f32.partialorder %v3828_v14, 1.8  ;;  %vm1797_vm6 = vcmp.lt.f32.partialorder %v3828_v14, 2.2  ;;  %v3943_v44 = vadd.f32 1.0, %v3828_v14 }
0x18a8   :  { %v1920_v48 = vadd.f32 %v1919_v45, %v1917_v41  ;;  %v1939_v49 = vmul.f32 %v1938_v42, %v3926_v25  ;;  %v2598_v50 = vsel %vm1788_vm15, 1.0, %v3387_v21  ;;  %vm1798_vm7 = vmand %vm1796_vm5, %vm1797_vm6  ;;  %v2608_v52 = vadd.f32 -0.6, %v3828_v14 }
0x18a9   :  { %v2599_v53 = vsel %vm1793_vm2, 1.0, %v3387_v21  ;;  %v3950_v54 = vsub.f32 1.4000001, %v3828_v14  ;;  %v1858_v55 = vmul.f32 2.4999995, %v3867_v34  ;;  %v3177_v57 = vpack.c.bf16 %v2013_v29, %v2012_v26 }
0x18aa   :  { %v1940_v58 = vadd.f32 %v1939_v49, %v1937_v43  ;;  %v1851_v33 = vmul.f32 2.4999995, %v2608_v52  ;;  %v3954_v60 = vsub.f32 1.8, %v3828_v14  ;;  %v2610_v62 = vadd.f32 -1.4000001, %v3828_v14 }
0x18ab   :  { %v2600_v20 = vsel %vm1798_vm7, 1.0, %v3387_v21  ;;  %v1854_v63 = vmul.f32 2.4999995, %v3950_v54  ;;  %v1859_v0 = vmul.f32 %v2598_v50, %v1858_v55  ;;  %v1867_v1 = vsub.f32 2.2, %v3828_v14  ;;  %3178 = vmatprep.subr.bf16.mxu0 %v3177_v57 }
0x18ac   :  { %v3241_v2 = vpack.i.bf16 %v1920_v48, %v1940_v58  ;;  %v1852_v61 = vmul.f32 %v3875_v38, %v1851_v33  ;;  %v1861_v5 = vmul.f32 2.4999995, %v3954_v60  ;;  %v1865_v6 = vmul.f32 2.4999995, %v2610_v62 }
0x18ad   :  { %v1855_v7 = vmul.f32 %v2598_v50, %v1854_v63  ;;  %v1868_v8 = vmul.f32 2.4999995, %v1867_v1  ;;  %v1906_v11 = vmul.f32 1.2499999, %v2608_v52  ;;  %v1908_v13 = vmul.f32 1.2499999, %v3954_v60 }
0x18ae   :  { %3242 = vrot.lane.b32.xlu0 %v3241_v2, %s3384_s23  ;;  %v1862_v22 = vmul.f32 %v2599_v53, %v1861_v5  ;;  %v1866_v10 = vmul.f32 %v2599_v53, %v1865_v6  ;;  %v2589_v15 = vmul.f32 -1.442695, %v3828_v14  ;;  %v1911_v24 = vmul.f32 1.2499999, %v3867_v34  ;;  %v1996_v63 = vld [vmem:[%s4268_s2 + $0x30] sm:$0xff]  ;;  %v2014_v5 = vld [vmem:[%s4268_s2 + $0xc0] sm:$0xff] }
0x18af   :  { %v1856_v4 = vadd.f32 %v1855_v7, %v1852_v61  ;;  %v1869_v12 = vmul.f32 %v2600_v20, %v1868_v8  ;;  %v1823_v38 = vmul.f32 2.4999995, %v3943_v44  ;;  %v3968_v17 = vsub.f32 -0.19999999, %v3828_v14 }
0x18b0   :  { %v1863_v3 = vadd.f32 %v1862_v22, %v1859_v0  ;;  %v1913_v35 = vmul.f32 1.2499999, %v1867_v1  ;;  %3352 = vpow2.f32 %v2589_v15  ;;  %v1951_v26 = vmul.f32 0.8333333, %v2608_v52  ;;  %v2024_v52 = vld [vmem:[%s4268_s2 + $0x110] sm:$0xff]  ;;  %v1997_v0 = vld [vmem:[%s4268_s2 + $0x38] sm:$0xff] }
0x18b1   :  { %v1870_v27 = vadd.f32 %v1869_v12, %v1866_v10  ;;  %v1907_v31 = vmul.f32 %v1906_v11, %v1856_v4  ;;  %v1824_v32 = vmul.f32 %v3851_v23, %v1823_v38  ;;  %v1826_v41 = vmul.f32 2.4999995, %v3968_v17  ;;  %v1998_v10 = vld [vmem:[%s4268_s2 + $0x40] sm:$0xff]  ;;  %v2016_v11 = vld [vmem:[%s4268_s2 + $0xd0] sm:$0xff] }
0x18b2   :  { %v1909_v16 = vmul.f32 %v1908_v13, %v1863_v3  ;;  %v1912_v37 = vmul.f32 %v1911_v24, %v1863_v3  ;;  %v1953_v29 = vmul.f32 0.8333333, %v1867_v1  ;;  %v1888_v48 = vmul.f32 1.2499999, %v3885_v46 }
0x18b3   :  { %v1914_v42 = vmul.f32 %v1913_v35, %v1870_v27  ;;  %v1827_v34 = vmul.f32 %v3861_v30, %v1826_v41  ;;  %v1901_v49 = vmul.f32 1.2499999, %v3900_v59  ;;  %v1903_v50 = vmul.f32 1.2499999, %v3950_v54  ;;  %v2025_v30 = vld [vmem:[%s4268_s2 + $0x118] sm:$0xff]  ;;  %v2000_v35 = vld [vmem:[%s4268_s2 + $0x50] sm:$0xff] }
0x18b4   :  { %v1910_v45 = vadd.f32 %v1909_v16, %v1907_v31  ;;  %v1881_v57 = vmul.f32 1.2499999, %v3879_v40  ;;  %v1883_v23 = vmul.f32 1.2499999, %v3968_v17  ;;  %v1886_v33 = vmul.f32 1.2499999, %v3943_v44 }
0x18b5   :  { %v1915_v43 = vadd.f32 %v1914_v42, %v1912_v37  ;;  %v1828_v55 = vadd.f32 %v1827_v34, %v1824_v32  ;;  %v1902_v62 = vmul.f32 %v1901_v49, %v3913_v9  ;;  %v1904_v20 = vmul.f32 %v1903_v50, %v1856_v4  ;;  %v2015_v9 = vld [vmem:[%s4268_s2 + $0xc8] sm:$0xff]  ;;  %v2017_v4 = vld [vmem:[%s4268_s2 + $0xd8] sm:$0xff]  ;;  %v2018_v49 = vld [vmem:[%s4268_s2 + $0xe0] sm:$0xff] }
0x18b6   :  { %v1952_v53 = vmul.f32 %v1951_v26, %v1910_v45  ;;  %v1889_v1 = vmul.f32 %v1888_v48, %v3907_v19  ;;  %v1882_v2 = vmul.f32 %v1881_v57, %v3904_v56  ;;  %v3201_v22 = vpack.c.bf16 %v2025_v30, %v2024_v52  ;;  %v1999_v56 = vld [vmem:[%s4268_s2 + $0x48] sm:$0xff]  ;;  %v2001_v16 = vld [vmem:[%s4268_s2 + $0x58] sm:$0xff]  ;;  %v2020_v52 = vld [vmem:[%s4268_s2 + $0xf0] sm:$0xff] }
0x18b7   :  { %v1954_v58 = vmul.f32 %v1953_v29, %v1915_v43  ;;  %v1884_v61 = vmul.f32 %v1883_v23, %v1828_v55  ;;  %v1887_v7 = vmul.f32 %v1886_v33, %v1828_v55  ;;  %v1905_v8 = vadd.f32 %v1904_v20, %v1902_v62  ;;  %v2003_v50 = vld [vmem:[%s4268_s2 + $0x68] sm:$0xff] }
0x18b8   :  { %v3179_v19 = vpack.c.bf16 %v1997_v0, %v1996_v63  ;;  %3202 = vmatpush3.bf16.msra.mxu1 %v3201_v22  ;;  %v3181_v13 = vpack.c.bf16 %v2015_v9, %v2014_v5  ;;  %v1946_v15 = vmul.f32 0.8333333, %v3900_v59  ;;  %v3183_v38 = vpack.c.bf16 %v1999_v56, %v1998_v10 }
0x18b9   :  { %v1955_v6 = vadd.f32 %v1954_v58, %v1952_v53  ;;  %v1885_v24 = vadd.f32 %v1884_v61, %v1882_v2  ;;  %3203 = vmatprep.subr.bf16.mxu1 %v3385_v18  ;;  %v1890_v27 = vadd.f32 %v1889_v1, %v1887_v7  ;;  %v3185_v31 = vpack.c.bf16 %v2017_v4, %v2016_v11 }
0x18ba   :  { %v3353_v12 = vpop.eup %3352  ;;  %3180 = vmatpush3.bf16.msra.mxu0 %v3179_v19  ;;  %v1947_v37 = vmul.f32 %v1946_v15, %v1905_v8  ;;  %v1948_v59 = vmul.f32 0.8333333, %v3954_v60  ;;  %v1926_v32 = vmul.f32 0.8333333, %v3879_v40  ;;  %v1928_v42 = vmul.f32 0.8333333, %v3885_v46 }
0x18bb   :  { %1981 = vrot.lane.b32.xlu0 %v1955_v6, %s3389_s7  ;;  %v1742_v3 = vadd.f32 1.0, %v3353_v12  ;;  %3182 = vmatprep.subr.bf16.mxu0 %v3181_v13  ;;  %v3187_v26 = vpack.c.bf16 %v2001_v16, %v2000_v35  ;;  %v1933_v48 = vmul.f32 0.8333333, %v3891_v51  ;;  %v2019_v60 = vld [vmem:[%s4268_s2 + $0xe8] sm:$0xff]  ;;  %v2002_v40 = vld [vmem:[%s4268_s2 + $0x60] sm:$0xff]  ;;  %vm4272_vm10 = vcmask 523264  }
0x18bc   :  { %v1949_v41 = vmul.f32 %v1948_v59, %v1910_v45  ;;  %v1927_v29 = vmul.f32 %v1926_v32, %v1885_v24  ;;  %v1929_v43 = vmul.f32 %v1928_v42, %v1890_v27  ;;  %v1931_v46 = vmul.f32 0.8333333, %v3943_v44  ;;  %v2021_v44 = vld [vmem:[%s4268_s2 + $0xf8] sm:$0xff]  ;;  %vm4273_vm11 = vmmov %vm4272_vm10  ;;  %v2428_v59 = vld [vmem:[%s4269_s3 + $0x20] sm:$0xff] }
0x18bd   :  { %3354 = vrcp.f32 %v1742_v3  ;;  %v3189_v45 = vpack.c.bf16 %v2019_v60, %v2018_v49  ;;  %v1934_v53 = vmul.f32 %v1933_v48, %v3922_v39  ;;  %v1921_v55 = vmul.f32 0.8333333, %v3864_v28  ;;  %v2004_v28 = vld [vmem:[%s4268_s2 + $0x70] sm:$0xff]  ;;  %v2427_v16 = vld [vmem:[%s4269_s3 + $0x18] sm:$0xff]  ;;  %v2429_v32 = vld [vmem:[%s4269_s3 + $0x28] sm:$0xff] }
0x18be   :  { %3184 = vmatpush3.bf16.msra.mxu0 %v3183_v38  ;;  %v1950_v34 = vadd.f32 %v1949_v41, %v1947_v37  ;;  %v1930_v51 = vadd.f32 %v1929_v43, %v1927_v29  ;;  %v1923_v57 = vmul.f32 0.8333333, %v3968_v17  ;;  %v3191_v23 = vpack.c.bf16 %v2003_v50, %v2002_v40  ;;  %v2005_v17 = vld [vmem:[%s4268_s2 + $0x78] sm:$0xff]  ;;  %v2424_v38 = vld [vmem:[%s4269_s3] sm:$0xff]  ;;  %v2430_v42 = vld [vmem:[%s4269_s3 + $0x30] sm:$0xff] }
0x18bf   :  { %3186 = vmatprep.subr.bf16.mxu0 %v3185_v31  ;;  %v1932_v30 = vmul.f32 %v1931_v46, %v1890_v27  ;;  %v1941_v58 = vmul.f32 0.8333333, %v3888_v47  ;;  %v1943_v33 = vmul.f32 0.8333333, %v3950_v54  ;;  %v3193_v39 = vpack.c.bf16 %v2021_v44, %v2020_v52  ;;  %v2425_v27 = vld [vmem:[%s4269_s3 + $0x8] sm:$0xff]  ;;  %v2426_v31 = vld [vmem:[%s4269_s3 + $0x10] sm:$0xff] }
0x18c0   :  { %v1922_v62 = vmul.f32 %v1921_v55, %v3919_v36  ;;  %v1924_v20 = vmul.f32 %v1923_v57, %v1885_v24  ;;  %v3195_v47 = vpack.c.bf16 %v2005_v17, %v2004_v28  ;;  %v3204_v35 = vpack.c.bf16 %v2425_v27, %v2424_v38  ;;  %v2433_v43 = vld [vmem:[%s4269_s3 + $0x48] sm:$0xff]  ;;  %v2434_v49 = vld [vmem:[%s4269_s3 + $0x50] sm:$0xff]  ;;  %v2435_v60 = vld [vmem:[%s4269_s3 + $0x58] sm:$0xff] }
0x18c1   :  { %v1942_v63 = vmul.f32 %v1941_v58, %v3926_v25  ;;  %v1944_v0 = vmul.f32 %v1943_v33, %v1905_v8  ;;  %v1935_v2 = vadd.f32 %v1934_v53, %v1932_v30  ;;  %v3207_v37 = vpack.c.bf16 %v2427_v16, %v2426_v31 }
0x18c2   :  { %3188 = vmatpush3.bf16.msra.mxu0 %v3187_v26  ;;  %v1925_v5 = vadd.f32 %v1924_v20, %v1922_v62  ;;  %v3210_v41 = vpack.c.bf16 %v2429_v32, %v2428_v59  ;;  %v2431_v26 = vld [vmem:[%s4269_s3 + $0x38] sm:$0xff]  ;;  %v3219_v40 = vpack.c.bf16 %v2435_v60, %v2434_v49 }
0x18c3   :  { %3190 = vmatprep.subr.bf16.mxu0 %v3189_v45  ;;  %v1945_v9 = vadd.f32 %v1944_v0, %v1942_v63  ;;  %v3213_v29 = vpack.c.bf16 %v2431_v26, %v2430_v42 }
0x18c5   :  { %v3251_v6 = vpack.i.bf16 %v1925_v5, %v1945_v9 }
0x18c6   :  { %3192 = vmatpush3.bf16.msra.mxu0 %v3191_v23 }
0x18c7   :  { %v3355_v1 = vpop.eup %3354  ;;  %3194 = vmatprep.subr.bf16.mxu0 %v3193_v39 }
0x18c8   :  { %v1745_v54 = vmul.f32 %v3355_v1, %v3828_v14 }
0x18ca   :  { %v3246_v61 = vpack.i.bf16 %v1745_v54, %v1935_v2  ;;  %3196 = vmatpush3.bf16.msra.mxu0 %v3195_v47 }
0x18cc   :  { %3247 = vrot.lane.b32.xlu1 %v3246_v61, %s3389_s7 }
0x18d0   :  { %3252 = vrot.lane.b32.xlu1 %v3251_v6, %s3388_s6 }
0x1920   :  { %v3243_v36 = vpop.permute.xlu0 %3242 }
0x1921   :  { %v3245_v10 = vunpack.i.h.bf16 %v3243_v36  ;;  %v3244_v14 = vunpack.i.l.bf16 %v3243_v36 }
0x192d   :  { %v1982_v7 = vpop.permute.xlu0 %1981 }
0x192e   :  { %3031 = vmatmul.mubr.msk.f32.vlgmr.msra.gmra.mrb[16].mxu1 %vm205_vm3, %v1982_v7 }
0x192f   :  { %3205 = vmatpush1.bf16.msra.mxu1 %v3204_v35 }
0x1930   :  { %3206 = vmatprep.subr.bf16.mxu1 %v3385_v18 }
0x1933   :  { %3208 = vmatpush1.bf16.msra.mxu1 %v3207_v37 }
0x1934   :  { %3209 = vmatprep.subr.bf16.mxu1 %v3385_v18 }
0x1937   :  { %3211 = vmatpush1.bf16.msra.mxu1 %v3210_v41 }
0x1938   :  { %3212 = vmatprep.subr.bf16.mxu1 %v3385_v18 }
0x193b   :  { %3214 = vmatpush1.bf16.msra.mxu1 %v3213_v29 }
0x193c   :  { %3215 = vmatprep.subr.bf16.mxu1 %v3385_v18 }
0x193e   :  { %v3248_v25 = vpop.permute.xlu1 %3247 }
0x193f   :  { %v3250_v8 = vunpack.i.h.bf16 %v3248_v25  ;;  %v3249_v22 = vunpack.i.l.bf16 %v3248_v25 }
0x1941   :  { %v1983_v4 = vsel %vm205_vm3, %v3250_v8, %v3245_v10  ;;  %v1987_v12 = vsel %vm205_vm3, %v3249_v22, %v3244_v14 }
0x1942   :  { %v3253_v56 = vpop.permute.xlu1 %3252 }
0x1943   :  { %v3255_v19 = vunpack.i.h.bf16 %v3253_v56  ;;  %v3254_v11 = vunpack.i.l.bf16 %v3253_v56 }
0x1945   :  { %v1988_v13 = vsel %vm4272_vm10, %v1987_v12, %v3254_v11  ;;  %v1984_v15 = vsel %vm4273_vm11, %v1983_v4, %v3255_v19 }
0x1946   :  { %v1989_v3 = vsel %vm1985_vm9, %v1988_v13, %v1950_v34  ;;  %v1986_v24 = vsel %vm1985_vm9, %v1984_v15, %v1930_v51  ;;  %v2432_v34 = vld [vmem:[%s4269_s3 + $0x40] sm:$0xff] }
0x1947   :  { %2092 = vmatprep.mubr.f32.mxu0 %v1989_v3  ;;  %v3216_v48 = vpack.c.bf16 %v2433_v43, %v2432_v34 }
0x1948   :  { %2093 = vmatmul.mubr.f32.vlgmr.msra.gmra.mrb[22].mxu0 %v1986_v24 }
0x1949   :  { %3217 = vmatpush1.bf16.msra.mxu1 %v3216_v48 }
0x194a   :  { %3218 = vmatprep.subr.bf16.mxu1 %v3385_v18 }
0x194d   :  { %3220 = vmatpush1.bf16.msra.mxu1 %v3219_v40 }
0x194e   :  { %3221 = vmatprep.subr.bf16.mxu1 %v3385_v18 }
0x1a01   :  { %v2164_v46 = vpop.f32.mrb[16].mxu1 }
0x1a02   :  { %v3032_v45 = vpop.f32.mrb[17].mxu1 }
0x1a1b   :  { %v2779_v50 = vpop.f32.mrb[22].mxu0 }
0x1a1c   :  { %v2780_v51 = vpop.f32.mrb[23].mxu0 }
0x1a1d   :  { %v2781_v53 = vadd.f32 %v2780_v51, %v2779_v50 }
0x1a1f   :  { %v4109_v55 = vadd.f32 %v2781_v53, %v2164_v46 }
0x1a21   :  { %vm2210_vm8 = vcmp.ge.f32.partialorder %v4109_v55, 0.6  ;;  %vm2211_vm12 = vcmp.lt.f32.partialorder %v4109_v55, 1.0  ;;  %vm2215_vm13 = vcmp.ge.f32.partialorder %v4109_v55, 1.0  ;;  %vm2216_vm4 = vcmp.lt.f32.partialorder %v4109_v55, 1.4000001 }
0x1a22   :  { %vm2212_vm14 = vmand %vm2210_vm8, %vm2211_vm12  ;;  %vm2220_vm15 = vcmp.ge.f32.partialorder %v4109_v55, 1.4000001  ;;  %vm2221_vm0 = vcmp.lt.f32.partialorder %v4109_v55, 1.8  ;;  %vm2225_vm1 = vcmp.ge.f32.partialorder %v4109_v55, 1.8 }
0x1a23   :  { %vm2217_vm2 = vmand %vm2215_vm13, %vm2216_vm4  ;;  %vm2226_vm5 = vcmp.lt.f32.partialorder %v4109_v55, 2.2  ;;  %v2631_v57 = vadd.f32 -0.6, %v4109_v55  ;;  %v2632_v23 = vadd.f32 -1.0, %v4109_v55  ;;  %v4122_v52 = vsel %vm2212_vm14, 1.0, %v3387_v21 }
0x1a24   :  { %v2621_v44 = vsel %vm2217_vm2, 1.0, %v3387_v21  ;;  %vm2222_vm6 = vmand %vm2220_vm15, %vm2221_vm0  ;;  %v4126_v30 = vsub.f32 1.4000001, %v4109_v55  ;;  %v4129_v58 = vsub.f32 1.8, %v4109_v55  ;;  %vm2186_vm10 = vcmp.lt.f32.partialorder %v4109_v55, -1.0 }
0x1a25   :  { %v2622_v33 = vsel %vm2222_vm6, 1.0, %v3387_v21  ;;  %vm2227_vm7 = vmand %vm2225_vm1, %vm2226_vm5  ;;  %v2280_v39 = vmul.f32 2.4999995, %v2631_v57  ;;  %v2287_v28 = vmul.f32 2.4999995, %v2632_v23  ;;  %vm2190_vm11 = vcmp.ge.f32.partialorder %v4109_v55, -1.0 }
0x1a26   :  { %v2623_v17 = vsel %vm2227_vm7, 1.0, %v3387_v21  ;;  %v2283_v62 = vmul.f32 2.4999995, %v4126_v30  ;;  %v2290_v20 = vmul.f32 2.4999995, %v4129_v58  ;;  %v2240_v5 = vsub.f32 -1.0, %v4109_v55 }
0x1a27   :  { %v2281_v63 = vmul.f32 %v4122_v52, %v2280_v39  ;;  %v2288_v0 = vmul.f32 %v2621_v44, %v2287_v28  ;;  %v2633_v1 = vadd.f32 -1.4000001, %v4109_v55  ;;  %v2296_v47 = vsub.f32 2.2, %v4109_v55 }
0x1a28   :  { %v2284_v54 = vmul.f32 %v2621_v44, %v2283_v62  ;;  %v2291_v2 = vmul.f32 %v2622_v33, %v2290_v20  ;;  %v2335_v61 = vmul.f32 1.2499999, %v2631_v57  ;;  %v2337_v36 = vmul.f32 1.2499999, %v4129_v58 }
0x1a29   :  { %v2294_v9 = vmul.f32 2.4999995, %v2633_v1  ;;  %v2297_v6 = vmul.f32 2.4999995, %v2296_v47  ;;  %v2340_v8 = vmul.f32 1.2499999, %v2632_v23 }
0x1a2a   :  { %v4142_v7 = vadd.f32 %v2284_v54, %v2281_v63  ;;  %v2292_v25 = vadd.f32 %v2291_v2, %v2288_v0  ;;  %v2342_v22 = vmul.f32 1.2499999, %v2296_v47  ;;  %v2380_v56 = vmul.f32 0.8333333, %v2631_v57 }
0x1a2b   :  { %v2295_v10 = vmul.f32 %v2622_v33, %v2294_v9  ;;  %v2298_v14 = vmul.f32 %v2623_v17, %v2297_v6  ;;  %vm2180_vm8 = vcmp.ge.f32.partialorder %v4109_v55, -1.8  ;;  %vm2413_vm12 = vcmask 130048  }
0x1a2c   :  { %v2336_v19 = vmul.f32 %v2335_v61, %v4142_v7  ;;  %v2338_v11 = vmul.f32 %v2337_v36, %v2292_v25  ;;  %v2341_v4 = vmul.f32 %v2340_v8, %v2292_v25  ;;  %vm2181_vm13 = vcmp.lt.f32.partialorder %v4109_v55, -1.4 }
0x1a2d   :  { %v2299_v12 = vadd.f32 %v2298_v14, %v2295_v10  ;;  %vm2182_vm4 = vmand %vm2180_vm8, %vm2181_vm13  ;;  %vm2185_vm14 = vcmp.ge.f32.partialorder %v4109_v55, -1.4  ;;  %vm2191_vm15 = vcmp.lt.f32.partialorder %v4109_v55, -0.6  ;;  %vm2195_vm0 = vcmp.ge.f32.partialorder %v4109_v55, -0.6 }
0x1a2e   :  { %v4150_v13 = vadd.f32 %v2338_v11, %v2336_v19  ;;  %v2614_v15 = vsel %vm2182_vm4, 1.0, %v3387_v21  ;;  %vm2187_vm1 = vmand %vm2185_vm14, %vm2186_vm10  ;;  %vm2196_vm2 = vcmp.lt.f32.partialorder %v4109_v55, -0.19999999  ;;  %v2625_v3 = vadd.f32 1.8, %v4109_v55 }
0x1a2f   :  { %v2343_v24 = vmul.f32 %v2342_v22, %v2299_v12  ;;  %v2615_v38 = vsel %vm2187_vm1, 1.0, %v3387_v21  ;;  %vm2192_vm5 = vmand %vm2190_vm11, %vm2191_vm15  ;;  %v2241_v27 = vmul.f32 2.4999995, %v2240_v5  ;;  %v4163_v31 = vadd.f32 1.4, %v4109_v55 }
0x1a30   :  { %v2381_v35 = vmul.f32 %v2380_v56, %v4150_v13  ;;  %v2382_v16 = vmul.f32 0.8333333, %v2296_v47  ;;  %vm2197_vm6 = vmand %vm2195_vm0, %vm2196_vm2  ;;  %v2238_v37 = vmul.f32 2.4999995, %v2625_v3  ;;  %v4167_v59 = vsub.f32 -0.6, %v4109_v55 }
0x1a31   :  { %v2344_v32 = vadd.f32 %v2343_v24, %v2341_v4  ;;  %v2616_v41 = vsel %vm2192_vm5, 1.0, %v3387_v21  ;;  %v2242_v42 = vmul.f32 %v2615_v38, %v2241_v27  ;;  %v2245_v26 = vmul.f32 2.4999995, %v4163_v31 }
0x1a32   :  { %v2239_v29 = vmul.f32 %v2614_v15, %v2238_v37  ;;  %v2248_v34 = vmul.f32 2.4999995, %v4167_v59  ;;  %v4173_v43 = vadd.f32 1.0, %v4109_v55  ;;  %v2254_v48 = vsub.f32 -0.19999999, %v4109_v55 }
0x1a33   :  { %v2383_v49 = vmul.f32 %v2382_v16, %v2344_v32  ;;  %v2617_v60 = vsel %vm2197_vm6, 1.0, %v3387_v21  ;;  %v2246_v40 = vmul.f32 %v2615_v38, %v2245_v26  ;;  %v2305_v46 = vmul.f32 1.2499999, %v2625_v3 }
0x1a34   :  { %v2243_v45 = vadd.f32 %v2242_v42, %v2239_v29  ;;  %v2249_v50 = vmul.f32 %v2616_v41, %v2248_v34  ;;  %v2252_v51 = vmul.f32 2.4999995, %v4173_v43  ;;  %v2255_v53 = vmul.f32 2.4999995, %v2254_v48 }
0x1a35   :  { %v2384_v57 = vadd.f32 %v2383_v49, %v2381_v35  ;;  %v2307_v23 = vmul.f32 1.2499999, %v4167_v59  ;;  %v2310_v44 = vmul.f32 1.2499999, %v4163_v31  ;;  %v2312_v33 = vmul.f32 1.2499999, %v2254_v48 }
0x1a36   :  { %v2250_v39 = vadd.f32 %v2249_v50, %v2246_v40  ;;  %v2253_v28 = vmul.f32 %v2616_v41, %v2252_v51  ;;  %v2256_v17 = vmul.f32 %v2617_v60, %v2255_v53  ;;  %v2306_v62 = vmul.f32 %v2305_v46, %v2243_v45 }
0x1a37   :  { %2634 = vmatprep.mubr.msk.f32.mxu1 %vm2413_vm12, %v2384_v57  ;;  %v2350_v20 = vmul.f32 0.8333333, %v2625_v3  ;;  %vm2175_vm7 = vcmp.ge.f32.partialorder %v4109_v55, -2.2  ;;  %vm2176_vm10 = vcmp.lt.f32.partialorder %v4109_v55, -1.8 }
0x1a38   :  { %v2257_v63 = vadd.f32 %v2256_v17, %v2253_v28  ;;  %v2308_v0 = vmul.f32 %v2307_v23, %v2250_v39  ;;  %v2311_v1 = vmul.f32 %v2310_v44, %v2250_v39  ;;  %vm2177_vm11 = vmand %vm2175_vm7, %vm2176_vm10  ;;  %v2624_v47 = vadd.f32 2.2, %v4109_v55 }
0x1a39   :  { %v2352_v54 = vmul.f32 0.8333333, %v2254_v48  ;;  %v2613_v2 = vsel %vm2177_vm11, 1.0, %v3387_v21  ;;  %v2233_v61 = vsub.f32 -1.4, %v4109_v55  ;;  %v4189_v10 = vsub.f32 1.0, %v4109_v55 }
0x1a3a   :  { %v2309_v9 = vadd.f32 %v2308_v0, %v2306_v62  ;;  %v2313_v6 = vmul.f32 %v2312_v33, %v2257_v63  ;;  %v2231_v36 = vmul.f32 2.4999995, %v2624_v47  ;;  %v2302_v25 = vmul.f32 1.2499999, %v2240_v5 }
0x1a3b   :  { %v2234_v8 = vmul.f32 2.4999995, %v2233_v61  ;;  %v2300_v22 = vmul.f32 1.2499999, %v2624_v47  ;;  %vm2200_vm8 = vcmp.ge.f32.partialorder %v4109_v55, -0.19999999 }
0x1a3c   :  { %v2314_v14 = vadd.f32 %v2313_v6, %v2311_v1  ;;  %v2351_v56 = vmul.f32 %v2350_v20, %v2309_v9  ;;  %v2232_v19 = vmul.f32 %v2613_v2, %v2231_v36  ;;  %v2303_v4 = vmul.f32 %v2302_v25, %v2243_v45 }
0x1a3d   :  { %v2235_v11 = vmul.f32 %v2614_v15, %v2234_v8  ;;  %vm2201_vm13 = vcmp.lt.f32.partialorder %v4109_v55, 0.20000005  ;;  %vm2205_vm4 = vcmp.ge.f32.partialorder %v4109_v55, 0.20000005  ;;  %vm2206_vm15 = vcmp.lt.f32.partialorder %v4109_v55, 0.6 }
0x1a3e   :  { %v2353_v12 = vmul.f32 %v2352_v54, %v2314_v14  ;;  %vm2202_vm14 = vmand %vm2200_vm8, %vm2201_vm13  ;;  %v4196_v5 = vadd.f32 0.6, %v4109_v55  ;;  %v2261_v3 = vsub.f32 0.20000005, %v4109_v55  ;;  %v4201_v15 = vadd.f32 0.19999999, %v4109_v55 }
0x1a3f   :  { %v2236_v24 = vadd.f32 %v2235_v11, %v2232_v19  ;;  %v2618_v38 = vsel %vm2202_vm14, 1.0, %v3387_v21  ;;  %vm2207_vm0 = vmand %vm2205_vm4, %vm2206_vm15  ;;  %v2268_v27 = vsub.f32 0.6, %v4109_v55  ;;  %v2347_v42 = vmul.f32 0.8333333, %v4167_v59 }
0x1a40   :  { %v2354_v35 = vadd.f32 %v2353_v12, %v2351_v56  ;;  %v2619_v16 = vsel %vm2207_vm0, 1.0, %v3387_v21  ;;  %v2259_v37 = vmul.f32 2.4999995, %v4196_v5  ;;  %v2262_v32 = vmul.f32 2.4999995, %v2261_v3 }
0x1a41   :  { %v2301_v41 = vmul.f32 %v2300_v22, %v2236_v24  ;;  %v2266_v26 = vmul.f32 2.4999995, %v4201_v15  ;;  %v2269_v29 = vmul.f32 2.4999995, %v2268_v27  ;;  %v2345_v34 = vmul.f32 0.8333333, %v2624_v47 }
0x1a42   :  { %2390 = vrot.lane.b32.xlu0 %v2354_v35, %s3389_s7  ;;  %v2260_v48 = vmul.f32 %v2617_v60, %v2259_v37  ;;  %v2263_v49 = vmul.f32 %v2618_v38, %v2262_v32  ;;  %v2315_v40 = vmul.f32 1.2499999, %v4173_v43  ;;  %v2348_v45 = vmul.f32 %v2347_v42, %v2309_v9  ;;  %s3390_s7 = smov 16  }
0x1a43   :  { %v2304_v46 = vadd.f32 %v2303_v4, %v2301_v41  ;;  %v2267_v50 = vmul.f32 %v2618_v38, %v2266_v26  ;;  %v2270_v21 = vmul.f32 %v2619_v16, %v2269_v29  ;;  %v2317_v57 = vmul.f32 1.2499999, %v2261_v3  ;;  %v2438_v38 = vld [vmem:[%s4269_s3 + $0x70] sm:$0xff] }
0x1a44   :  { %v2264_v51 = vadd.f32 %v2263_v49, %v2260_v48  ;;  %v2316_v53 = vmul.f32 %v2315_v40, %v2257_v63  ;;  %v2320_v23 = vmul.f32 1.2499999, %v4196_v5  ;;  %v2322_v33 = vmul.f32 1.2499999, %v2268_v27 }
0x1a45   :  { %v2346_v59 = vmul.f32 %v2345_v34, %v2304_v46  ;;  %v2271_v44 = vadd.f32 %v2270_v21, %v2267_v50  ;;  %v2355_v39 = vmul.f32 0.8333333, %v4163_v31  ;;  %v2630_v60 = vadd.f32 -0.20000005, %v4109_v55 }
0x1a46   :  { %v2318_v28 = vmul.f32 %v2317_v57, %v2264_v51  ;;  %v2321_v17 = vmul.f32 %v2320_v23, %v2264_v51  ;;  %v2276_v62 = vmul.f32 2.4999995, %v4189_v10  ;;  %v2360_v1 = vmul.f32 0.8333333, %v4173_v43 }
0x1a47   :  { %v2349_v20 = vadd.f32 %v2348_v45, %v2346_v59  ;;  %v2323_v0 = vmul.f32 %v2322_v33, %v2271_v44  ;;  %v2357_v47 = vmul.f32 0.8333333, %v2261_v3  ;;  %v2356_v54 = vmul.f32 %v2355_v39, %v2314_v14  ;;  %v2436_v14 = vld [vmem:[%s4269_s3 + $0x60] sm:$0xff] }
0x1a48   :  { %v2319_v63 = vadd.f32 %v2318_v28, %v2316_v53  ;;  %v2273_v2 = vmul.f32 2.4999995, %v2630_v60  ;;  %v2277_v61 = vmul.f32 %v4122_v52, %v2276_v62  ;;  %v2362_v31 = vmul.f32 0.8333333, %v2268_v27  ;;  %v2437_v52 = vld [vmem:[%s4269_s3 + $0x68] sm:$0xff]  ;;  %v2439_v27 = vld [vmem:[%s4269_s3 + $0x78] sm:$0xff] }
0x1a49   :  { %2386 = vrot.lane.b32.xlu1 %v2349_v20, %s3390_s7  ;;  %v2324_v9 = vadd.f32 %v2323_v0, %v2321_v17  ;;  %v2325_v6 = vmul.f32 1.2499999, %v4201_v15  ;;  %v2332_v22 = vmul.f32 1.2499999, %v4126_v30  ;;  %v2327_v43 = vmul.f32 1.2499999, %v4189_v10 }
0x1a4a   :  { %v2361_v36 = vmul.f32 %v2360_v1, %v2319_v63  ;;  %v2358_v25 = vmul.f32 %v2357_v47, %v2319_v63  ;;  %v2274_v8 = vmul.f32 %v2619_v16, %v2273_v2  ;;  %v2330_v12 = vmul.f32 1.2499999, %v2630_v60 }
0x1a4b   :  { %v2363_v56 = vmul.f32 %v2362_v31, %v2324_v9  ;;  %v2326_v19 = vmul.f32 %v2325_v6, %v2271_v44  ;;  %v2333_v3 = vmul.f32 %v2332_v22, %v4142_v7  ;;  %v2365_v37 = vmul.f32 0.8333333, %v4196_v5  ;;  %v2440_v5 = vld [vmem:[%s4269_s3 + $0x80] sm:$0xff] }
0x1a4c   :  { %v2359_v11 = vadd.f32 %v2358_v25, %v2356_v54  ;;  %v2278_v4 = vadd.f32 %v2277_v61, %v2274_v8  ;;  %v3222_v32 = vpack.c.bf16 %v2437_v52, %v2436_v14  ;;  %v2370_v7 = vmul.f32 0.8333333, %v4201_v15  ;;  %v2441_v15 = vld [vmem:[%s4269_s3 + $0x88] sm:$0xff]  ;;  %s3393_s3 = smov 112  }
0x1a4d   :  { %v2364_v24 = vadd.f32 %v2363_v56, %v2361_v36  ;;  %v2372_v41 = vmul.f32 0.8333333, %v4126_v30  ;;  %v2367_v42 = vmul.f32 0.8333333, %v4189_v10  ;;  %v2366_v34 = vmul.f32 %v2365_v37, %v2324_v9 }
0x1a4e   :  { %2394 = vrot.lane.b32.xlu1 %v2359_v11, %s3391_s15  ;;  %v2328_v35 = vmul.f32 %v2327_v43, %v2278_v4  ;;  %v2331_v16 = vmul.f32 %v2330_v12, %v2278_v4  ;;  %3223 = vmatpush1.bf16.msra.mxu1 %v3222_v32  ;;  %v3225_v48 = vpack.c.bf16 %v2439_v27, %v2438_v38  ;;  %v2377_v49 = vmul.f32 0.8333333, %v4129_v58 }
0x1a4f   :  { %2398 = vrot.lane.b32.xlu0 %v2364_v24, %s3384_s23  ;;  %3224 = vmatprep.subr.bf16.mxu1 %v3385_v18  ;;  %v2375_v46 = vmul.f32 0.8333333, %v2630_v60  ;;  %v3228_v58 = vpack.c.bf16 %v2441_v15, %v2440_v5  ;;  %v2612_v57 = vmul.f32 -1.442695, %v4109_v55  ;;  %vm2416_vm1 = vcmask 392192  }
0x1a50   :  { %v2329_v26 = vadd.f32 %v2328_v35, %v2326_v19  ;;  %v2334_v29 = vadd.f32 %v2333_v3, %v2331_v16  ;;  %v2378_v45 = vmul.f32 %v2377_v49, %v4150_v13  ;;  %vm2419_vm2 = vcmask 654336  }
0x1a51   :  { %3356 = vpow2.f32 %v2612_v57  ;;  %vm4274_vm5 = vcmask 523264   ;;  %vm2422_vm6 = vcmask 916480  }
0x1a52   :  { %v2371_v30 = vmul.f32 %v2370_v7, %v2329_v26  ;;  %v2373_v40 = vmul.f32 %v2372_v41, %v2334_v29  ;;  %v2368_v10 = vmul.f32 %v2367_v42, %v2329_v26  ;;  %v2376_v51 = vmul.f32 %v2375_v46, %v2334_v29  ;;  %3226 = vmatpush1.bf16.msra.mxu1 %v3225_v48 }
0x1a53   :  { %3227 = vmatprep.subr.bf16.mxu1 %v3385_v18 }
0x1a54   :  { %v2374_v50 = vadd.f32 %v2373_v40, %v2371_v30  ;;  %v2369_v21 = vadd.f32 %v2368_v10, %v2366_v34  ;;  %v2379_v53 = vadd.f32 %v2378_v45, %v2376_v51 }
0x1a56   :  { %2406 = vrot.lane.b32.xlu0 %v2374_v50, %s3388_s6  ;;  %2402 = vrot.lane.b32.xlu1 %v2369_v21, %s3392_s19  ;;  %s3394_s6 = smov [#allocation2]  }
0x1a57   :  { %3229 = vmatpush1.bf16.msra.mxu1 %v3228_v58  ;;  %s2523_s20 = sshll.u32 %s3394_s6, 4  ;;  %s2524_s20 = int_to_ptr.vmem [resolvable:$true] %s2523_s20 }
0x1a58   :  { %s3360_s21 = scalar_lea.vmem %s2524_s20, 32  ;;  %p3365_p1 = scmp.lt.s32.totalorder %s2524_s20, %s2524_s20 }
0x1a59   :  { %p3361_p0 = scmp.ne.s32.totalorder %s2524_s20, %s3360_s21  ;;  %p3366_p2 = scmp.lt.s32.totalorder %s3360_s21, %s3360_s21 }
0x1a5a   :  { %2410 = vrot.lane.b32.xlu1 %v2379_v53, %s3393_s3 }
0x1a5b   :  { %v3357_v23 = vpop.eup %3356  ;;  %p3367_p3 = por %p3366_p2, %p3365_p1 }
0x1a5c   :  { %v2171_v13 = vadd.f32 1.0, %v3357_v23 }
0x1a5d   :  { %p3368_p4 = pnand %p3367_p3, %p3361_p0 }
0x1a5e   :  { %3358 = vrcp.f32 %v2171_v13 }
0x1a68   :  { %v3359_v59 = vpop.eup %3358 }
0x1a69   :  { %v2174_v39 = vmul.f32 %v3359_v59, %v4109_v55 }
0x1ab4   :  { %v2391_v33 = vpop.permute.xlu0 %2390 }
0x1abb   :  { %v2387_v44 = vpop.permute.xlu1 %2386 }
0x1abc   :  { %v2414_v18 = vsel %vm2413_vm12, %v2174_v39, %v2387_v44  ;;  %vm2515_vm12 = vcmask 58368  }
0x1abd   :  { %v2415_v60 = vsel %vm205_vm3, %v2414_v18, %v2391_v33 }
0x1ac0   :  { %v2395_v28 = vpop.permute.xlu1 %2394 }
0x1ac1   :  { %v2399_v17 = vpop.permute.xlu0 %2398  ;;  %v2417_v62 = vsel %vm2416_vm1, %v2415_v60, %v2395_v28 }
0x1ac2   :  { %v2418_v0 = vsel %vm4274_vm5, %v2417_v62, %v2399_v17 }
0x1ac8   :  { %v2403_v20 = vpop.permute.xlu1 %2402  ;;  %v2407_v1 = vpop.permute.xlu0 %2406 }
0x1ac9   :  { %v2420_v47 = vsel %vm2419_vm2, %v2418_v0, %v2403_v20 }
0x1aca   :  { %v2421_v54 = vsel %vm1985_vm9, %v2420_v47, %v2407_v1 }
0x1acc   :  { %v2411_v63 = vpop.permute.xlu1 %2410 }
0x1acd   :  { %v2423_v2 = vsel %vm2422_vm6, %v2421_v54, %v2411_v63 }
0x1ace   :  { %2510 = vmatmul.mubr.f32.vlgmr.msra.gmra.mrb[18].mxu1 %v2423_v2 }
0x1ba1   :  { %v2511_v55 = vpop.f32.mrb[18].mxu1 }
0x1ba2   :  { %2516 = vst.msk [vmem:[#allocation2] sm:$0x3] %vm2515_vm12, %v2511_v55  ;;  %v2513_v61 = vpop.f32.mrb[19].mxu1 }
0x1ba3   :  { %3371 = shalt.err (!%p3368_p4)
}
0x1ba4   :  { %s3372_s25 = scalar_lea.hbm %s4270_s4, 32 }
0x1ba5   :  { %p3373_p5 = scmp.ne.s32.totalorder %s4270_s4, %s3372_s25  ;;  %p3376_p6 = scmp.lt.u32.totalorder %s3372_s25, %s4270_s4 }
0x1ba7   :  { %p3378_p7 = pnand %p3376_p6, %p3373_p5 }
0x1ba9   :  { %3381 = shalt.err (!%p3378_p7)
}
0x1baa   :  { %2526 = dma.vmem_to_hbm [thread:$0]  %s2524_s20, 32, %s4270_s4, [#allocation3]  }
0x1bab   :  { %3382 = dma.done.wait [#allocation3], 32  }
0x1bac   :  { %3383 = vsyncadd [#allocation3], 4294967264 }
0x1bad   :  { %2530 = vsyncpa [#allocation3], 1 }

</bundles_post_ra>
